<compile_context>
chip_gen: v5e
topology: v5e:2x2
jax: 0.10.0
libtpu: 0.0.40
codegen_flags: <defaults>
</compile_context>

<pallas_src>
import jax
import jax.numpy as jnp
from jax.experimental import pallas as pl
from jax.experimental.pallas import tpu as pltpu

# TODO(synk): backbone itself is an injected nn.Module (not defined in head.py);
# the kernel takes its last feature map as input rather than re-implementing it.

C, H, W = 512, 8, 8
K = C * H * W            # 32768 — fixed by the module (fc1/fc2 in_features)
N_BOX, N_CLS = 4, 5      # fc1.out_features, fc2.out_features
N_OUT = N_BOX + N_CLS    # 9 fused output rows in the weight slab
LANE = 128
KJ = K // LANE           # 256 sublane-rows of the reshaped [*, KJ, 128] operands
CJ = 64                  # K-chunk (in sublane rows) per unrolled step


def head_kernel(x_ref, w_ref, b1_ref, b2_ref, box_ref, cls_ref):
    # x_ref:  [B, KJ, 128]  f32   (backbone last fmap, C-major flatten)
    # w_ref:  [9, KJ, 128]  bf16  (rows 0..3 = fc1, rows 4..8 = fc2)
    # b1_ref: [1, 4] f32, b2_ref: [1, 5] f32
    # box_ref:[B, 4] f32, cls_ref:[B, 5] f32
    bsz = x_ref.shape[0]
    accs = [jnp.zeros((bsz, LANE), jnp.float32) for _ in range(N_OUT)]

    # VPU formulation: per K-chunk, broadcast-multiply x against each weight
    # row and accumulate per-lane f32 partials; one x chunk is reused across
    # all 9 output columns.  Static chunking keeps vreg pressure bounded.
    for j in range(0, KJ, CJ):
        xs = x_ref[:, j:j + CJ, :]                                   # [B, CJ, 128]
        for n in range(N_OUT):
            ws = w_ref[n, j:j + CJ, :].astype(jnp.float32)           # [CJ, 128]
            accs[n] = accs[n] + jnp.sum(xs * ws[None, :, :], axis=1)  # [B, 128]

    # Single cross-lane (XLU) reduce per output column at the very end.
    out = jnp.concatenate(
        [jnp.sum(a, axis=-1, keepdims=True) for a in accs], axis=-1)  # [B, 9]

    box_ref[...] = out[:, :N_BOX] + b1_ref[...]
    cls_ref[...] = out[:, N_BOX:] + b2_ref[...]


@jax.jit
def head_forward(feat, w_fused, b1, b2):
    """feat: [B, 512, 8, 8] (NCHW backbone last feature map), f32.
    w_fused: [9, K/128, 128] bf16, b1: [1,4] f32, b2: [1,5] f32.
    Returns (boxes [B, 4], classes [B, 5]) — same as the PyTorch Head."""
    B = feat.shape[0]
    # C-major flatten exactly like PyTorch's x.view(B, -1); kept f32 (no
    # standalone convert op in the wrapper).
    x3 = feat.reshape(B, KJ, LANE)

    boxes, classes = pl.pallas_call(
        head_kernel,
        out_shape=(jax.ShapeDtypeStruct((B, N_BOX), jnp.float32),
                   jax.ShapeDtypeStruct((B, N_CLS), jnp.float32)),
        grid=(1,),
        in_specs=[
            pl.BlockSpec((B, KJ, LANE), lambda i: (0, 0, 0)),       # x (full)
            pl.BlockSpec((N_OUT, KJ, LANE), lambda i: (0, 0, 0)),   # w (full)
            pl.BlockSpec((1, N_BOX), lambda i: (0, 0)),             # b1
            pl.BlockSpec((1, N_CLS), lambda i: (0, 0)),             # b2
        ],
        out_specs=(pl.BlockSpec((B, N_BOX), lambda i: (0, 0)),
                   pl.BlockSpec((B, N_CLS), lambda i: (0, 0))),
        compiler_params=pltpu.CompilerParams(
            dimension_semantics=("arbitrary",),
        ),
    )(x3, w_fused, b1, b2)
    return boxes, classes


def make_params(key):
    """Deterministic synthetic fc1/fc2 params (PyTorch Linear: W [out, in], b [out])."""
    k1, k2, k3, k4 = jax.random.split(key, 4)
    scale = 1.0 / jnp.sqrt(jnp.float32(K))
    w1 = jax.random.uniform(k1, (N_BOX, K), jnp.float32, -scale, scale)
    b1 = jax.random.uniform(k2, (N_BOX,), jnp.float32, -scale, scale)
    w2 = jax.random.uniform(k3, (N_CLS, K), jnp.float32, -scale, scale)
    b2 = jax.random.uniform(k4, (N_CLS,), jnp.float32, -scale, scale)

    # Fuse in the NATIVE [N_OUT, K] layout (no transpose), bf16 for HBM
    # traffic, lane-dense reshape to [9, K/128, 128] done once here.
    w_fused = jnp.concatenate([w1, w2], axis=0).astype(jnp.bfloat16)
    w_fused3 = w_fused.reshape(N_OUT, KJ, LANE)
    return (w1, b1, w2, b2), (w_fused3, b1.reshape(1, N_BOX), b2.reshape(1, N_CLS))


if __name__ == "__main__":
    key = jax.random.PRNGKey(0)
    k_feat, k_params = jax.random.split(key)

    B = 2
    feat = jax.random.normal(k_feat, (B, C, H, W), jnp.float32)  # backbone last fmap

    (w1, b1v, w2, b2v), (w_fused, b1, b2) = make_params(k_params)

    boxes, classes = head_forward(feat, w_fused, b1, b2)
    jax.block_until_ready((boxes, classes))

    assert boxes.shape == (B, N_BOX) and classes.shape == (B, N_CLS)

    # Tight reference: identical inputs (f32 x, bf16 weights widened to f32),
    # f32 math — matches the kernel up to accumulation order.
    x_f32 = feat.reshape(B, -1)
    w_bf = w_fused.reshape(N_OUT, K).astype(jnp.float32)
    ref = jnp.dot(x_f32, w_bf.T, precision=jax.lax.Precision.HIGHEST)
    boxes_ref = ref[:, :N_BOX] + b1
    classes_ref = ref[:, N_BOX:] + b2
    assert jnp.allclose(boxes, boxes_ref, atol=1e-3, rtol=1e-3), float(
        jnp.max(jnp.abs(boxes - boxes_ref)))
    assert jnp.allclose(classes, classes_ref, atol=1e-3, rtol=1e-3), float(
        jnp.max(jnp.abs(classes - classes_ref)))

    # Loose sanity check vs full-f32 PyTorch-equivalent math (the bf16 weight
    # cast is the only approximation — accuracy tradeoff noted).
    boxes_f32 = jnp.dot(x_f32, w1.T, precision=jax.lax.Precision.HIGHEST) + b1v
    classes_f32 = jnp.dot(x_f32, w2.T, precision=jax.lax.Precision.HIGHEST) + b2v
    assert jnp.allclose(boxes, boxes_f32, atol=1e-2, rtol=1e-2)
    assert jnp.allclose(classes, classes_f32, atol=1e-2, rtol=1e-2)

    print("KERNEL_OK")
</pallas_src>

<mosaic_0001>
module attributes {stable_mosaic.version = 11 : i64} {
  func.func @head_kernel(%arg0: i32, %arg1: memref<2x256x128xf32, #tpu.memory_space<vmem>>, %arg2: memref<9x256x128xbf16, #tpu.memory_space<vmem>>, %arg3: memref<1x4xf32, #tpu.memory_space<vmem>>, %arg4: memref<1x5xf32, #tpu.memory_space<vmem>>, %arg5: memref<2x4xf32, #tpu.memory_space<vmem>>, %arg6: memref<2x5xf32, #tpu.memory_space<vmem>>) attributes {dimension_semantics = [#tpu.dimension_semantics<arbitrary>], iteration_bounds = array<i64: 1>, scalar_prefetch = 0 : i64, scratch_operands = 0 : i64, tpu.core_type = #tpu.core_type<tc>, window_params = [{pipeline_mode = #tpu.pipeline_mode<synchronous>, transform_indices = @transform_0, window_bounds = array<i64: 2, 256, 128>}, {pipeline_mode = #tpu.pipeline_mode<synchronous>, transform_indices = @transform_1, window_bounds = array<i64: 9, 256, 128>}, {pipeline_mode = #tpu.pipeline_mode<synchronous>, transform_indices = @transform_2, window_bounds = array<i64: 1, 4>}, {pipeline_mode = #tpu.pipeline_mode<synchronous>, transform_indices = @transform_3, window_bounds = array<i64: 1, 5>}, {pipeline_mode = #tpu.pipeline_mode<synchronous>, transform_indices = @transform_4, window_bounds = array<i64: 2, 4>}, {pipeline_mode = #tpu.pipeline_mode<synchronous>, transform_indices = @transform_5, window_bounds = array<i64: 2, 5>}]} {
    %cst = arith.constant 0.000000e+00 : f32
    %0 = vector.broadcast %cst : f32 to vector<2x128xf32>
    %cst_0 = arith.constant 0.000000e+00 : f32
    %1 = vector.broadcast %cst_0 : f32 to vector<2x128xf32>
    %cst_1 = arith.constant 0.000000e+00 : f32
    %2 = vector.broadcast %cst_1 : f32 to vector<2x128xf32>
    %cst_2 = arith.constant 0.000000e+00 : f32
    %3 = vector.broadcast %cst_2 : f32 to vector<2x128xf32>
    %cst_3 = arith.constant 0.000000e+00 : f32
    %4 = vector.broadcast %cst_3 : f32 to vector<2x128xf32>
    %cst_4 = arith.constant 0.000000e+00 : f32
    %5 = vector.broadcast %cst_4 : f32 to vector<2x128xf32>
    %cst_5 = arith.constant 0.000000e+00 : f32
    %6 = vector.broadcast %cst_5 : f32 to vector<2x128xf32>
    %cst_6 = arith.constant 0.000000e+00 : f32
    %7 = vector.broadcast %cst_6 : f32 to vector<2x128xf32>
    %cst_7 = arith.constant 0.000000e+00 : f32
    %8 = vector.broadcast %cst_7 : f32 to vector<2x128xf32>
    %c0 = arith.constant 0 : index
    %c0_8 = arith.constant 0 : index
    %c0_9 = arith.constant 0 : index
    %9 = vector.load %arg1[%c0, %c0_8, %c0_9] : memref<2x256x128xf32, #tpu.memory_space<vmem>>, vector<2x64x128xf32>
    %c0_10 = arith.constant 0 : index
    %c0_11 = arith.constant 0 : index
    %c0_12 = arith.constant 0 : index
    %10 = vector.load %arg2[%c0_10, %c0_11, %c0_12] : memref<9x256x128xbf16, #tpu.memory_space<vmem>>, vector<1x64x128xbf16>
    %11 = vector.shape_cast %10 : vector<1x64x128xbf16> to vector<64x128xbf16>
    %12 = arith.extf %11 : vector<64x128xbf16> to vector<64x128xf32>
    %13 = vector.shape_cast %12 : vector<64x128xf32> to vector<1x64x128xf32>
    %14 = vector.broadcast %13 : vector<1x64x128xf32> to vector<2x64x128xf32>
    %15 = arith.mulf %9, %14 : vector<2x64x128xf32>
    %cst_13 = arith.constant dense<0.000000e+00> : vector<2x128xf32>
    %16 = vector.multi_reduction <add>, %15, %cst_13 [1] : vector<2x64x128xf32> to vector<2x128xf32>
    %17 = arith.addf %0, %16 : vector<2x128xf32>
    %c1 = arith.constant 1 : index
    %c0_14 = arith.constant 0 : index
    %c0_15 = arith.constant 0 : index
    %18 = vector.load %arg2[%c1, %c0_14, %c0_15] : memref<9x256x128xbf16, #tpu.memory_space<vmem>>, vector<1x64x128xbf16>
    %19 = vector.shape_cast %18 : vector<1x64x128xbf16> to vector<64x128xbf16>
    %20 = arith.extf %19 : vector<64x128xbf16> to vector<64x128xf32>
    %21 = vector.shape_cast %20 : vector<64x128xf32> to vector<1x64x128xf32>
    %22 = vector.broadcast %21 : vector<1x64x128xf32> to vector<2x64x128xf32>
    %23 = arith.mulf %9, %22 : vector<2x64x128xf32>
    %cst_16 = arith.constant dense<0.000000e+00> : vector<2x128xf32>
    %24 = vector.multi_reduction <add>, %23, %cst_16 [1] : vector<2x64x128xf32> to vector<2x128xf32>
    %25 = arith.addf %1, %24 : vector<2x128xf32>
    %c2 = arith.constant 2 : index
    %c0_17 = arith.constant 0 : index
    %c0_18 = arith.constant 0 : index
    %26 = vector.load %arg2[%c2, %c0_17, %c0_18] : memref<9x256x128xbf16, #tpu.memory_space<vmem>>, vector<1x64x128xbf16>
    %27 = vector.shape_cast %26 : vector<1x64x128xbf16> to vector<64x128xbf16>
    %28 = arith.extf %27 : vector<64x128xbf16> to vector<64x128xf32>
    %29 = vector.shape_cast %28 : vector<64x128xf32> to vector<1x64x128xf32>
    %30 = vector.broadcast %29 : vector<1x64x128xf32> to vector<2x64x128xf32>
    %31 = arith.mulf %9, %30 : vector<2x64x128xf32>
    %cst_19 = arith.constant dense<0.000000e+00> : vector<2x128xf32>
    %32 = vector.multi_reduction <add>, %31, %cst_19 [1] : vector<2x64x128xf32> to vector<2x128xf32>
    %33 = arith.addf %2, %32 : vector<2x128xf32>
    %c3 = arith.constant 3 : index
    %c0_20 = arith.constant 0 : index
    %c0_21 = arith.constant 0 : index
    %34 = vector.load %arg2[%c3, %c0_20, %c0_21] : memref<9x256x128xbf16, #tpu.memory_space<vmem>>, vector<1x64x128xbf16>
    %35 = vector.shape_cast %34 : vector<1x64x128xbf16> to vector<64x128xbf16>
    %36 = arith.extf %35 : vector<64x128xbf16> to vector<64x128xf32>
    %37 = vector.shape_cast %36 : vector<64x128xf32> to vector<1x64x128xf32>
    %38 = vector.broadcast %37 : vector<1x64x128xf32> to vector<2x64x128xf32>
    %39 = arith.mulf %9, %38 : vector<2x64x128xf32>
    %cst_22 = arith.constant dense<0.000000e+00> : vector<2x128xf32>
    %40 = vector.multi_reduction <add>, %39, %cst_22 [1] : vector<2x64x128xf32> to vector<2x128xf32>
    %41 = arith.addf %3, %40 : vector<2x128xf32>
    %c4 = arith.constant 4 : index
    %c0_23 = arith.constant 0 : index
    %c0_24 = arith.constant 0 : index
    %42 = vector.load %arg2[%c4, %c0_23, %c0_24] : memref<9x256x128xbf16, #tpu.memory_space<vmem>>, vector<1x64x128xbf16>
    %43 = vector.shape_cast %42 : vector<1x64x128xbf16> to vector<64x128xbf16>
    %44 = arith.extf %43 : vector<64x128xbf16> to vector<64x128xf32>
    %45 = vector.shape_cast %44 : vector<64x128xf32> to vector<1x64x128xf32>
    %46 = vector.broadcast %45 : vector<1x64x128xf32> to vector<2x64x128xf32>
    %47 = arith.mulf %9, %46 : vector<2x64x128xf32>
    %cst_25 = arith.constant dense<0.000000e+00> : vector<2x128xf32>
    %48 = vector.multi_reduction <add>, %47, %cst_25 [1] : vector<2x64x128xf32> to vector<2x128xf32>
    %49 = arith.addf %4, %48 : vector<2x128xf32>
    %c5 = arith.constant 5 : index
    %c0_26 = arith.constant 0 : index
    %c0_27 = arith.constant 0 : index
    %50 = vector.load %arg2[%c5, %c0_26, %c0_27] : memref<9x256x128xbf16, #tpu.memory_space<vmem>>, vector<1x64x128xbf16>
    %51 = vector.shape_cast %50 : vector<1x64x128xbf16> to vector<64x128xbf16>
    %52 = arith.extf %51 : vector<64x128xbf16> to vector<64x128xf32>
    %53 = vector.shape_cast %52 : vector<64x128xf32> to vector<1x64x128xf32>
    %54 = vector.broadcast %53 : vector<1x64x128xf32> to vector<2x64x128xf32>
    %55 = arith.mulf %9, %54 : vector<2x64x128xf32>
    %cst_28 = arith.constant dense<0.000000e+00> : vector<2x128xf32>
    %56 = vector.multi_reduction <add>, %55, %cst_28 [1] : vector<2x64x128xf32> to vector<2x128xf32>
    %57 = arith.addf %5, %56 : vector<2x128xf32>
    %c6 = arith.constant 6 : index
    %c0_29 = arith.constant 0 : index
    %c0_30 = arith.constant 0 : index
    %58 = vector.load %arg2[%c6, %c0_29, %c0_30] : memref<9x256x128xbf16, #tpu.memory_space<vmem>>, vector<1x64x128xbf16>
    %59 = vector.shape_cast %58 : vector<1x64x128xbf16> to vector<64x128xbf16>
    %60 = arith.extf %59 : vector<64x128xbf16> to vector<64x128xf32>
    %61 = vector.shape_cast %60 : vector<64x128xf32> to vector<1x64x128xf32>
    %62 = vector.broadcast %61 : vector<1x64x128xf32> to vector<2x64x128xf32>
    %63 = arith.mulf %9, %62 : vector<2x64x128xf32>
    %cst_31 = arith.constant dense<0.000000e+00> : vector<2x128xf32>
    %64 = vector.multi_reduction <add>, %63, %cst_31 [1] : vector<2x64x128xf32> to vector<2x128xf32>
    %65 = arith.addf %6, %64 : vector<2x128xf32>
    %c7 = arith.constant 7 : index
    %c0_32 = arith.constant 0 : index
    %c0_33 = arith.constant 0 : index
    %66 = vector.load %arg2[%c7, %c0_32, %c0_33] : memref<9x256x128xbf16, #tpu.memory_space<vmem>>, vector<1x64x128xbf16>
    %67 = vector.shape_cast %66 : vector<1x64x128xbf16> to vector<64x128xbf16>
    %68 = arith.extf %67 : vector<64x128xbf16> to vector<64x128xf32>
    %69 = vector.shape_cast %68 : vector<64x128xf32> to vector<1x64x128xf32>
    %70 = vector.broadcast %69 : vector<1x64x128xf32> to vector<2x64x128xf32>
    %71 = arith.mulf %9, %70 : vector<2x64x128xf32>
    %cst_34 = arith.constant dense<0.000000e+00> : vector<2x128xf32>
    %72 = vector.multi_reduction <add>, %71, %cst_34 [1] : vector<2x64x128xf32> to vector<2x128xf32>
    %73 = arith.addf %7, %72 : vector<2x128xf32>
    %c8 = arith.constant 8 : index
    %c0_35 = arith.constant 0 : index
    %c0_36 = arith.constant 0 : index
    %74 = vector.load %arg2[%c8, %c0_35, %c0_36] : memref<9x256x128xbf16, #tpu.memory_space<vmem>>, vector<1x64x128xbf16>
    %75 = vector.shape_cast %74 : vector<1x64x128xbf16> to vector<64x128xbf16>
    %76 = arith.extf %75 : vector<64x128xbf16> to vector<64x128xf32>
    %77 = vector.shape_cast %76 : vector<64x128xf32> to vector<1x64x128xf32>
    %78 = vector.broadcast %77 : vector<1x64x128xf32> to vector<2x64x128xf32>
    %79 = arith.mulf %9, %78 : vector<2x64x128xf32>
    %cst_37 = arith.constant dense<0.000000e+00> : vector<2x128xf32>
    %80 = vector.multi_reduction <add>, %79, %cst_37 [1] : vector<2x64x128xf32> to vector<2x128xf32>
    %81 = arith.addf %8, %80 : vector<2x128xf32>
    %c0_38 = arith.constant 0 : index
    %c64 = arith.constant 64 : index
    %c0_39 = arith.constant 0 : index
    %82 = vector.load %arg1[%c0_38, %c64, %c0_39] : memref<2x256x128xf32, #tpu.memory_space<vmem>>, vector<2x64x128xf32>
    %c0_40 = arith.constant 0 : index
    %c64_41 = arith.constant 64 : index
    %c0_42 = arith.constant 0 : index
    %83 = vector.load %arg2[%c0_40, %c64_41, %c0_42] : memref<9x256x128xbf16, #tpu.memory_space<vmem>>, vector<1x64x128xbf16>
    %84 = vector.shape_cast %83 : vector<1x64x128xbf16> to vector<64x128xbf16>
    %85 = arith.extf %84 : vector<64x128xbf16> to vector<64x128xf32>
    %86 = vector.shape_cast %85 : vector<64x128xf32> to vector<1x64x128xf32>
    %87 = vector.broadcast %86 : vector<1x64x128xf32> to vector<2x64x128xf32>
    %88 = arith.mulf %82, %87 : vector<2x64x128xf32>
    %cst_43 = arith.constant dense<0.000000e+00> : vector<2x128xf32>
    %89 = vector.multi_reduction <add>, %88, %cst_43 [1] : vector<2x64x128xf32> to vector<2x128xf32>
    %90 = arith.addf %17, %89 : vector<2x128xf32>
    %c1_44 = arith.constant 1 : index
    %c64_45 = arith.constant 64 : index
    %c0_46 = arith.constant 0 : index
    %91 = vector.load %arg2[%c1_44, %c64_45, %c0_46] : memref<9x256x128xbf16, #tpu.memory_space<vmem>>, vector<1x64x128xbf16>
    %92 = vector.shape_cast %91 : vector<1x64x128xbf16> to vector<64x128xbf16>
    %93 = arith.extf %92 : vector<64x128xbf16> to vector<64x128xf32>
    %94 = vector.shape_cast %93 : vector<64x128xf32> to vector<1x64x128xf32>
    %95 = vector.broadcast %94 : vector<1x64x128xf32> to vector<2x64x128xf32>
    %96 = arith.mulf %82, %95 : vector<2x64x128xf32>
    %cst_47 = arith.constant dense<0.000000e+00> : vector<2x128xf32>
    %97 = vector.multi_reduction <add>, %96, %cst_47 [1] : vector<2x64x128xf32> to vector<2x128xf32>
    %98 = arith.addf %25, %97 : vector<2x128xf32>
    %c2_48 = arith.constant 2 : index
    %c64_49 = arith.constant 64 : index
    %c0_50 = arith.constant 0 : index
    %99 = vector.load %arg2[%c2_48, %c64_49, %c0_50] : memref<9x256x128xbf16, #tpu.memory_space<vmem>>, vector<1x64x128xbf16>
    %100 = vector.shape_cast %99 : vector<1x64x128xbf16> to vector<64x128xbf16>
    %101 = arith.extf %100 : vector<64x128xbf16> to vector<64x128xf32>
    %102 = vector.shape_cast %101 : vector<64x128xf32> to vector<1x64x128xf32>
    %103 = vector.broadcast %102 : vector<1x64x128xf32> to vector<2x64x128xf32>
    %104 = arith.mulf %82, %103 : vector<2x64x128xf32>
    %cst_51 = arith.constant dense<0.000000e+00> : vector<2x128xf32>
    %105 = vector.multi_reduction <add>, %104, %cst_51 [1] : vector<2x64x128xf32> to vector<2x128xf32>
    %106 = arith.addf %33, %105 : vector<2x128xf32>
    %c3_52 = arith.constant 3 : index
    %c64_53 = arith.constant 64 : index
    %c0_54 = arith.constant 0 : index
    %107 = vector.load %arg2[%c3_52, %c64_53, %c0_54] : memref<9x256x128xbf16, #tpu.memory_space<vmem>>, vector<1x64x128xbf16>
    %108 = vector.shape_cast %107 : vector<1x64x128xbf16> to vector<64x128xbf16>
    %109 = arith.extf %108 : vector<64x128xbf16> to vector<64x128xf32>
    %110 = vector.shape_cast %109 : vector<64x128xf32> to vector<1x64x128xf32>
    %111 = vector.broadcast %110 : vector<1x64x128xf32> to vector<2x64x128xf32>
    %112 = arith.mulf %82, %111 : vector<2x64x128xf32>
    %cst_55 = arith.constant dense<0.000000e+00> : vector<2x128xf32>
    %113 = vector.multi_reduction <add>, %112, %cst_55 [1] : vector<2x64x128xf32> to vector<2x128xf32>
    %114 = arith.addf %41, %113 : vector<2x128xf32>
    %c4_56 = arith.constant 4 : index
    %c64_57 = arith.constant 64 : index
    %c0_58 = arith.constant 0 : index
    %115 = vector.load %arg2[%c4_56, %c64_57, %c0_58] : memref<9x256x128xbf16, #tpu.memory_space<vmem>>, vector<1x64x128xbf16>
    %116 = vector.shape_cast %115 : vector<1x64x128xbf16> to vector<64x128xbf16>
    %117 = arith.extf %116 : vector<64x128xbf16> to vector<64x128xf32>
    %118 = vector.shape_cast %117 : vector<64x128xf32> to vector<1x64x128xf32>
    %119 = vector.broadcast %118 : vector<1x64x128xf32> to vector<2x64x128xf32>
    %120 = arith.mulf %82, %119 : vector<2x64x128xf32>
    %cst_59 = arith.constant dense<0.000000e+00> : vector<2x128xf32>
    %121 = vector.multi_reduction <add>, %120, %cst_59 [1] : vector<2x64x128xf32> to vector<2x128xf32>
    %122 = arith.addf %49, %121 : vector<2x128xf32>
    %c5_60 = arith.constant 5 : index
    %c64_61 = arith.constant 64 : index
    %c0_62 = arith.constant 0 : index
    %123 = vector.load %arg2[%c5_60, %c64_61, %c0_62] : memref<9x256x128xbf16, #tpu.memory_space<vmem>>, vector<1x64x128xbf16>
    %124 = vector.shape_cast %123 : vector<1x64x128xbf16> to vector<64x128xbf16>
    %125 = arith.extf %124 : vector<64x128xbf16> to vector<64x128xf32>
    %126 = vector.shape_cast %125 : vector<64x128xf32> to vector<1x64x128xf32>
    %127 = vector.broadcast %126 : vector<1x64x128xf32> to vector<2x64x128xf32>
    %128 = arith.mulf %82, %127 : vector<2x64x128xf32>
    %cst_63 = arith.constant dense<0.000000e+00> : vector<2x128xf32>
    %129 = vector.multi_reduction <add>, %128, %cst_63 [1] : vector<2x64x128xf32> to vector<2x128xf32>
    %130 = arith.addf %57, %129 : vector<2x128xf32>
    %c6_64 = arith.constant 6 : index
    %c64_65 = arith.constant 64 : index
    %c0_66 = arith.constant 0 : index
    %131 = vector.load %arg2[%c6_64, %c64_65, %c0_66] : memref<9x256x128xbf16, #tpu.memory_space<vmem>>, vector<1x64x128xbf16>
    %132 = vector.shape_cast %131 : vector<1x64x128xbf16> to vector<64x128xbf16>
    %133 = arith.extf %132 : vector<64x128xbf16> to vector<64x128xf32>
    %134 = vector.shape_cast %133 : vector<64x128xf32> to vector<1x64x128xf32>
    %135 = vector.broadcast %134 : vector<1x64x128xf32> to vector<2x64x128xf32>
    %136 = arith.mulf %82, %135 : vector<2x64x128xf32>
    %cst_67 = arith.constant dense<0.000000e+00> : vector<2x128xf32>
    %137 = vector.multi_reduction <add>, %136, %cst_67 [1] : vector<2x64x128xf32> to vector<2x128xf32>
    %138 = arith.addf %65, %137 : vector<2x128xf32>
    %c7_68 = arith.constant 7 : index
    %c64_69 = arith.constant 64 : index
    %c0_70 = arith.constant 0 : index
    %139 = vector.load %arg2[%c7_68, %c64_69, %c0_70] : memref<9x256x128xbf16, #tpu.memory_space<vmem>>, vector<1x64x128xbf16>
    %140 = vector.shape_cast %139 : vector<1x64x128xbf16> to vector<64x128xbf16>
    %141 = arith.extf %140 : vector<64x128xbf16> to vector<64x128xf32>
    %142 = vector.shape_cast %141 : vector<64x128xf32> to vector<1x64x128xf32>
    %143 = vector.broadcast %142 : vector<1x64x128xf32> to vector<2x64x128xf32>
    %144 = arith.mulf %82, %143 : vector<2x64x128xf32>
    %cst_71 = arith.constant dense<0.000000e+00> : vector<2x128xf32>
    %145 = vector.multi_reduction <add>, %144, %cst_71 [1] : vector<2x64x128xf32> to vector<2x128xf32>
    %146 = arith.addf %73, %145 : vector<2x128xf32>
    %c8_72 = arith.constant 8 : index
    %c64_73 = arith.constant 64 : index
    %c0_74 = arith.constant 0 : index
    %147 = vector.load %arg2[%c8_72, %c64_73, %c0_74] : memref<9x256x128xbf16, #tpu.memory_space<vmem>>, vector<1x64x128xbf16>
    %148 = vector.shape_cast %147 : vector<1x64x128xbf16> to vector<64x128xbf16>
    %149 = arith.extf %148 : vector<64x128xbf16> to vector<64x128xf32>
    %150 = vector.shape_cast %149 : vector<64x128xf32> to vector<1x64x128xf32>
    %151 = vector.broadcast %150 : vector<1x64x128xf32> to vector<2x64x128xf32>
    %152 = arith.mulf %82, %151 : vector<2x64x128xf32>
    %cst_75 = arith.constant dense<0.000000e+00> : vector<2x128xf32>
    %153 = vector.multi_reduction <add>, %152, %cst_75 [1] : vector<2x64x128xf32> to vector<2x128xf32>
    %154 = arith.addf %81, %153 : vector<2x128xf32>
    %c0_76 = arith.constant 0 : index
    %c128 = arith.constant 128 : index
    %c0_77 = arith.constant 0 : index
    %155 = vector.load %arg1[%c0_76, %c128, %c0_77] : memref<2x256x128xf32, #tpu.memory_space<vmem>>, vector<2x64x128xf32>
    %c0_78 = arith.constant 0 : index
    %c128_79 = arith.constant 128 : index
    %c0_80 = arith.constant 0 : index
    %156 = vector.load %arg2[%c0_78, %c128_79, %c0_80] : memref<9x256x128xbf16, #tpu.memory_space<vmem>>, vector<1x64x128xbf16>
    %157 = vector.shape_cast %156 : vector<1x64x128xbf16> to vector<64x128xbf16>
    %158 = arith.extf %157 : vector<64x128xbf16> to vector<64x128xf32>
    %159 = vector.shape_cast %158 : vector<64x128xf32> to vector<1x64x128xf32>
    %160 = vector.broadcast %159 : vector<1x64x128xf32> to vector<2x64x128xf32>
    %161 = arith.mulf %155, %160 : vector<2x64x128xf32>
    %cst_81 = arith.constant dense<0.000000e+00> : vector<2x128xf32>
    %162 = vector.multi_reduction <add>, %161, %cst_81 [1] : vector<2x64x128xf32> to vector<2x128xf32>
    %163 = arith.addf %90, %162 : vector<2x128xf32>
    %c1_82 = arith.constant 1 : index
    %c128_83 = arith.constant 128 : index
    %c0_84 = arith.constant 0 : index
    %164 = vector.load %arg2[%c1_82, %c128_83, %c0_84] : memref<9x256x128xbf16, #tpu.memory_space<vmem>>, vector<1x64x128xbf16>
    %165 = vector.shape_cast %164 : vector<1x64x128xbf16> to vector<64x128xbf16>
    %166 = arith.extf %165 : vector<64x128xbf16> to vector<64x128xf32>
    %167 = vector.shape_cast %166 : vector<64x128xf32> to vector<1x64x128xf32>
    %168 = vector.broadcast %167 : vector<1x64x128xf32> to vector<2x64x128xf32>
    %169 = arith.mulf %155, %168 : vector<2x64x128xf32>
    %cst_85 = arith.constant dense<0.000000e+00> : vector<2x128xf32>
    %170 = vector.multi_reduction <add>, %169, %cst_85 [1] : vector<2x64x128xf32> to vector<2x128xf32>
    %171 = arith.addf %98, %170 : vector<2x128xf32>
    %c2_86 = arith.constant 2 : index
    %c128_87 = arith.constant 128 : index
    %c0_88 = arith.constant 0 : index
    %172 = vector.load %arg2[%c2_86, %c128_87, %c0_88] : memref<9x256x128xbf16, #tpu.memory_space<vmem>>, vector<1x64x128xbf16>
    %173 = vector.shape_cast %172 : vector<1x64x128xbf16> to vector<64x128xbf16>
    %174 = arith.extf %173 : vector<64x128xbf16> to vector<64x128xf32>
    %175 = vector.shape_cast %174 : vector<64x128xf32> to vector<1x64x128xf32>
    %176 = vector.broadcast %175 : vector<1x64x128xf32> to vector<2x64x128xf32>
    %177 = arith.mulf %155, %176 : vector<2x64x128xf32>
    %cst_89 = arith.constant dense<0.000000e+00> : vector<2x128xf32>
    %178 = vector.multi_reduction <add>, %177, %cst_89 [1] : vector<2x64x128xf32> to vector<2x128xf32>
    %179 = arith.addf %106, %178 : vector<2x128xf32>
    %c3_90 = arith.constant 3 : index
    %c128_91 = arith.constant 128 : index
    %c0_92 = arith.constant 0 : index
    %180 = vector.load %arg2[%c3_90, %c128_91, %c0_92] : memref<9x256x128xbf16, #tpu.memory_space<vmem>>, vector<1x64x128xbf16>
    %181 = vector.shape_cast %180 : vector<1x64x128xbf16> to vector<64x128xbf16>
    %182 = arith.extf %181 : vector<64x128xbf16> to vector<64x128xf32>
    %183 = vector.shape_cast %182 : vector<64x128xf32> to vector<1x64x128xf32>
    %184 = vector.broadcast %183 : vector<1x64x128xf32> to vector<2x64x128xf32>
    %185 = arith.mulf %155, %184 : vector<2x64x128xf32>
    %cst_93 = arith.constant dense<0.000000e+00> : vector<2x128xf32>
    %186 = vector.multi_reduction <add>, %185, %cst_93 [1] : vector<2x64x128xf32> to vector<2x128xf32>
    %187 = arith.addf %114, %186 : vector<2x128xf32>
    %c4_94 = arith.constant 4 : index
    %c128_95 = arith.constant 128 : index
    %c0_96 = arith.constant 0 : index
    %188 = vector.load %arg2[%c4_94, %c128_95, %c0_96] : memref<9x256x128xbf16, #tpu.memory_space<vmem>>, vector<1x64x128xbf16>
    %189 = vector.shape_cast %188 : vector<1x64x128xbf16> to vector<64x128xbf16>
    %190 = arith.extf %189 : vector<64x128xbf16> to vector<64x128xf32>
    %191 = vector.shape_cast %190 : vector<64x128xf32> to vector<1x64x128xf32>
    %192 = vector.broadcast %191 : vector<1x64x128xf32> to vector<2x64x128xf32>
    %193 = arith.mulf %155, %192 : vector<2x64x128xf32>
    %cst_97 = arith.constant dense<0.000000e+00> : vector<2x128xf32>
    %194 = vector.multi_reduction <add>, %193, %cst_97 [1] : vector<2x64x128xf32> to vector<2x128xf32>
    %195 = arith.addf %122, %194 : vector<2x128xf32>
    %c5_98 = arith.constant 5 : index
    %c128_99 = arith.constant 128 : index
    %c0_100 = arith.constant 0 : index
    %196 = vector.load %arg2[%c5_98, %c128_99, %c0_100] : memref<9x256x128xbf16, #tpu.memory_space<vmem>>, vector<1x64x128xbf16>
    %197 = vector.shape_cast %196 : vector<1x64x128xbf16> to vector<64x128xbf16>
    %198 = arith.extf %197 : vector<64x128xbf16> to vector<64x128xf32>
    %199 = vector.shape_cast %198 : vector<64x128xf32> to vector<1x64x128xf32>
    %200 = vector.broadcast %199 : vector<1x64x128xf32> to vector<2x64x128xf32>
    %201 = arith.mulf %155, %200 : vector<2x64x128xf32>
    %cst_101 = arith.constant dense<0.000000e+00> : vector<2x128xf32>
    %202 = vector.multi_reduction <add>, %201, %cst_101 [1] : vector<2x64x128xf32> to vector<2x128xf32>
    %203 = arith.addf %130, %202 : vector<2x128xf32>
    %c6_102 = arith.constant 6 : index
    %c128_103 = arith.constant 128 : index
    %c0_104 = arith.constant 0 : index
    %204 = vector.load %arg2[%c6_102, %c128_103, %c0_104] : memref<9x256x128xbf16, #tpu.memory_space<vmem>>, vector<1x64x128xbf16>
    %205 = vector.shape_cast %204 : vector<1x64x128xbf16> to vector<64x128xbf16>
    %206 = arith.extf %205 : vector<64x128xbf16> to vector<64x128xf32>
    %207 = vector.shape_cast %206 : vector<64x128xf32> to vector<1x64x128xf32>
    %208 = vector.broadcast %207 : vector<1x64x128xf32> to vector<2x64x128xf32>
    %209 = arith.mulf %155, %208 : vector<2x64x128xf32>
    %cst_105 = arith.constant dense<0.000000e+00> : vector<2x128xf32>
    %210 = vector.multi_reduction <add>, %209, %cst_105 [1] : vector<2x64x128xf32> to vector<2x128xf32>
    %211 = arith.addf %138, %210 : vector<2x128xf32>
    %c7_106 = arith.constant 7 : index
    %c128_107 = arith.constant 128 : index
    %c0_108 = arith.constant 0 : index
    %212 = vector.load %arg2[%c7_106, %c128_107, %c0_108] : memref<9x256x128xbf16, #tpu.memory_space<vmem>>, vector<1x64x128xbf16>
    %213 = vector.shape_cast %212 : vector<1x64x128xbf16> to vector<64x128xbf16>
    %214 = arith.extf %213 : vector<64x128xbf16> to vector<64x128xf32>
    %215 = vector.shape_cast %214 : vector<64x128xf32> to vector<1x64x128xf32>
    %216 = vector.broadcast %215 : vector<1x64x128xf32> to vector<2x64x128xf32>
    %217 = arith.mulf %155, %216 : vector<2x64x128xf32>
    %cst_109 = arith.constant dense<0.000000e+00> : vector<2x128xf32>
    %218 = vector.multi_reduction <add>, %217, %cst_109 [1] : vector<2x64x128xf32> to vector<2x128xf32>
    %219 = arith.addf %146, %218 : vector<2x128xf32>
    %c8_110 = arith.constant 8 : index
    %c128_111 = arith.constant 128 : index
    %c0_112 = arith.constant 0 : index
    %220 = vector.load %arg2[%c8_110, %c128_111, %c0_112] : memref<9x256x128xbf16, #tpu.memory_space<vmem>>, vector<1x64x128xbf16>
    %221 = vector.shape_cast %220 : vector<1x64x128xbf16> to vector<64x128xbf16>
    %222 = arith.extf %221 : vector<64x128xbf16> to vector<64x128xf32>
    %223 = vector.shape_cast %222 : vector<64x128xf32> to vector<1x64x128xf32>
    %224 = vector.broadcast %223 : vector<1x64x128xf32> to vector<2x64x128xf32>
    %225 = arith.mulf %155, %224 : vector<2x64x128xf32>
    %cst_113 = arith.constant dense<0.000000e+00> : vector<2x128xf32>
    %226 = vector.multi_reduction <add>, %225, %cst_113 [1] : vector<2x64x128xf32> to vector<2x128xf32>
    %227 = arith.addf %154, %226 : vector<2x128xf32>
    %c0_114 = arith.constant 0 : index
    %c192 = arith.constant 192 : index
    %c0_115 = arith.constant 0 : index
    %228 = vector.load %arg1[%c0_114, %c192, %c0_115] : memref<2x256x128xf32, #tpu.memory_space<vmem>>, vector<2x64x128xf32>
    %c0_116 = arith.constant 0 : index
    %c192_117 = arith.constant 192 : index
    %c0_118 = arith.constant 0 : index
    %229 = vector.load %arg2[%c0_116, %c192_117, %c0_118] : memref<9x256x128xbf16, #tpu.memory_space<vmem>>, vector<1x64x128xbf16>
    %230 = vector.shape_cast %229 : vector<1x64x128xbf16> to vector<64x128xbf16>
    %231 = arith.extf %230 : vector<64x128xbf16> to vector<64x128xf32>
    %232 = vector.shape_cast %231 : vector<64x128xf32> to vector<1x64x128xf32>
    %233 = vector.broadcast %232 : vector<1x64x128xf32> to vector<2x64x128xf32>
    %234 = arith.mulf %228, %233 : vector<2x64x128xf32>
    %cst_119 = arith.constant dense<0.000000e+00> : vector<2x128xf32>
    %235 = vector.multi_reduction <add>, %234, %cst_119 [1] : vector<2x64x128xf32> to vector<2x128xf32>
    %236 = arith.addf %163, %235 : vector<2x128xf32>
    %c1_120 = arith.constant 1 : index
    %c192_121 = arith.constant 192 : index
    %c0_122 = arith.constant 0 : index
    %237 = vector.load %arg2[%c1_120, %c192_121, %c0_122] : memref<9x256x128xbf16, #tpu.memory_space<vmem>>, vector<1x64x128xbf16>
    %238 = vector.shape_cast %237 : vector<1x64x128xbf16> to vector<64x128xbf16>
    %239 = arith.extf %238 : vector<64x128xbf16> to vector<64x128xf32>
    %240 = vector.shape_cast %239 : vector<64x128xf32> to vector<1x64x128xf32>
    %241 = vector.broadcast %240 : vector<1x64x128xf32> to vector<2x64x128xf32>
    %242 = arith.mulf %228, %241 : vector<2x64x128xf32>
    %cst_123 = arith.constant dense<0.000000e+00> : vector<2x128xf32>
    %243 = vector.multi_reduction <add>, %242, %cst_123 [1] : vector<2x64x128xf32> to vector<2x128xf32>
    %244 = arith.addf %171, %243 : vector<2x128xf32>
    %c2_124 = arith.constant 2 : index
    %c192_125 = arith.constant 192 : index
    %c0_126 = arith.constant 0 : index
    %245 = vector.load %arg2[%c2_124, %c192_125, %c0_126] : memref<9x256x128xbf16, #tpu.memory_space<vmem>>, vector<1x64x128xbf16>
    %246 = vector.shape_cast %245 : vector<1x64x128xbf16> to vector<64x128xbf16>
    %247 = arith.extf %246 : vector<64x128xbf16> to vector<64x128xf32>
    %248 = vector.shape_cast %247 : vector<64x128xf32> to vector<1x64x128xf32>
    %249 = vector.broadcast %248 : vector<1x64x128xf32> to vector<2x64x128xf32>
    %250 = arith.mulf %228, %249 : vector<2x64x128xf32>
    %cst_127 = arith.constant dense<0.000000e+00> : vector<2x128xf32>
    %251 = vector.multi_reduction <add>, %250, %cst_127 [1] : vector<2x64x128xf32> to vector<2x128xf32>
    %252 = arith.addf %179, %251 : vector<2x128xf32>
    %c3_128 = arith.constant 3 : index
    %c192_129 = arith.constant 192 : index
    %c0_130 = arith.constant 0 : index
    %253 = vector.load %arg2[%c3_128, %c192_129, %c0_130] : memref<9x256x128xbf16, #tpu.memory_space<vmem>>, vector<1x64x128xbf16>
    %254 = vector.shape_cast %253 : vector<1x64x128xbf16> to vector<64x128xbf16>
    %255 = arith.extf %254 : vector<64x128xbf16> to vector<64x128xf32>
    %256 = vector.shape_cast %255 : vector<64x128xf32> to vector<1x64x128xf32>
    %257 = vector.broadcast %256 : vector<1x64x128xf32> to vector<2x64x128xf32>
    %258 = arith.mulf %228, %257 : vector<2x64x128xf32>
    %cst_131 = arith.constant dense<0.000000e+00> : vector<2x128xf32>
    %259 = vector.multi_reduction <add>, %258, %cst_131 [1] : vector<2x64x128xf32> to vector<2x128xf32>
    %260 = arith.addf %187, %259 : vector<2x128xf32>
    %c4_132 = arith.constant 4 : index
    %c192_133 = arith.constant 192 : index
    %c0_134 = arith.constant 0 : index
    %261 = vector.load %arg2[%c4_132, %c192_133, %c0_134] : memref<9x256x128xbf16, #tpu.memory_space<vmem>>, vector<1x64x128xbf16>
    %262 = vector.shape_cast %261 : vector<1x64x128xbf16> to vector<64x128xbf16>
    %263 = arith.extf %262 : vector<64x128xbf16> to vector<64x128xf32>
    %264 = vector.shape_cast %263 : vector<64x128xf32> to vector<1x64x128xf32>
    %265 = vector.broadcast %264 : vector<1x64x128xf32> to vector<2x64x128xf32>
    %266 = arith.mulf %228, %265 : vector<2x64x128xf32>
    %cst_135 = arith.constant dense<0.000000e+00> : vector<2x128xf32>
    %267 = vector.multi_reduction <add>, %266, %cst_135 [1] : vector<2x64x128xf32> to vector<2x128xf32>
    %268 = arith.addf %195, %267 : vector<2x128xf32>
    %c5_136 = arith.constant 5 : index
    %c192_137 = arith.constant 192 : index
    %c0_138 = arith.constant 0 : index
    %269 = vector.load %arg2[%c5_136, %c192_137, %c0_138] : memref<9x256x128xbf16, #tpu.memory_space<vmem>>, vector<1x64x128xbf16>
    %270 = vector.shape_cast %269 : vector<1x64x128xbf16> to vector<64x128xbf16>
    %271 = arith.extf %270 : vector<64x128xbf16> to vector<64x128xf32>
    %272 = vector.shape_cast %271 : vector<64x128xf32> to vector<1x64x128xf32>
    %273 = vector.broadcast %272 : vector<1x64x128xf32> to vector<2x64x128xf32>
    %274 = arith.mulf %228, %273 : vector<2x64x128xf32>
    %cst_139 = arith.constant dense<0.000000e+00> : vector<2x128xf32>
    %275 = vector.multi_reduction <add>, %274, %cst_139 [1] : vector<2x64x128xf32> to vector<2x128xf32>
    %276 = arith.addf %203, %275 : vector<2x128xf32>
    %c6_140 = arith.constant 6 : index
    %c192_141 = arith.constant 192 : index
    %c0_142 = arith.constant 0 : index
    %277 = vector.load %arg2[%c6_140, %c192_141, %c0_142] : memref<9x256x128xbf16, #tpu.memory_space<vmem>>, vector<1x64x128xbf16>
    %278 = vector.shape_cast %277 : vector<1x64x128xbf16> to vector<64x128xbf16>
    %279 = arith.extf %278 : vector<64x128xbf16> to vector<64x128xf32>
    %280 = vector.shape_cast %279 : vector<64x128xf32> to vector<1x64x128xf32>
    %281 = vector.broadcast %280 : vector<1x64x128xf32> to vector<2x64x128xf32>
    %282 = arith.mulf %228, %281 : vector<2x64x128xf32>
    %cst_143 = arith.constant dense<0.000000e+00> : vector<2x128xf32>
    %283 = vector.multi_reduction <add>, %282, %cst_143 [1] : vector<2x64x128xf32> to vector<2x128xf32>
    %284 = arith.addf %211, %283 : vector<2x128xf32>
    %c7_144 = arith.constant 7 : index
    %c192_145 = arith.constant 192 : index
    %c0_146 = arith.constant 0 : index
    %285 = vector.load %arg2[%c7_144, %c192_145, %c0_146] : memref<9x256x128xbf16, #tpu.memory_space<vmem>>, vector<1x64x128xbf16>
    %286 = vector.shape_cast %285 : vector<1x64x128xbf16> to vector<64x128xbf16>
    %287 = arith.extf %286 : vector<64x128xbf16> to vector<64x128xf32>
    %288 = vector.shape_cast %287 : vector<64x128xf32> to vector<1x64x128xf32>
    %289 = vector.broadcast %288 : vector<1x64x128xf32> to vector<2x64x128xf32>
    %290 = arith.mulf %228, %289 : vector<2x64x128xf32>
    %cst_147 = arith.constant dense<0.000000e+00> : vector<2x128xf32>
    %291 = vector.multi_reduction <add>, %290, %cst_147 [1] : vector<2x64x128xf32> to vector<2x128xf32>
    %292 = arith.addf %219, %291 : vector<2x128xf32>
    %c8_148 = arith.constant 8 : index
    %c192_149 = arith.constant 192 : index
    %c0_150 = arith.constant 0 : index
    %293 = vector.load %arg2[%c8_148, %c192_149, %c0_150] : memref<9x256x128xbf16, #tpu.memory_space<vmem>>, vector<1x64x128xbf16>
    %294 = vector.shape_cast %293 : vector<1x64x128xbf16> to vector<64x128xbf16>
    %295 = arith.extf %294 : vector<64x128xbf16> to vector<64x128xf32>
    %296 = vector.shape_cast %295 : vector<64x128xf32> to vector<1x64x128xf32>
    %297 = vector.broadcast %296 : vector<1x64x128xf32> to vector<2x64x128xf32>
    %298 = arith.mulf %228, %297 : vector<2x64x128xf32>
    %cst_151 = arith.constant dense<0.000000e+00> : vector<2x128xf32>
    %299 = vector.multi_reduction <add>, %298, %cst_151 [1] : vector<2x64x128xf32> to vector<2x128xf32>
    %300 = arith.addf %227, %299 : vector<2x128xf32>
    %cst_152 = arith.constant dense<0.000000e+00> : vector<2xf32>
    %301 = vector.multi_reduction <add>, %236, %cst_152 [1] : vector<2x128xf32> to vector<2xf32>
    %302 = vector.shape_cast %301 : vector<2xf32> to vector<2x1xf32>
    %cst_153 = arith.constant dense<0.000000e+00> : vector<2xf32>
    %303 = vector.multi_reduction <add>, %244, %cst_153 [1] : vector<2x128xf32> to vector<2xf32>
    %304 = vector.shape_cast %303 : vector<2xf32> to vector<2x1xf32>
    %cst_154 = arith.constant dense<0.000000e+00> : vector<2xf32>
    %305 = vector.multi_reduction <add>, %252, %cst_154 [1] : vector<2x128xf32> to vector<2xf32>
    %306 = vector.shape_cast %305 : vector<2xf32> to vector<2x1xf32>
    %cst_155 = arith.constant dense<0.000000e+00> : vector<2xf32>
    %307 = vector.multi_reduction <add>, %260, %cst_155 [1] : vector<2x128xf32> to vector<2xf32>
    %308 = vector.shape_cast %307 : vector<2xf32> to vector<2x1xf32>
    %cst_156 = arith.constant dense<0.000000e+00> : vector<2xf32>
    %309 = vector.multi_reduction <add>, %268, %cst_156 [1] : vector<2x128xf32> to vector<2xf32>
    %310 = vector.shape_cast %309 : vector<2xf32> to vector<2x1xf32>
    %cst_157 = arith.constant dense<0.000000e+00> : vector<2xf32>
    %311 = vector.multi_reduction <add>, %276, %cst_157 [1] : vector<2x128xf32> to vector<2xf32>
    %312 = vector.shape_cast %311 : vector<2xf32> to vector<2x1xf32>
    %cst_158 = arith.constant dense<0.000000e+00> : vector<2xf32>
    %313 = vector.multi_reduction <add>, %284, %cst_158 [1] : vector<2x128xf32> to vector<2xf32>
    %314 = vector.shape_cast %313 : vector<2xf32> to vector<2x1xf32>
    %cst_159 = arith.constant dense<0.000000e+00> : vector<2xf32>
    %315 = vector.multi_reduction <add>, %292, %cst_159 [1] : vector<2x128xf32> to vector<2xf32>
    %316 = vector.shape_cast %315 : vector<2xf32> to vector<2x1xf32>
    %cst_160 = arith.constant dense<0.000000e+00> : vector<2xf32>
    %317 = vector.multi_reduction <add>, %300, %cst_160 [1] : vector<2x128xf32> to vector<2xf32>
    %318 = vector.shape_cast %317 : vector<2xf32> to vector<2x1xf32>
    %319 = tpu.concatenate %302, %304, %306, %308, %310, %312, %314, %316, %318 in 1 : vector<2x1xf32>, vector<2x1xf32>, vector<2x1xf32>, vector<2x1xf32>, vector<2x1xf32>, vector<2x1xf32>, vector<2x1xf32>, vector<2x1xf32>, vector<2x1xf32> -> vector<2x9xf32>
    %320 = vector.extract_strided_slice %319 {offsets = [0, 0], sizes = [2, 4], strides = [1, 1]} : vector<2x9xf32> to vector<2x4xf32>
    %c0_161 = arith.constant 0 : index
    %c0_162 = arith.constant 0 : index
    %321 = vector.load %arg3[%c0_161, %c0_162] : memref<1x4xf32, #tpu.memory_space<vmem>>, vector<1x4xf32>
    %322 = vector.broadcast %321 : vector<1x4xf32> to vector<2x4xf32>
    %323 = arith.addf %320, %322 : vector<2x4xf32>
    %c0_163 = arith.constant 0 : index
    %c0_164 = arith.constant 0 : index
    %324 = vector.load %arg5[%c0_163, %c0_164] : memref<2x4xf32, #tpu.memory_space<vmem>>, vector<2x4xf32>
    tpu.vector_store %arg5[%c0_163, %c0_164], %323 {strides = array<i32>} : memref<2x4xf32, #tpu.memory_space<vmem>>, vector<2x4xf32>,
    %325 = vector.extract_strided_slice %319 {offsets = [0, 4], sizes = [2, 5], strides = [1, 1]} : vector<2x9xf32> to vector<2x5xf32>
    %c0_165 = arith.constant 0 : index
    %c0_166 = arith.constant 0 : index
    %326 = vector.load %arg4[%c0_165, %c0_166] : memref<1x5xf32, #tpu.memory_space<vmem>>, vector<1x5xf32>
    %327 = vector.broadcast %326 : vector<1x5xf32> to vector<2x5xf32>
    %328 = arith.addf %325, %327 : vector<2x5xf32>
    %c0_167 = arith.constant 0 : index
    %c0_168 = arith.constant 0 : index
    %329 = vector.load %arg6[%c0_167, %c0_168] : memref<2x5xf32, #tpu.memory_space<vmem>>, vector<2x5xf32>
    tpu.vector_store %arg6[%c0_167, %c0_168], %328 {strides = array<i32>} : memref<2x5xf32, #tpu.memory_space<vmem>>, vector<2x5xf32>,
    return
  }
  func.func @transform_0(%arg0: i32) -> (i32, i32, i32) {
    %c0_i32 = arith.constant 0 : i32
    %c0_i32_0 = arith.constant 0 : i32
    %c0_i32_1 = arith.constant 0 : i32
    %c0_i32_2 = arith.constant 0 : i32
    return %c0_i32, %c0_i32_0, %c0_i32_1 : i32, i32, i32
  }
  func.func @transform_1(%arg0: i32) -> (i32, i32, i32) {
    %c0_i32 = arith.constant 0 : i32
    %c0_i32_0 = arith.constant 0 : i32
    %c0_i32_1 = arith.constant 0 : i32
    %c0_i32_2 = arith.constant 0 : i32
    return %c0_i32, %c0_i32_0, %c0_i32_1 : i32, i32, i32
  }
  func.func @transform_2(%arg0: i32) -> (i32, i32) {
    %c0_i32 = arith.constant 0 : i32
    %c0_i32_0 = arith.constant 0 : i32
    %c0_i32_1 = arith.constant 0 : i32
    return %c0_i32, %c0_i32_0 : i32, i32
  }
  func.func @transform_3(%arg0: i32) -> (i32, i32) {
    %c0_i32 = arith.constant 0 : i32
    %c0_i32_0 = arith.constant 0 : i32
    %c0_i32_1 = arith.constant 0 : i32
    return %c0_i32, %c0_i32_0 : i32, i32
  }
  func.func @transform_4(%arg0: i32) -> (i32, i32) {
    %c0_i32 = arith.constant 0 : i32
    %c0_i32_0 = arith.constant 0 : i32
    %c0_i32_1 = arith.constant 0 : i32
    return %c0_i32, %c0_i32_0 : i32, i32
  }
  func.func @transform_5(%arg0: i32) -> (i32, i32) {
    %c0_i32 = arith.constant 0 : i32
    %c0_i32_0 = arith.constant 0 : i32
    %c0_i32_1 = arith.constant 0 : i32
    return %c0_i32, %c0_i32_0 : i32, i32
  }
}

</mosaic_0001>

<bundles_post_ra>
// kernel: head_forward.1
= control target key start
LH: loop header
LB: loop body
LE: loop exit
PB: predicated region body
PF: predicated region fallthrough
CT: control target
= control target key end

     0   :  { %11 = vsyncpa [#allocation3], 0  ;;  %s5711_s0 = inlined_call_operand.vmem [shape: f32[2,256,128], index: 0, kind: input, shape index: {}]   ;;  %s5712_s1 = inlined_call_operand.vmem [shape: bf16[9,256,128], index: 1, kind: input, shape index: {}]   ;;  %s5713_s2 = inlined_call_operand.vmem [shape: f32[1,4], index: 2, kind: input, shape index: {}]   ;;  %s5714_s3 = inlined_call_operand.vmem [shape: f32[1,5], index: 3, kind: input, shape index: {}]   ;;  %s5715_s4 = inlined_call_operand.hbm [shape: f32[2,4], index: 4, kind: output, shape index: {0}]   ;;  %s5716_s5 = inlined_call_operand.hbm [shape: f32[2,5], index: 5, kind: output, shape index: {1}]  }
   0x1   :  { %v3591_v0 = vld [vmem:[%s5711_s0] sm:$0xff]  ;;  %v3596_v1 = vld [vmem:[%s5711_s0 + $0x8] sm:$0xff]  ;;  %v3607_v4 = vld [vmem:[%s5711_s0 + $0x10] sm:$0xff] }
   0x2   :  { %v2643_v2 = vld [vmem:[%s5712_s1] sm:$0xff]   ;;  %v3218_v3 = vld [vmem:[%s5712_s1 + $0x8] sm:$0xff]   ;;  %v3219_v8 = vld [vmem:[%s5712_s1 + $0x10] sm:$0xff]  }
   0x3   :  { %v2644_v5 = vunpack.c.l.bf16 %v2643_v2  ;;  %v2645_v6 = vunpack.c.h.bf16 %v2643_v2  ;;  %v2648_v7 = vunpack.c.l.bf16 %v3218_v3  ;;  %v3615_v9 = vld [vmem:[%s5711_s0 + $0x100] sm:$0xff]  ;;  %v3620_v10 = vld [vmem:[%s5711_s0 + $0x108] sm:$0xff]  ;;  %v3625_v11 = vld [vmem:[%s5711_s0 + $0x110] sm:$0xff]  ;;  %v2649_v12 = vunpack.c.h.bf16 %v3218_v3 }
   0x4   :  { %v3630_v13 = vld [vmem:[%s5712_s1 + $0x18] sm:$0xff]   ;;  %v2652_v18 = vunpack.c.l.bf16 %v3219_v8  ;;  %v3647_v19 = vld [vmem:[%s5711_s0 + $0x20] sm:$0xff]  ;;  %v3656_v24 = vld [vmem:[%s5711_s0 + $0x28] sm:$0xff]  ;;  %v2653_v27 = vunpack.c.h.bf16 %v3219_v8 }
   0x5   :  { %v53_v14 = vmul.f32 %v2644_v5, %v3591_v0  ;;  %v54_v15 = vmul.f32 %v2645_v6, %v3596_v1  ;;  %v3637_v16 = vld [vmem:[%s5711_s0 + $0x18] sm:$0xff]  ;;  %v55_v20 = vmul.f32 %v2648_v7, %v3607_v4  ;;  %v61_v21 = vmul.f32 %v2644_v5, %v3615_v9  ;;  %v3661_v25 = vld [vmem:[%s5711_s0 + $0x30] sm:$0xff]  ;;  %v3666_v26 = vld [vmem:[%s5711_s0 + $0x120] sm:$0xff] }
   0x6   :  { %v3642_v17 = vld [vmem:[%s5711_s0 + $0x118] sm:$0xff]  ;;  %v62_v22 = vmul.f32 %v2645_v6, %v3620_v10  ;;  %v63_v23 = vmul.f32 %v2648_v7, %v3625_v11  ;;  %v2656_v28 = vunpack.c.l.bf16 %v3630_v13  ;;  %v3672_v29 = vld [vmem:[%s5711_s0 + $0x128] sm:$0xff]  ;;  %v56_v30 = vmul.f32 %v2649_v12, %v3637_v16  ;;  %v3253_v34 = vld [vmem:[%s5712_s1 + $0x20] sm:$0xff]  }
   0x7   :  { %v64_v31 = vmul.f32 %v2649_v12, %v3642_v17  ;;  %v69_v32 = vadd.f32 %v54_v15, %v53_v14  ;;  %v3254_v35 = vld [vmem:[%s5712_s1 + $0x28] sm:$0xff]   ;;  %v3685_v36 = vld [vmem:[%s5711_s0 + $0x130] sm:$0xff]  ;;  %v2657_v37 = vunpack.c.h.bf16 %v3630_v13  ;;  %v2788_v38 = vunpack.c.l.bf16 %v3253_v34  ;;  %v3693_v44 = vld [vmem:[%s5711_s0 + $0x40] sm:$0xff] }
   0x8   :  { %v82_v33 = vadd.f32 %v62_v22, %v61_v21  ;;  %v2789_v39 = vunpack.c.h.bf16 %v3253_v34  ;;  %v57_v40 = vmul.f32 %v2652_v18, %v3647_v19  ;;  %v65_v41 = vmul.f32 %v2652_v18, %v3666_v26  ;;  %v3698_v45 = vld [vmem:[%s5711_s0 + $0x48] sm:$0xff]  ;;  %v3255_v46 = vld [vmem:[%s5712_s1 + $0x30] sm:$0xff]   ;;  %v3706_v47 = vld [vmem:[%s5711_s0 + $0x38] sm:$0xff] }
   0x9   :  { %v70_v42 = vadd.f32 %v69_v32, %v55_v20  ;;  %v58_v48 = vmul.f32 %v2653_v27, %v3656_v24  ;;  %v59_v49 = vmul.f32 %v2656_v28, %v3661_v25  ;;  %v66_v50 = vmul.f32 %v2653_v27, %v3672_v29  ;;  %v3714_v51 = vld [vmem:[%s5711_s0 + $0x140] sm:$0xff]  ;;  %v3719_v52 = vld [vmem:[%s5711_s0 + $0x148] sm:$0xff]  ;;  %v3725_v57 = vld [vmem:[%s5711_s0 + $0x50] sm:$0xff] }
   0xa   :  { %v83_v43 = vadd.f32 %v82_v33, %v63_v23  ;;  %v2792_v53 = vunpack.c.l.bf16 %v3254_v35  ;;  %v67_v54 = vmul.f32 %v2656_v28, %v3685_v36  ;;  %5928 = vst [vmem:[#allocation8_spill] sm:$0xff] %v3725_v57  ;;  %v3730_v58 = vld [vmem:[%s5711_s0 + $0x150] sm:$0xff]  ;;  %v2793_v59 = vunpack.c.h.bf16 %v3254_v35  ;;  %v3256_v60 = vld [vmem:[%s5712_s1 + $0x38] sm:$0xff]   ;;  %v3758_v15 = vld [vmem:[%s5711_s0 + $0x60] sm:$0xff] }
   0xb   :  { %v71_v55 = vadd.f32 %v70_v42, %v56_v30  ;;  %v3738_v61 = vld [vmem:[%s5711_s0 + $0x138] sm:$0xff]  ;;  %v2796_v62 = vunpack.c.l.bf16 %v3255_v46  ;;  %v2797_v63 = vunpack.c.h.bf16 %v3255_v46  ;;  %v617_v2 = vmul.f32 %v2788_v38, %v3693_v44  ;;  %5931 = vst [vmem:[#allocation11_spill] sm:$0xff] %v3758_v15  ;;  %v3763_v18 = vld [vmem:[%s5711_s0 + $0x68] sm:$0xff]  ;;  %v3771_v30 = vld [vmem:[%s5711_s0 + $0x70] sm:$0xff] }
   0xc   :  { %v84_v56 = vadd.f32 %v83_v43, %v64_v31  ;;  %v618_v3 = vmul.f32 %v2789_v39, %v3698_v45  ;;  %v3745_v7 = vld [vmem:[%s5711_s0 + $0x58] sm:$0xff]  ;;  %v625_v12 = vmul.f32 %v2788_v38, %v3714_v51  ;;  %v626_v13 = vmul.f32 %v2789_v39, %v3719_v52  ;;  %5932 = vst [vmem:[#allocation12_spill] sm:$0xff] %v3763_v18  ;;  %v3776_v31 = vld [vmem:[%s5711_s0 + $0x160] sm:$0xff]  ;;  %v3791_v42 = vld [vmem:[%s5711_s0 + $0x168] sm:$0xff] }
   0xd   :  { %v72_v5 = vadd.f32 %v71_v55, %v57_v40  ;;  %5929 = vst [vmem:[#allocation9_spill] sm:$0xff] %v3745_v7  ;;  %v3750_v8 = vld [vmem:[%s5711_s0 + $0x158] sm:$0xff]  ;;  %v60_v14 = vmul.f32 %v2657_v37, %v3706_v47  ;;  %v2800_v20 = vunpack.c.l.bf16 %v3256_v60  ;;  %v619_v21 = vmul.f32 %v2792_v53, %v3725_v57 }
   0xe   :  { %v85_v6 = vadd.f32 %v84_v56, %v65_v41  ;;  %5930 = vst [vmem:[#allocation10_spill] sm:$0xff] %v3750_v8  ;;  %v627_v22 = vmul.f32 %v2792_v53, %v3730_v58  ;;  %v68_v23 = vmul.f32 %v2657_v37, %v3738_v61  ;;  %v2801_v32 = vunpack.c.h.bf16 %v3256_v60  ;;  %v3289_v37 = vld [vmem:[%s5712_s1 + $0x40] sm:$0xff]   ;;  %v3786_v41 = vld [vmem:[%s5711_s0 + $0x78] sm:$0xff] }
   0xf   :  { %v73_v27 = vadd.f32 %v72_v5, %v58_v48  ;;  %5933 = vst [vmem:[#allocation13_spill] sm:$0xff] %v3771_v30  ;;  %v620_v33 = vmul.f32 %v2793_v59, %v3745_v7  ;;  %v628_v34 = vmul.f32 %v2793_v59, %v3750_v8  ;;  %v633_v35 = vadd.f32 %v618_v3, %v617_v2  ;;  %v3798_v48 = vld [vmem:[%s5711_s0 + $0x170] sm:$0xff]  ;;  %v3290_v3 = vld [vmem:[%s5712_s1 + $0x48] sm:$0xff]  }
  0x10   :  { %v86_v28 = vadd.f32 %v85_v6, %v66_v50  ;;  %5934 = vst [vmem:[#allocation14_spill] sm:$0xff] %v3776_v31  ;;  %v646_v38 = vadd.f32 %v626_v13, %v625_v12  ;;  %v621_v43 = vmul.f32 %v2796_v62, %v3758_v15  ;;  %v622_v46 = vmul.f32 %v2797_v63, %v3763_v18 }
  0x11   :  { %v74_v39 = vadd.f32 %v73_v27, %v59_v49  ;;  %5935 = vst [vmem:[#allocation15_spill] sm:$0xff] %v3786_v41  ;;  %v3803_v49 = vld [vmem:[%s5711_s0 + $0x178] sm:$0xff]  ;;  %v623_v50 = vmul.f32 %v2800_v20, %v3771_v30  ;;  %v629_v53 = vmul.f32 %v2796_v62, %v3776_v31  ;;  %v2932_v60 = vunpack.c.l.bf16 %v3289_v37  ;;  %v3815_v62 = vld [vmem:[%s5711_s0 + $0x80] sm:$0xff] }
  0x12   :  { %v87_v40 = vadd.f32 %v86_v28, %v67_v54  ;;  %5936 = vst [vmem:[#allocation16_spill] sm:$0xff] %v3791_v42  ;;  %v634_v54 = vadd.f32 %v633_v35, %v619_v21  ;;  %v647_v55 = vadd.f32 %v646_v38, %v627_v22  ;;  %v2933_v2 = vunpack.c.h.bf16 %v3289_v37  ;;  %v3832_v28 = vld [vmem:[%s5711_s0 + $0x188] sm:$0xff]  ;;  %v3837_v35 = vld [vmem:[%s5711_s0 + $0x90] sm:$0xff] }
  0x13   :  { %5937 = vst [vmem:[#allocation17_spill] sm:$0xff] %v3798_v48  ;;  %v75_v56 = vadd.f32 %v74_v39, %v60_v14  ;;  %v624_v5 = vmul.f32 %v2801_v32, %v3786_v41  ;;  %v630_v6 = vmul.f32 %v2797_v63, %v3791_v42  ;;  %v3820_v14 = vld [vmem:[%s5711_s0 + $0x88] sm:$0xff]  ;;  %v632_v27 = vmul.f32 %v2801_v32, %v3803_v49  ;;  %v3827_v63 = vld [vmem:[%s5711_s0 + $0x180] sm:$0xff]  ;;  %v3291_v32 = vld [vmem:[%s5712_s1 + $0x50] sm:$0xff]  }
  0x14   :  { %5938 = vst [vmem:[#allocation18_spill] sm:$0xff] %v3803_v49  ;;  %v88_v59 = vadd.f32 %v87_v40, %v68_v23  ;;  %v635_v12 = vadd.f32 %v634_v54, %v620_v33  ;;  %v648_v13 = vadd.f32 %v647_v55, %v628_v34  ;;  %v631_v23 = vmul.f32 %v2800_v20, %v3798_v48  ;;  %v3845_v40 = vld [vmem:[%s5711_s0 + $0x190] sm:$0xff] }
  0x15   :  { %5939 = vst [vmem:[#allocation19_spill] sm:$0xff] %v3815_v62  ;;  %v76_v21 = vrot.slane %v75_v56, 4  ;;  %v2936_v20 = vunpack.c.l.bf16 %v3290_v3  ;;  %v2937_v38 = vunpack.c.h.bf16 %v3290_v3 }
  0x16   :  { %5940 = vst [vmem:[#allocation20_spill] sm:$0xff] %v3820_v14  ;;  %v89_v22 = vrot.slane %v88_v59, 4  ;;  %v636_v33 = vadd.f32 %v635_v12, %v621_v43  ;;  %v649_v34 = vadd.f32 %v648_v13, %v629_v53  ;;  %v1173_v43 = vmul.f32 %v2932_v60, %v3815_v62 }
  0x17   :  { %5941 = vst [vmem:[#allocation21_spill] sm:$0xff] %v3827_v63  ;;  %v77_v37 = vadd.f32 %v76_v21, %v75_v56  ;;  %v1174_v53 = vmul.f32 %v2933_v2, %v3820_v14 }
  0x18   :  { %5942 = vst [vmem:[#allocation22_spill] sm:$0xff] %v3832_v28  ;;  %v90_v39 = vadd.f32 %v89_v22, %v88_v59 }
  0x19   :  { %5943 = vst [vmem:[#allocation23_spill] sm:$0xff] %v3837_v35 }
  0x1a   :  { %5944 = vst [vmem:[#allocation24_spill] sm:$0xff] %v3845_v40 }
  0x1b   :  { %12 = vsyncpa [#allocation5], 0  ;;  %v637_v54 = vadd.f32 %v636_v33, %v622_v46  ;;  %v650_v55 = vadd.f32 %v649_v34, %v630_v6  ;;  %v3852_v3 = vld [vmem:[%s5711_s0 + $0x98] sm:$0xff]  ;;  %v1181_v59 = vmul.f32 %v2932_v60, %v3827_v63  ;;  %v1182_v12 = vmul.f32 %v2933_v2, %v3832_v28  ;;  %v3864_v33 = vld [vmem:[%s5711_s0 + $0xa0] sm:$0xff]  ;;  %s3555_s6 = smov [#allocation2]   ;;  %s2361_s10 = sshll.u32 %s5715_s4, 4  ;;  %s2362_s10 = int_to_ptr.hbm [resolvable:$true] %s2361_s10 }
  0x1c   :  { %5945 = vst [vmem:[#allocation25_spill] sm:$0xff] %v3852_v3  ;;  %v3857_v56 = vld [vmem:[%s5711_s0 + $0x198] sm:$0xff]  ;;  %v78_v13 = vrot.slane %v77_v37, 2  ;;  %v91_v21 = vrot.slane %v90_v39, 2  ;;  %v2940_v22 = vunpack.c.l.bf16 %v3291_v32  ;;  %v2941_v14 = vunpack.c.h.bf16 %v3291_v32  ;;  %v3869_v34 = vld [vmem:[%s5711_s0 + $0x1a0] sm:$0xff]  ;;  %v3881_v62 = vld [vmem:[%s5711_s0 + $0xa8] sm:$0xff] }
  0x1d   :  { %5946 = vst [vmem:[#allocation26_spill] sm:$0xff] %v3857_v56  ;;  %v638_v46 = vadd.f32 %v637_v54, %v623_v50  ;;  %v651_v6 = vadd.f32 %v650_v55, %v631_v23  ;;  %v3292_v60 = vld [vmem:[%s5712_s1 + $0x58] sm:$0xff]   ;;  %v1175_v2 = vmul.f32 %v2936_v20, %v3837_v35  ;;  %v1183_v32 = vmul.f32 %v2936_v20, %v3845_v40  ;;  %v3886_v49 = vld [vmem:[%s5711_s0 + $0x1a8] sm:$0xff]  ;;  %v3993_v42 = vld [vmem:[%s5711_s0 + $0xf0] sm:$0xff]  ;;  %s2359_s7 = sshll.u32 %s3555_s6, 4  ;;  %s3556_s11 = smov 124   ;;  %s2360_s7 = int_to_ptr.vmem [resolvable:$true] %s2359_s7 }
  0x1e   :  { %5947 = vst [vmem:[#allocation27_spill] sm:$0xff] %v3864_v33  ;;  %v79_v50 = vadd.f32 %v78_v13, %v77_v37  ;;  %v92_v23 = vadd.f32 %v91_v21, %v90_v39  ;;  %v1176_v54 = vmul.f32 %v2937_v38, %v3852_v3  ;;  %v1184_v55 = vmul.f32 %v2937_v38, %v3857_v56  ;;  %v3893_v21 = vld [vmem:[%s5711_s0 + $0xb0] sm:$0xff]  ;;  %s3557_s12 = smov [#allocation4]   ;;  %s2372_s15 = sshll.u32 %s5716_s5, 4  ;;  %s2373_s15 = int_to_ptr.hbm [resolvable:$true] %s2372_s15 }
  0x1f   :  { %5948 = vst [vmem:[#allocation28_spill] sm:$0xff] %v3869_v34  ;;  %v639_v28 = vadd.f32 %v638_v46, %v624_v5  ;;  %v652_v63 = vadd.f32 %v651_v6, %v632_v27  ;;  %v1189_v35 = vadd.f32 %v1174_v53, %v1173_v43  ;;  %v1202_v20 = vadd.f32 %v1182_v12, %v1181_v59  ;;  %v3898_v46 = vld [vmem:[%s5711_s0 + $0x1b0] sm:$0xff]  ;;  %v3325_v59 = vld [vmem:[%s5712_s1 + $0x60] sm:$0xff]  }
  0x20   :  { %5949 = vst [vmem:[#allocation29_spill] sm:$0xff] %v3881_v62  ;;  %v2944_v37 = vunpack.c.l.bf16 %v3292_v60  ;;  %v2945_v39 = vunpack.c.h.bf16 %v3292_v60  ;;  %v1177_v13 = vmul.f32 %v2940_v22, %v3864_v33  ;;  %v1185_v38 = vmul.f32 %v2940_v22, %v3869_v34  ;;  %v3908_v33 = vld [vmem:[%s5711_s0 + $0xb8] sm:$0xff] }
  0x21   :  { %5950 = vst [vmem:[#allocation30_spill] sm:$0xff] %v3886_v49  ;;  %v640_v5 = vrot.slane %v639_v28, 4  ;;  %v653_v27 = vrot.slane %v652_v63, 4  ;;  %v1190_v43 = vadd.f32 %v1189_v35, %v1175_v2  ;;  %v1203_v53 = vadd.f32 %v1202_v20, %v1183_v32  ;;  %v3913_v35 = vld [vmem:[%s5711_s0 + $0x1b8] sm:$0xff] }
  0x22   :  { %5951 = vst [vmem:[#allocation31_spill] sm:$0xff] %v3893_v21  ;;  %v80_v12 = vrot.slane %v79_v50, 1  ;;  %v93_v22 = vrot.slane %v92_v23, 1  ;;  %v1178_v6 = vmul.f32 %v2941_v14, %v3881_v62  ;;  %v1186_v60 = vmul.f32 %v2941_v14, %v3886_v49  ;;  %v3923_v49 = vld [vmem:[%s5712_s1 + $0x70] sm:$0xff]  }
  0x23   :  { %5952 = vst [vmem:[#allocation32_spill] sm:$0xff] %v3898_v46  ;;  %v641_v34 = vadd.f32 %v640_v5, %v639_v28  ;;  %v654_v56 = vadd.f32 %v653_v27, %v652_v63  ;;  %v1191_v2 = vadd.f32 %v1190_v43, %v1176_v54  ;;  %v1204_v32 = vadd.f32 %v1203_v53, %v1184_v55  ;;  %v3326_v27 = vld [vmem:[%s5712_s1 + $0x68] sm:$0xff]  }
  0x24   :  { %5953 = vst [vmem:[#allocation33_spill] sm:$0xff] %v3908_v33  ;;  %v1179_v20 = vmul.f32 %v2944_v37, %v3893_v21  ;;  %v1187_v62 = vmul.f32 %v2944_v37, %v3898_v46  ;;  %v3076_v40 = vunpack.c.l.bf16 %v3325_v59  ;;  %v3925_v54 = vadd.f32 %v80_v12, %v79_v50  ;;  %v3939_v50 = vld [vmem:[%s5711_s0 + $0xc8] sm:$0xff] }
  0x25   :  { %5954 = vst [vmem:[#allocation34_spill] sm:$0xff] %v3913_v35  ;;  %v642_v14 = vrot.slane %v641_v34, 2  ;;  %v655_v28 = vrot.slane %v654_v56, 2  ;;  %v1192_v63 = vadd.f32 %v1191_v2, %v1177_v13  ;;  %v1205_v5 = vadd.f32 %v1204_v32, %v1185_v38  ;;  %v3932_v13 = vld [vmem:[%s5711_s0 + $0xc0] sm:$0xff]  ;;  %v3949_v12 = vld [vmem:[%s5711_s0 + $0x1c8] sm:$0xff] }
  0x26   :  { %v1180_v55 = vmul.f32 %v2945_v39, %v3908_v33  ;;  %v1188_v37 = vmul.f32 %v2945_v39, %v3913_v35  ;;  %5955 = vst [vmem:[#allocation35_spill] sm:$0xff] %v3932_v13  ;;  %v3077_v38 = vunpack.c.h.bf16 %v3325_v59  ;;  %v3934_v43 = vadd.f32 %v93_v22, %v92_v23  ;;  %v3944_v39 = vld [vmem:[%s5711_s0 + $0x1c0] sm:$0xff] }
  0x27   :  { %v643_v53 = vadd.f32 %v642_v14, %v641_v34  ;;  %v1193_v2 = vadd.f32 %v1192_v63, %v1178_v6  ;;  %v1206_v32 = vadd.f32 %v1205_v5, %v1186_v60  ;;  %5956 = vst [vmem:[#allocation36_spill] sm:$0xff] %v3939_v50  ;;  %v656_v23 = vadd.f32 %v655_v28, %v654_v56  ;;  %v3328_v6 = vld [vmem:[%s5712_s1 + $0x78] sm:$0xff]   ;;  %v3958_v63 = vld [vmem:[%s5711_s0 + $0xd0] sm:$0xff] }
  0x28   :  { %5957 = vst [vmem:[#allocation37_spill] sm:$0xff] %v3944_v39  ;;  %v3080_v59 = vunpack.c.l.bf16 %v3326_v27  ;;  %v3081_v34 = vunpack.c.h.bf16 %v3326_v27  ;;  %v3084_v22 = vunpack.c.l.bf16 %v3923_v49  ;;  %v3963_v5 = vld [vmem:[%s5711_s0 + $0xd8] sm:$0xff]  ;;  %v3968_v56 = vld [vmem:[%s5711_s0 + $0x1d0] sm:$0xff]  ;;  %v3085_v28 = vunpack.c.h.bf16 %v3923_v49  ;;  %v3975_v27 = vld [vmem:[%s5711_s0 + $0xe0] sm:$0xff] }
  0x29   :  { %5958 = vst [vmem:[#allocation38_spill] sm:$0xff] %v3949_v12  ;;  %v1194_v60 = vadd.f32 %v1193_v2, %v1179_v20  ;;  %v1207_v14 = vadd.f32 %v1206_v32, %v1187_v62  ;;  %v1729_v20 = vmul.f32 %v3076_v40, %v3932_v13  ;;  %v644_v62 = vrot.slane %v643_v53, 1  ;;  %v3980_v2 = vld [vmem:[%s5711_s0 + $0xe8] sm:$0xff]  ;;  %v3988_v13 = vld [vmem:[%s5711_s0 + $0x1d8] sm:$0xff] }
  0x2a   :  { %5959 = vst [vmem:[#allocation39_spill] sm:$0xff] %v3958_v63  ;;  %v1730_v32 = vmul.f32 %v3077_v38, %v3939_v50  ;;  %v1737_v35 = vmul.f32 %v3076_v40, %v3944_v39  ;;  %v1738_v46 = vmul.f32 %v3077_v38, %v3949_v12  ;;  %v3088_v21 = vunpack.c.l.bf16 %v3328_v6  ;;  %v3998_v40 = vld [vmem:[%s5711_s0 + $0xf8] sm:$0xff] }
  0x2b   :  { %5960 = vst [vmem:[#allocation40_spill] sm:$0xff] %v3963_v5  ;;  %v1195_v49 = vadd.f32 %v1194_v60, %v1180_v55  ;;  %v1208_v33 = vadd.f32 %v1207_v14, %v1188_v37  ;;  %v3089_v3 = vunpack.c.h.bf16 %v3328_v6  ;;  %v657_v48 = vrot.slane %v656_v23, 1  ;;  %v4006_v6 = vld [vmem:[%s5711_s0 + $0x1e0] sm:$0xff] }
  0x2c   :  { %5961 = vst [vmem:[#allocation41_spill] sm:$0xff] %v3968_v56  ;;  %v1731_v55 = vmul.f32 %v3080_v59, %v3958_v63  ;;  %v1732_v37 = vmul.f32 %v3081_v34, %v3963_v5  ;;  %v1739_v38 = vmul.f32 %v3080_v59, %v3968_v56  ;;  %v1733_v12 = vmul.f32 %v3084_v22, %v3975_v27  ;;  %v4013_v63 = vld [vmem:[%s5711_s0 + $0x1e8] sm:$0xff]  ;;  %v4018_v59 = vld [vmem:[%s5711_s0 + $0x1f0] sm:$0xff] }
  0x2d   :  { %5962 = vst [vmem:[#allocation42_spill] sm:$0xff] %v3975_v27  ;;  %v1196_v60 = vrot.slane %v1195_v49, 4  ;;  %v1209_v14 = vrot.slane %v1208_v33, 4  ;;  %v1734_v39 = vmul.f32 %v3085_v28, %v3980_v2  ;;  %v645_v50 = vadd.f32 %v644_v62, %v643_v53  ;;  %v4024_v53 = vld [vmem:[%s5711_s0 + $0x1f8] sm:$0xff] }
  0x2e   :  { %5963 = vst [vmem:[#allocation43_spill] sm:$0xff] %v3980_v2  ;;  %v1740_v56 = vmul.f32 %v3081_v34, %v3988_v13  ;;  %v1745_v5 = vadd.f32 %v1730_v32, %v1729_v20  ;;  %v1758_v41 = vadd.f32 %v1738_v46, %v1737_v35  ;;  %v1735_v62 = vmul.f32 %v3088_v21, %v3993_v42  ;;  %v3225_v46 = vld [vmem:[%s5712_s1 + $0x100] sm:$0xff]   ;;  %v3226_v32 = vld [vmem:[%s5712_s1 + $0x108] sm:$0xff]  }
  0x2f   :  { %5964 = vst [vmem:[#allocation44_spill] sm:$0xff] %v4018_v59  ;;  %v1197_v31 = vadd.f32 %v1196_v60, %v1195_v49  ;;  %v1210_v30 = vadd.f32 %v1209_v14, %v1208_v33  ;;  %v1736_v2 = vmul.f32 %v3089_v3, %v3998_v40  ;;  %v658_v27 = vadd.f32 %v657_v48, %v656_v23 }
  0x30   :  { %5965 = vst [vmem:[#allocation45_spill] sm:$0xff] %v4024_v53  ;;  %v1741_v18 = vmul.f32 %v3084_v22, %v4006_v6  ;;  %v1746_v8 = vadd.f32 %v1745_v5, %v1731_v55  ;;  %v1759_v15 = vadd.f32 %v1758_v41, %v1739_v38  ;;  %v1742_v34 = vmul.f32 %v3085_v28, %v4013_v63  ;;  %v3227_v5 = vld [vmem:[%s5712_s1 + $0x110] sm:$0xff]  }
  0x31   :  { %v1198_v35 = vrot.slane %v1197_v31, 2  ;;  %v1211_v33 = vrot.slane %v1210_v30, 2  ;;  %v1743_v20 = vmul.f32 %v3088_v21, %v4018_v59  ;;  %v659_v48 = vadd.f32 %v645_v50, %v3925_v54  ;;  %v3228_v21 = vld [vmem:[%s5712_s1 + $0x118] sm:$0xff]  }
  0x32   :  { %v1744_v23 = vmul.f32 %v3089_v3, %v4024_v53  ;;  %v1747_v22 = vadd.f32 %v1746_v8, %v1732_v37  ;;  %v1760_v41 = vadd.f32 %v1759_v15, %v1740_v56  ;;  %v2676_v38 = vunpack.c.l.bf16 %v3225_v46 }
  0x33   :  { %v1199_v49 = vadd.f32 %v1198_v35, %v1197_v31  ;;  %v1212_v55 = vadd.f32 %v1211_v33, %v1210_v30  ;;  %v2677_v28 = vunpack.c.h.bf16 %v3225_v46  ;;  %v660_v60 = vadd.f32 %v658_v27, %v3934_v43 }
  0x34   :  { %v1748_v14 = vadd.f32 %v1747_v22, %v1733_v12  ;;  %v1761_v54 = vadd.f32 %v1760_v41, %v1741_v18  ;;  %v2680_v50 = vunpack.c.l.bf16 %v3226_v32  ;;  %v2681_v15 = vunpack.c.h.bf16 %v3226_v32 }
  0x35   :  { %v1200_v3 = vrot.slane %v1199_v49, 1  ;;  %v1213_v8 = vrot.slane %v1212_v55, 1  ;;  %v2684_v56 = vunpack.c.l.bf16 %v3227_v5  ;;  %v2685_v59 = vunpack.c.h.bf16 %v3227_v5 }
  0x36   :  { %v1749_v37 = vadd.f32 %v1748_v14, %v1734_v39  ;;  %v1762_v53 = vadd.f32 %v1761_v54, %v1742_v34  ;;  %v2688_v31 = vunpack.c.l.bf16 %v3228_v21  ;;  %v175_v30 = vmul.f32 %v2676_v38, %v3591_v0 }
  0x37   :  { %v176_v46 = vmul.f32 %v2677_v28, %v3596_v1  ;;  %v183_v35 = vmul.f32 %v2676_v38, %v3615_v9  ;;  %v184_v33 = vmul.f32 %v2677_v28, %v3620_v10  ;;  %v1201_v43 = vadd.f32 %v1200_v3, %v1199_v49 }
  0x38   :  { %v1750_v12 = vadd.f32 %v1749_v37, %v1735_v62  ;;  %v1763_v18 = vadd.f32 %v1762_v53, %v1743_v20  ;;  %v2689_v27 = vunpack.c.h.bf16 %v3228_v21  ;;  %v1214_v22 = vadd.f32 %v1213_v8, %v1212_v55  ;;  %v3261_v20 = vld [vmem:[%s5712_s1 + $0x120] sm:$0xff]  }
  0x39   :  { %v177_v32 = vmul.f32 %v2680_v50, %v3607_v4  ;;  %v178_v39 = vmul.f32 %v2681_v15, %v3637_v16  ;;  %v185_v34 = vmul.f32 %v2680_v50, %v3625_v11  ;;  %v179_v14 = vmul.f32 %v2684_v56, %v3647_v19 }
  0x3a   :  { %v1751_v41 = vadd.f32 %v1750_v12, %v1736_v2  ;;  %v1764_v5 = vadd.f32 %v1763_v18, %v1744_v23  ;;  %v180_v54 = vmul.f32 %v2685_v59, %v3656_v24  ;;  %v181_v38 = vmul.f32 %v2688_v31, %v3661_v25 }
  0x3b   :  { %v186_v49 = vmul.f32 %v2681_v15, %v3642_v17  ;;  %v191_v62 = vadd.f32 %v176_v46, %v175_v30  ;;  %v204_v53 = vadd.f32 %v184_v33, %v183_v35  ;;  %v1215_v55 = vadd.f32 %v1201_v43, %v659_v48  ;;  %v3262_v15 = vld [vmem:[%s5712_s1 + $0x128] sm:$0xff]   ;;  %v3263_v48 = vld [vmem:[%s5712_s1 + $0x130] sm:$0xff]  }
  0x3c   :  { %v1752_v28 = vrot.slane %v1751_v41, 4  ;;  %v1765_v21 = vrot.slane %v1764_v5, 4  ;;  %v182_v2 = vmul.f32 %v2689_v27, %v3706_v47  ;;  %v1216_v23 = vadd.f32 %v1214_v22, %v660_v60 }
  0x3d   :  { %v187_v50 = vmul.f32 %v2684_v56, %v3666_v26  ;;  %v192_v3 = vadd.f32 %v191_v62, %v177_v32  ;;  %v205_v8 = vadd.f32 %v204_v53, %v185_v34  ;;  %v2820_v46 = vunpack.c.l.bf16 %v3261_v20  ;;  %v3264_v53 = vld [vmem:[%s5712_s1 + $0x138] sm:$0xff]  }
  0x3e   :  { %v1753_v37 = vadd.f32 %v1752_v28, %v1751_v41  ;;  %v1766_v30 = vadd.f32 %v1765_v21, %v1764_v5  ;;  %v2821_v35 = vunpack.c.h.bf16 %v3261_v20  ;;  %vm2255_vm0 = vcmask 1041409  }
  0x3f   :  { %v188_v33 = vmul.f32 %v2685_v59, %v3672_v29  ;;  %v189_v60 = vmul.f32 %v2688_v31, %v3685_v36  ;;  %v193_v56 = vadd.f32 %v192_v3, %v178_v39  ;;  %v206_v43 = vadd.f32 %v205_v8, %v186_v49 }
  0x40   :  { %v1754_v12 = vrot.slane %v1753_v37, 2  ;;  %v1767_v18 = vrot.slane %v1766_v30, 2  ;;  %vm2258_vm1 = vcmask 1041408   ;;  %v190_v22 = vmul.f32 %v2689_v27, %v3738_v61 }
  0x41   :  { %v2824_v32 = vunpack.c.l.bf16 %v3262_v15  ;;  %v194_v34 = vadd.f32 %v193_v56, %v179_v14  ;;  %v207_v41 = vadd.f32 %v206_v43, %v187_v50  ;;  %v2825_v5 = vunpack.c.h.bf16 %v3262_v15 }
  0x42   :  { %v2828_v62 = vunpack.c.l.bf16 %v3263_v48  ;;  %v1755_v20 = vadd.f32 %v1754_v12, %v1753_v37  ;;  %v1768_v59 = vadd.f32 %v1767_v18, %v1766_v30  ;;  %v737_v31 = vmul.f32 %v2820_v46, %v3693_v44 }
  0x43   :  { %v738_v39 = vmul.f32 %v2821_v35, %v3698_v45  ;;  %v195_v49 = vadd.f32 %v194_v34, %v180_v54  ;;  %v208_v28 = vadd.f32 %v207_v41, %v188_v33  ;;  %v745_v21 = vmul.f32 %v2820_v46, %v3714_v51  ;;  %v5966_v34 = vld [vmem:[#allocation11_spill] sm:$0xff]  ;;  %v5967_v41 = vld [vmem:[#allocation10_spill] sm:$0xff] }
  0x44   :  { %v746_v27 = vmul.f32 %v2821_v35, %v3719_v52  ;;  %v1756_v14 = vrot.slane %v1755_v20, 1  ;;  %v1769_v50 = vrot.slane %v1768_v59, 1  ;;  %v2829_v3 = vunpack.c.h.bf16 %v3263_v48 }
  0x45   :  { %v2832_v8 = vunpack.c.l.bf16 %v3264_v53  ;;  %v196_v15 = vadd.f32 %v195_v49, %v181_v38  ;;  %v209_v56 = vadd.f32 %v208_v28, %v189_v60  ;;  %v739_v43 = vmul.f32 %v2824_v32, %v3725_v57 }
  0x46   :  { %v747_v37 = vmul.f32 %v2824_v32, %v3730_v58  ;;  %v1757_v30 = vadd.f32 %v1756_v14, %v1755_v20  ;;  %v1770_v44 = vadd.f32 %v1769_v50, %v1768_v59  ;;  %v2833_v12 = vunpack.c.h.bf16 %v3264_v53  ;;  %v3297_v58 = vld [vmem:[%s5712_s1 + $0x140] sm:$0xff]   ;;  %v5969_v53 = vld [vmem:[#allocation13_spill] sm:$0xff] }
  0x47   :  { %v740_v45 = vmul.f32 %v2825_v5, %v3745_v7  ;;  %v197_v54 = vadd.f32 %v196_v15, %v182_v2  ;;  %v210_v33 = vadd.f32 %v209_v56, %v190_v22  ;;  %v753_v46 = vadd.f32 %v738_v39, %v737_v31  ;;  %v5968_v2 = vld [vmem:[#allocation12_spill] sm:$0xff] }
  0x48   :  { %v766_v18 = vadd.f32 %v746_v27, %v745_v21  ;;  %v1771_v52 = vadd.f32 %v1757_v30, %v1215_v55  ;;  %v1772_v35 = vadd.f32 %v1770_v44, %v1216_v23  ;;  %v741_v48 = vmul.f32 %v2828_v62, %v5966_v34  ;;  %v5970_v55 = vld [vmem:[#allocation14_spill] sm:$0xff]  ;;  %v3298_v21 = vld [vmem:[%s5712_s1 + $0x148] sm:$0xff]   ;;  %v5971_v27 = vld [vmem:[#allocation15_spill] sm:$0xff] }
  0x49   :  { %v748_v38 = vmul.f32 %v2825_v5, %v5967_v41  ;;  %v198_v60 = vrot.slane %v197_v54, 4  ;;  %v211_v49 = vrot.slane %v210_v33, 4  ;;  %v754_v28 = vadd.f32 %v753_v46, %v739_v43  ;;  %v5972_v50 = vld [vmem:[#allocation16_spill] sm:$0xff] }
  0x4a   :  { %v767_v57 = vadd.f32 %v766_v18, %v747_v37  ;;  %v2256_v32 = vsel %vm2255_vm0, %v1772_v35, %v1771_v52  ;;  %v742_v22 = vmul.f32 %v2829_v3, %v5968_v2  ;;  %v743_v20 = vmul.f32 %v2832_v8, %v5969_v53  ;;  %v5974_v18 = vld [vmem:[#allocation18_spill] sm:$0xff]  ;;  %v5977_v53 = vld [vmem:[#allocation21_spill] sm:$0xff] }
  0x4b   :  { %v749_v23 = vmul.f32 %v2828_v62, %v5970_v55  ;;  %v2259_v59 = vsel %vm2258_vm1, %v2256_v32, 0.0  ;;  %v199_v31 = vadd.f32 %v198_v60, %v197_v54  ;;  %v212_v5 = vadd.f32 %v211_v49, %v210_v33  ;;  %v3299_v62 = vld [vmem:[%s5712_s1 + $0x150] sm:$0xff]  }
  0x4c   :  { %v755_v39 = vadd.f32 %v754_v28, %v740_v45  ;;  %2260 = vadd.xlane.f32.xlu0 %v2259_v59  ;;  %v744_v14 = vmul.f32 %v2833_v12, %v5971_v27  ;;  %v750_v15 = vmul.f32 %v2829_v3, %v5972_v50  ;;  %v768_v56 = vadd.f32 %v767_v57, %v748_v38  ;;  %v3300_v45 = vld [vmem:[%s5712_s1 + $0x158] sm:$0xff]   ;;  %v5973_v33 = vld [vmem:[#allocation17_spill] sm:$0xff]  ;;  %v5976_v27 = vld [vmem:[#allocation20_spill] sm:$0xff] }
  0x4d   :  { %v2964_v43 = vunpack.c.l.bf16 %v3297_v58  ;;  %v200_v37 = vrot.slane %v199_v31, 2  ;;  %v213_v30 = vrot.slane %v212_v5, 2  ;;  %v2965_v54 = vunpack.c.h.bf16 %v3297_v58  ;;  %v5975_v58 = vld [vmem:[#allocation19_spill] sm:$0xff] }
  0x4e   :  { %v756_v44 = vadd.f32 %v755_v39, %v741_v48  ;;  %v751_v46 = vmul.f32 %v2832_v8, %v5973_v33  ;;  %v752_v52 = vmul.f32 %v2833_v12, %v5974_v18  ;;  %v769_v35 = vadd.f32 %v768_v56, %v749_v23  ;;  %v5978_v23 = vld [vmem:[#allocation22_spill] sm:$0xff] }
  0x4f   :  { %v2968_v3 = vunpack.c.l.bf16 %v3298_v21  ;;  %v201_v57 = vadd.f32 %v200_v37, %v199_v31  ;;  %v2969_v60 = vunpack.c.h.bf16 %v3298_v21  ;;  %v2972_v49 = vunpack.c.l.bf16 %v3299_v62  ;;  %v5980_v37 = vld [vmem:[#allocation25_spill] sm:$0xff] }
  0x50   :  { %v757_v38 = vadd.f32 %v756_v44, %v742_v22  ;;  %v214_v28 = vadd.f32 %v213_v30, %v212_v5  ;;  %v770_v32 = vadd.f32 %v769_v35, %v750_v15  ;;  %v2973_v2 = vunpack.c.h.bf16 %v3299_v62  ;;  %v5979_v22 = vld [vmem:[#allocation23_spill] sm:$0xff]  ;;  %v5981_v15 = vld [vmem:[#allocation24_spill] sm:$0xff]  ;;  %v5983_v35 = vld [vmem:[#allocation29_spill] sm:$0xff] }
  0x51   :  { %v2976_v59 = vunpack.c.l.bf16 %v3300_v45  ;;  %v1293_v39 = vmul.f32 %v2964_v43, %v5975_v58  ;;  %v1294_v50 = vmul.f32 %v2965_v54, %v5976_v27  ;;  %v1301_v55 = vmul.f32 %v2964_v43, %v5977_v53  ;;  %v5982_v44 = vld [vmem:[#allocation27_spill] sm:$0xff]  ;;  %v5984_v43 = vld [vmem:[#allocation26_spill] sm:$0xff]  ;;  %v5992_v58 = vld [vmem:[#allocation36_spill] sm:$0xff] }
  0x52   :  { %v758_v48 = vadd.f32 %v757_v38, %v743_v20  ;;  %v202_v8 = vrot.slane %v201_v57, 1  ;;  %v771_v33 = vadd.f32 %v770_v32, %v751_v46  ;;  %v2977_v12 = vunpack.c.h.bf16 %v3300_v45 }
  0x53   :  { %v1302_v56 = vmul.f32 %v2965_v54, %v5978_v23  ;;  %v1295_v21 = vmul.f32 %v2968_v3, %v5979_v22  ;;  %v1296_v5 = vmul.f32 %v2969_v60, %v5980_v37  ;;  %v1303_v62 = vmul.f32 %v2968_v3, %v5981_v15  ;;  %v5986_v15 = vld [vmem:[#allocation33_spill] sm:$0xff] }
  0x54   :  { %v759_v31 = vadd.f32 %v758_v48, %v744_v14  ;;  %v215_v30 = vrot.slane %v214_v28, 1  ;;  %v772_v20 = vadd.f32 %v771_v33, %v752_v52  ;;  %v1297_v18 = vmul.f32 %v2972_v49, %v5982_v44  ;;  %v3333_v14 = vld [vmem:[%s5712_s1 + $0x160] sm:$0xff]  }
  0x55   :  { %v1298_v38 = vmul.f32 %v2973_v2, %v5983_v35  ;;  %v1304_v53 = vmul.f32 %v2969_v60, %v5984_v43  ;;  %v1309_v46 = vadd.f32 %v1294_v50, %v1293_v39  ;;  %v1322_v45 = vadd.f32 %v1302_v56, %v1301_v55  ;;  %v5985_v48 = vld [vmem:[#allocation31_spill] sm:$0xff]  ;;  %v5987_v44 = vld [vmem:[#allocation28_spill] sm:$0xff]  ;;  %v5988_v39 = vld [vmem:[#allocation30_spill] sm:$0xff] }
  0x56   :  { %v760_v27 = vrot.slane %v759_v31, 4  ;;  %v4117_v54 = vadd.f32 %v202_v8, %v201_v57  ;;  %v773_v32 = vrot.slane %v772_v20, 4  ;;  %v1299_v3 = vmul.f32 %v2976_v59, %v5985_v48  ;;  %v3334_v55 = vld [vmem:[%s5712_s1 + $0x168] sm:$0xff]  }
  0x57   :  { %v1300_v52 = vmul.f32 %v2977_v12, %v5986_v15  ;;  %v1305_v37 = vmul.f32 %v2972_v49, %v5987_v44  ;;  %v1310_v35 = vadd.f32 %v1309_v46, %v1295_v21  ;;  %v1323_v22 = vadd.f32 %v1322_v45, %v1303_v62  ;;  %v3336_v49 = vld [vmem:[%s5712_s1 + $0x178] sm:$0xff]   ;;  %v5989_v21 = vld [vmem:[#allocation32_spill] sm:$0xff] }
  0x58   :  { %v761_v33 = vadd.f32 %v760_v27, %v759_v31  ;;  %v4125_v50 = vadd.f32 %v215_v30, %v214_v28  ;;  %v774_v60 = vadd.f32 %v773_v32, %v772_v20  ;;  %v1306_v57 = vmul.f32 %v2973_v2, %v5988_v39  ;;  %v3335_v27 = vld [vmem:[%s5712_s1 + $0x170] sm:$0xff]   ;;  %v5991_v44 = vld [vmem:[#allocation35_spill] sm:$0xff] }
  0x59   :  { %v3108_v8 = vunpack.c.l.bf16 %v3333_v14  ;;  %v1311_v43 = vadd.f32 %v1310_v35, %v1296_v5  ;;  %v1324_v48 = vadd.f32 %v1323_v22, %v1304_v53  ;;  %v3109_v23 = vunpack.c.h.bf16 %v3333_v14  ;;  %v5990_v62 = vld [vmem:[#allocation34_spill] sm:$0xff] }
  0x5a   :  { %v762_v56 = vrot.slane %v761_v33, 2  ;;  %v775_v31 = vrot.slane %v774_v60, 2  ;;  %v1307_v28 = vmul.f32 %v2976_v59, %v5989_v21  ;;  %v1308_v30 = vmul.f32 %v2977_v12, %v5990_v62  ;;  %v5993_v59 = vld [vmem:[#allocation37_spill] sm:$0xff]  ;;  %v5994_v12 = vld [vmem:[#allocation38_spill] sm:$0xff] }
  0x5b   :  { %v3112_v20 = vunpack.c.l.bf16 %v3334_v55  ;;  %v1312_v46 = vadd.f32 %v1311_v43, %v1297_v18  ;;  %v1325_v45 = vadd.f32 %v1324_v48, %v1305_v37  ;;  %v3113_v5 = vunpack.c.h.bf16 %v3334_v55  ;;  %v5995_v43 = vld [vmem:[#allocation39_spill] sm:$0xff]  ;;  %v5996_v55 = vld [vmem:[#allocation40_spill] sm:$0xff] }
  0x5c   :  { %v763_v2 = vadd.f32 %v762_v56, %v761_v33  ;;  %v776_v53 = vadd.f32 %v775_v31, %v774_v60  ;;  %v3116_v22 = vunpack.c.l.bf16 %v3335_v27  ;;  %v3117_v35 = vunpack.c.h.bf16 %v3335_v27  ;;  %v5997_v56 = vld [vmem:[#allocation42_spill] sm:$0xff]  ;;  %v5999_v31 = vld [vmem:[#allocation41_spill] sm:$0xff] }
  0x5d   :  { %v3120_v14 = vunpack.c.l.bf16 %v3336_v49  ;;  %v1313_v32 = vadd.f32 %v1312_v46, %v1298_v38  ;;  %v1326_v39 = vadd.f32 %v1325_v45, %v1306_v57  ;;  %v1849_v15 = vmul.f32 %v3108_v8, %v5991_v44  ;;  %v5998_v57 = vld [vmem:[#allocation43_spill] sm:$0xff] }
  0x5e   :  { %v1850_v34 = vmul.f32 %v3109_v23, %v5992_v58  ;;  %v764_v41 = vrot.slane %v763_v2, 1  ;;  %v3121_v7 = vunpack.c.h.bf16 %v3336_v49  ;;  %v1857_v21 = vmul.f32 %v3108_v8, %v5993_v59 }
  0x5f   :  { %v1858_v62 = vmul.f32 %v3109_v23, %v5994_v12  ;;  %v777_v33 = vrot.slane %v776_v53, 1  ;;  %v1314_v18 = vadd.f32 %v1313_v32, %v1299_v3  ;;  %v1327_v37 = vadd.f32 %v1326_v39, %v1307_v28  ;;  %v3233_v28 = vld [vmem:[%s5712_s1 + $0x200] sm:$0xff]  }
  0x60   :  { %v1851_v48 = vmul.f32 %v3112_v20, %v5995_v43  ;;  %v1852_v60 = vmul.f32 %v3113_v5, %v5996_v55  ;;  %v1853_v38 = vmul.f32 %v3116_v22, %v5997_v56  ;;  %v1854_v27 = vmul.f32 %v3117_v35, %v5998_v57 }
  0x61   :  { %v1859_v46 = vmul.f32 %v3112_v20, %v5999_v31  ;;  %v1315_v45 = vadd.f32 %v1314_v18, %v1300_v52  ;;  %v1328_v58 = vadd.f32 %v1327_v37, %v1308_v30  ;;  %v1855_v49 = vmul.f32 %v3120_v14, %v3993_v42  ;;  %v6000_v20 = vld [vmem:[#allocation44_spill] sm:$0xff] }
  0x62   :  { %v1865_v8 = vadd.f32 %v1850_v34, %v1849_v15  ;;  %v765_v59 = vadd.f32 %v764_v41, %v763_v2  ;;  %v1856_v23 = vmul.f32 %v3121_v7, %v3998_v40  ;;  %v1860_v3 = vmul.f32 %v3113_v5, %v3988_v13 }
  0x63   :  { %v1878_v39 = vadd.f32 %v1858_v62, %v1857_v21  ;;  %v778_v32 = vadd.f32 %v777_v33, %v776_v53  ;;  %v1316_v56 = vrot.slane %v1315_v45, 4  ;;  %v1329_v57 = vrot.slane %v1328_v58, 4  ;;  %v3234_v21 = vld [vmem:[%s5712_s1 + $0x208] sm:$0xff]   ;;  %v3235_v62 = vld [vmem:[%s5712_s1 + $0x210] sm:$0xff]  }
  0x64   :  { %v1866_v55 = vadd.f32 %v1865_v8, %v1851_v48  ;;  %v1861_v52 = vmul.f32 %v3116_v22, %v4006_v6  ;;  %v1862_v30 = vmul.f32 %v3117_v35, %v4013_v63  ;;  %v1863_v34 = vmul.f32 %v3120_v14, %v6000_v20  ;;  %v6001_v22 = vld [vmem:[#allocation45_spill] sm:$0xff] }
  0x65   :  { %v1879_v41 = vadd.f32 %v1878_v39, %v1859_v46  ;;  %v1317_v15 = vadd.f32 %v1316_v56, %v1315_v45  ;;  %v1330_v2 = vadd.f32 %v1329_v57, %v1328_v58  ;;  %v2708_v5 = vunpack.c.l.bf16 %v3233_v28  ;;  %v3236_v45 = vld [vmem:[%s5712_s1 + $0x218] sm:$0xff]  }
  0x66   :  { %v1867_v18 = vadd.f32 %v1866_v55, %v1852_v60  ;;  %v779_v53 = vadd.f32 %v765_v59, %v4117_v54  ;;  %v1864_v33 = vmul.f32 %v3121_v7, %v6001_v22  ;;  %v2709_v37 = vunpack.c.h.bf16 %v3233_v28 }
  0x67   :  { %v1880_v35 = vadd.f32 %v1879_v41, %v1860_v3  ;;  %v780_v14 = vadd.f32 %v778_v32, %v4125_v50  ;;  %v1318_v48 = vrot.slane %v1317_v15, 2  ;;  %v1331_v58 = vrot.slane %v1330_v2, 2 }
  0x68   :  { %v1868_v55 = vadd.f32 %v1867_v18, %v1853_v38  ;;  %v2712_v56 = vunpack.c.l.bf16 %v3234_v21  ;;  %v2713_v57 = vunpack.c.h.bf16 %v3234_v21  ;;  %v2716_v46 = vunpack.c.l.bf16 %v3235_v62 }
  0x69   :  { %v1881_v60 = vadd.f32 %v1880_v35, %v1861_v52  ;;  %v1319_v8 = vadd.f32 %v1318_v48, %v1317_v15  ;;  %v1332_v39 = vadd.f32 %v1331_v58, %v1330_v2  ;;  %v297_v7 = vmul.f32 %v2708_v5, %v3591_v0 }
  0x6a   :  { %v1869_v54 = vadd.f32 %v1868_v55, %v1854_v27  ;;  %v298_v3 = vmul.f32 %v2709_v37, %v3596_v1  ;;  %v305_v50 = vmul.f32 %v2708_v5, %v3615_v9  ;;  %v306_v38 = vmul.f32 %v2709_v37, %v3620_v10 }
  0x6b   :  { %v1882_v59 = vadd.f32 %v1881_v60, %v1862_v30  ;;  %v2717_v32 = vunpack.c.h.bf16 %v3235_v62  ;;  %v2720_v52 = vunpack.c.l.bf16 %v3236_v45  ;;  %v2721_v41 = vunpack.c.h.bf16 %v3236_v45 }
  0x6c   :  { %v1870_v28 = vadd.f32 %v1869_v54, %v1855_v49  ;;  %v1320_v18 = vrot.slane %v1319_v8, 1  ;;  %v299_v35 = vmul.f32 %v2712_v56, %v3607_v4  ;;  %v307_v15 = vmul.f32 %v2712_v56, %v3625_v11 }
  0x6d   :  { %v1883_v21 = vadd.f32 %v1882_v59, %v1863_v34  ;;  %v1333_v27 = vrot.slane %v1332_v39, 1  ;;  %v300_v0 = vmul.f32 %v2713_v57, %v3637_v16  ;;  %v301_v1 = vmul.f32 %v2716_v46, %v3647_v19  ;;  %v3269_v16 = vld [vmem:[%s5712_s1 + $0x220] sm:$0xff]  }
  0x6e   :  { %v1871_v2 = vadd.f32 %v1870_v28, %v1856_v23  ;;  %v308_v9 = vmul.f32 %v2713_v57, %v3642_v17  ;;  %v313_v10 = vadd.f32 %v298_v3, %v297_v7  ;;  %v326_v49 = vadd.f32 %v306_v38, %v305_v50 }
  0x6f   :  { %v1884_v30 = vadd.f32 %v1883_v21, %v1864_v33  ;;  %v302_v62 = vmul.f32 %v2717_v32, %v3656_v24  ;;  %v303_v34 = vmul.f32 %v2720_v52, %v3661_v25  ;;  %v309_v4 = vmul.f32 %v2716_v46, %v3666_v26  ;;  %v3270_v26 = vld [vmem:[%s5712_s1 + $0x228] sm:$0xff]  }
  0x70   :  { %v1872_v5 = vrot.slane %v1871_v2, 4  ;;  %v1321_v37 = vadd.f32 %v1320_v18, %v1319_v8  ;;  %v314_v48 = vadd.f32 %v313_v10, %v299_v35  ;;  %v327_v23 = vadd.f32 %v326_v49, %v307_v15  ;;  %v6002_v10 = vld [vmem:[#allocation8_spill] sm:$0xff] }
  0x71   :  { %v1885_v11 = vrot.slane %v1884_v30, 4  ;;  %v1334_v19 = vadd.f32 %v1333_v27, %v1332_v39  ;;  %v304_v17 = vmul.f32 %v2721_v41, %v3706_v47  ;;  %v310_v58 = vmul.f32 %v2717_v32, %v3672_v29  ;;  %v3271_v47 = vld [vmem:[%s5712_s1 + $0x230] sm:$0xff]  }
  0x72   :  { %v1873_v33 = vadd.f32 %v1872_v5, %v1871_v2  ;;  %v311_v24 = vmul.f32 %v2720_v52, %v3685_v36  ;;  %v315_v25 = vadd.f32 %v314_v48, %v300_v0  ;;  %v328_v60 = vadd.f32 %v327_v23, %v308_v9  ;;  %v4210_v2 = vld [vmem:[%s5711_s0 + $0x148] sm:$0xff]  ;;  %v6004_v23 = vld [vmem:[#allocation10_spill] sm:$0xff] }
  0x73   :  { %v1886_v55 = vadd.f32 %v1885_v11, %v1884_v30  ;;  %v312_v57 = vmul.f32 %v2721_v41, %v3738_v61  ;;  %v2852_v46 = vunpack.c.l.bf16 %v3269_v16  ;;  %v2853_v45 = vunpack.c.h.bf16 %v3269_v16  ;;  %v3272_v61 = vld [vmem:[%s5712_s1 + $0x238] sm:$0xff]   ;;  %v6003_v11 = vld [vmem:[#allocation9_spill] sm:$0xff] }
  0x74   :  { %v1874_v56 = vrot.slane %v1873_v33, 2  ;;  %v1335_v8 = vadd.f32 %v1321_v37, %v779_v53  ;;  %v316_v39 = vadd.f32 %v315_v25, %v301_v1  ;;  %v329_v54 = vadd.f32 %v328_v60, %v309_v4  ;;  %v4197_v53 = vld [vmem:[%s5711_s0 + $0x40] sm:$0xff] }
  0x75   :  { %v1887_v29 = vrot.slane %v1886_v55, 2  ;;  %v1336_v36 = vadd.f32 %v1334_v19, %v780_v14  ;;  %v2856_v59 = vunpack.c.l.bf16 %v3270_v26  ;;  %v2857_v3 = vunpack.c.h.bf16 %v3270_v26  ;;  %v4203_v14 = vld [vmem:[%s5711_s0 + $0x48] sm:$0xff]  ;;  %v6006_v26 = vld [vmem:[#allocation14_spill] sm:$0xff] }
  0x76   :  { %v1875_v7 = vadd.f32 %v1874_v56, %v1873_v33  ;;  %v317_v38 = vadd.f32 %v316_v39, %v302_v62  ;;  %v330_v28 = vadd.f32 %v329_v54, %v310_v58  ;;  %v2860_v32 = vunpack.c.l.bf16 %v3271_v47  ;;  %v4232_v54 = vld [vmem:[%s5711_s0 + $0x68] sm:$0xff] }
  0x77   :  { %v1888_v50 = vadd.f32 %v1887_v29, %v1886_v55  ;;  %v857_v41 = vmul.f32 %v4197_v53, %v2852_v46  ;;  %v858_v18 = vmul.f32 %v4203_v14, %v2853_v45  ;;  %v865_v21 = vmul.f32 %v2852_v46, %v3714_v51  ;;  %v4217_v51 = vld [vmem:[%s5711_s0 + $0x150] sm:$0xff]  ;;  %v3305_v29 = vld [vmem:[%s5712_s1 + $0x240] sm:$0xff]  }
  0x78   :  { %v1876_v52 = vrot.slane %v1875_v7, 1  ;;  %v318_v15 = vadd.f32 %v317_v38, %v303_v34  ;;  %v331_v27 = vadd.f32 %v330_v28, %v311_v24  ;;  %v866_v0 = vmul.f32 %v4210_v2, %v2853_v45  ;;  %v6008_v28 = vld [vmem:[#allocation16_spill] sm:$0xff] }
  0x79   :  { %v1889_v35 = vrot.slane %v1888_v50, 1  ;;  %v2861_v30 = vunpack.c.h.bf16 %v3271_v47  ;;  %v2864_v9 = vunpack.c.l.bf16 %v3272_v61  ;;  %v859_v49 = vmul.f32 %v2856_v59, %v6002_v10 }
  0x7a   :  { %v1877_v1 = vadd.f32 %v1876_v52, %v1875_v7  ;;  %v319_v62 = vadd.f32 %v318_v15, %v304_v17  ;;  %v332_v4 = vadd.f32 %v331_v27, %v312_v57  ;;  %v867_v34 = vmul.f32 %v4217_v51, %v2856_v59  ;;  %v6005_v17 = vld [vmem:[#allocation11_spill] sm:$0xff]  ;;  %v6007_v7 = vld [vmem:[#allocation13_spill] sm:$0xff] }
  0x7b   :  { %v1890_v5 = vadd.f32 %v1889_v35, %v1888_v50  ;;  %v860_v48 = vmul.f32 %v2857_v3, %v6003_v11  ;;  %v868_v16 = vmul.f32 %v2857_v3, %v6004_v23  ;;  %v873_v19 = vadd.f32 %v858_v18, %v857_v41  ;;  %v3306_v52 = vld [vmem:[%s5712_s1 + $0x248] sm:$0xff]   ;;  %v3307_v41 = vld [vmem:[%s5712_s1 + $0x250] sm:$0xff]   ;;  %v6009_v18 = vld [vmem:[#allocation15_spill] sm:$0xff] }
  0x7c   :  { %v1891_v37 = vadd.f32 %v1877_v1, %v1335_v8  ;;  %v320_v58 = vrot.slane %v319_v62, 4  ;;  %v333_v55 = vrot.slane %v332_v4, 4  ;;  %v886_v24 = vadd.f32 %v866_v0, %v865_v21  ;;  %v3308_v0 = vld [vmem:[%s5712_s1 + $0x258] sm:$0xff]  }
  0x7d   :  { %v1892_v33 = vadd.f32 %v1890_v5, %v1336_v36  ;;  %v2865_v25 = vunpack.c.h.bf16 %v3272_v61  ;;  %v861_v60 = vmul.f32 %v2860_v32, %v6005_v17  ;;  %v869_v56 = vmul.f32 %v2860_v32, %v6006_v26  ;;  %v6014_v17 = vld [vmem:[#allocation21_spill] sm:$0xff] }
  0x7e   :  { %v874_v57 = vadd.f32 %v873_v19, %v859_v49  ;;  %v321_v45 = vadd.f32 %v320_v58, %v319_v62  ;;  %v334_v47 = vadd.f32 %v333_v55, %v332_v4  ;;  %v887_v8 = vadd.f32 %v886_v24, %v867_v34  ;;  %v4256_v49 = vld [vmem:[%s5711_s0 + $0x178] sm:$0xff] }
  0x7f   :  { %v2271_v46 = vsel %vm2255_vm0, %v1892_v33, %v1891_v37  ;;  %v862_v36 = vmul.f32 %v4232_v54, %v2861_v30  ;;  %v863_v59 = vmul.f32 %v2864_v9, %v6007_v7  ;;  %v870_v32 = vmul.f32 %v2861_v30, %v6008_v28  ;;  %v4250_v30 = vld [vmem:[%s5711_s0 + $0x170] sm:$0xff]  ;;  %6011 = vst [vmem:[#allocation17_spill] sm:$0xff] %v4256_v49  ;;  %v6012_v58 = vld [vmem:[#allocation19_spill] sm:$0xff] }
  0x80   :  { %v2273_v39 = vsel %vm2258_vm1, %v2271_v46, 0.0  ;;  %v875_v3 = vadd.f32 %v874_v57, %v860_v48  ;;  %v322_v50 = vrot.slane %v321_v45, 2  ;;  %v335_v38 = vrot.slane %v334_v47, 2  ;;  %6010 = vst [vmem:[#allocation12_spill] sm:$0xff] %v4250_v30  ;;  %v6020_v28 = vld [vmem:[#allocation29_spill] sm:$0xff] }
  0x81   :  { %2274 = vadd.xlane.f32.xlu1 %v2273_v39  ;;  %v888_v61 = vadd.f32 %v887_v8, %v868_v16  ;;  %v864_v21 = vmul.f32 %v2865_v25, %v6009_v18  ;;  %v2996_v15 = vunpack.c.l.bf16 %v3305_v29  ;;  %v2997_v27 = vunpack.c.h.bf16 %v3305_v29  ;;  %v6016_v8 = vld [vmem:[#allocation23_spill] sm:$0xff]  ;;  %v6017_v39 = vld [vmem:[#allocation25_spill] sm:$0xff] }
  0x82   :  { %v876_v35 = vadd.f32 %v875_v3, %v861_v60  ;;  %v323_v1 = vadd.f32 %v322_v50, %v321_v45  ;;  %v871_v10 = vmul.f32 %v4250_v30, %v2864_v9  ;;  %v872_v5 = vmul.f32 %v4256_v49, %v2865_v25  ;;  %v6013_v9 = vld [vmem:[#allocation20_spill] sm:$0xff]  ;;  %v6015_v25 = vld [vmem:[#allocation22_spill] sm:$0xff]  ;;  %v6019_v50 = vld [vmem:[#allocation27_spill] sm:$0xff] }
  0x83   :  { %v889_v62 = vadd.f32 %v888_v61, %v869_v56  ;;  %v3000_v34 = vunpack.c.l.bf16 %v3306_v52  ;;  %v3001_v37 = vunpack.c.h.bf16 %v3306_v52  ;;  %v3004_v11 = vunpack.c.l.bf16 %v3307_v41  ;;  %v6021_v52 = vld [vmem:[#allocation26_spill] sm:$0xff] }
  0x84   :  { %v877_v4 = vadd.f32 %v876_v35, %v862_v36  ;;  %v336_v48 = vadd.f32 %v335_v38, %v334_v47  ;;  %v3005_v16 = vunpack.c.h.bf16 %v3307_v41  ;;  %v3008_v19 = vunpack.c.l.bf16 %v3308_v0  ;;  %v6018_v36 = vld [vmem:[#allocation24_spill] sm:$0xff] }
  0x85   :  { %v890_v23 = vadd.f32 %v889_v62, %v870_v32  ;;  %v1413_v55 = vmul.f32 %v2996_v15, %v6012_v58  ;;  %v1414_v24 = vmul.f32 %v2997_v27, %v6013_v9  ;;  %v1421_v60 = vmul.f32 %v2996_v15, %v6014_v17  ;;  %v6023_v62 = vld [vmem:[#allocation33_spill] sm:$0xff] }
  0x86   :  { %v878_v33 = vadd.f32 %v877_v4, %v863_v59  ;;  %v324_v26 = vrot.slane %v323_v1, 1  ;;  %v3009_v46 = vunpack.c.h.bf16 %v3308_v0  ;;  %v1422_v56 = vmul.f32 %v2997_v27, %v6015_v25  ;;  %v6022_v0 = vld [vmem:[#allocation31_spill] sm:$0xff] }
  0x87   :  { %v891_v57 = vadd.f32 %v890_v23, %v871_v10  ;;  %v1415_v29 = vmul.f32 %v3000_v34, %v6016_v8  ;;  %v1416_v47 = vmul.f32 %v3001_v37, %v6017_v39  ;;  %v1423_v7 = vmul.f32 %v3000_v34, %v6018_v36  ;;  %v6024_v34 = vld [vmem:[#allocation28_spill] sm:$0xff] }
  0x88   :  { %v879_v45 = vadd.f32 %v878_v33, %v864_v21  ;;  %v337_v3 = vrot.slane %v336_v48, 1  ;;  %v1417_v38 = vmul.f32 %v3004_v11, %v6019_v50  ;;  %v1418_v32 = vmul.f32 %v3005_v16, %v6020_v28  ;;  %v3341_v21 = vld [vmem:[%s5712_s1 + $0x260] sm:$0xff]  }
  0x89   :  { %v892_v59 = vadd.f32 %v891_v57, %v872_v5  ;;  %v1424_v41 = vmul.f32 %v3001_v37, %v6021_v52  ;;  %v1429_v18 = vadd.f32 %v1414_v24, %v1413_v55  ;;  %v1442_v35 = vadd.f32 %v1422_v56, %v1421_v60  ;;  %v3342_v37 = vld [vmem:[%s5712_s1 + $0x268] sm:$0xff]   ;;  %v6025_v24 = vld [vmem:[#allocation30_spill] sm:$0xff] }
  0x8a   :  { %v880_v61 = vrot.slane %v879_v45, 4  ;;  %v4272_v15 = vadd.f32 %v324_v26, %v323_v1  ;;  %v1419_v10 = vmul.f32 %v3008_v19, %v6022_v0  ;;  %v1420_v5 = vmul.f32 %v3009_v46, %v6023_v62  ;;  %v3344_v56 = vld [vmem:[%s5712_s1 + $0x278] sm:$0xff]   ;;  %v6026_v8 = vld [vmem:[#allocation32_spill] sm:$0xff] }
  0x8b   :  { %v893_v27 = vrot.slane %v892_v59, 4  ;;  %v1425_v23 = vmul.f32 %v3004_v11, %v6024_v34  ;;  %v1430_v33 = vadd.f32 %v1429_v18, %v1415_v29  ;;  %v1443_v58 = vadd.f32 %v1442_v35, %v1423_v7  ;;  %v3343_v11 = vld [vmem:[%s5712_s1 + $0x270] sm:$0xff]   ;;  %v6028_v35 = vld [vmem:[#allocation36_spill] sm:$0xff] }
  0x8c   :  { %v881_v4 = vadd.f32 %v880_v61, %v879_v45  ;;  %v4280_v55 = vadd.f32 %v337_v3, %v336_v48  ;;  %v1426_v1 = vmul.f32 %v3005_v16, %v6025_v24  ;;  %v3140_v17 = vunpack.c.l.bf16 %v3341_v21  ;;  %v6027_v29 = vld [vmem:[#allocation34_spill] sm:$0xff] }
  0x8d   :  { %v894_v9 = vadd.f32 %v893_v27, %v892_v59  ;;  %v1431_v26 = vadd.f32 %v1430_v33, %v1416_v47  ;;  %v1444_v57 = vadd.f32 %v1443_v58, %v1424_v41  ;;  %v3141_v25 = vunpack.c.h.bf16 %v3341_v21  ;;  %v6030_v33 = vld [vmem:[#allocation40_spill] sm:$0xff] }
  0x8e   :  { %v882_v60 = vrot.slane %v881_v4, 2  ;;  %v1427_v48 = vmul.f32 %v3008_v19, %v6026_v8  ;;  %v1428_v39 = vmul.f32 %v3009_v46, %v6027_v29  ;;  %v3144_v36 = vunpack.c.l.bf16 %v3342_v37  ;;  %v6029_v19 = vld [vmem:[#allocation37_spill] sm:$0xff] }
  0x8f   :  { %v895_v45 = vrot.slane %v894_v9, 2  ;;  %v1432_v7 = vadd.f32 %v1431_v26, %v1417_v38  ;;  %v1445_v3 = vadd.f32 %v1444_v57, %v1425_v23  ;;  %v3145_v47 = vunpack.c.h.bf16 %v3342_v37  ;;  %v6031_v37 = vld [vmem:[#allocation42_spill] sm:$0xff] }
  0x90   :  { %v883_v16 = vadd.f32 %v882_v60, %v881_v4  ;;  %v3148_v50 = vunpack.c.l.bf16 %v3343_v11  ;;  %v3149_v28 = vunpack.c.h.bf16 %v3343_v11  ;;  %v3152_v61 = vunpack.c.l.bf16 %v3344_v56 }
  0x91   :  { %v896_v59 = vadd.f32 %v895_v45, %v894_v9  ;;  %v1433_v52 = vadd.f32 %v1432_v7, %v1418_v32  ;;  %v1446_v41 = vadd.f32 %v1445_v3, %v1426_v1  ;;  %v1969_v18 = vmul.f32 %v3140_v17, %v5991_v44  ;;  %v6032_v9 = vld [vmem:[#allocation43_spill] sm:$0xff] }
  0x92   :  { %v1970_v21 = vmul.f32 %v3141_v25, %v6028_v35  ;;  %v884_v27 = vrot.slane %v883_v16, 1  ;;  %v3153_v0 = vunpack.c.h.bf16 %v3344_v56  ;;  %v1977_v62 = vmul.f32 %v3140_v17, %v6029_v19 }
  0x93   :  { %v1978_v46 = vmul.f32 %v3141_v25, %v5994_v12  ;;  %v897_v4 = vrot.slane %v896_v59, 1  ;;  %v1434_v38 = vadd.f32 %v1433_v52, %v1419_v10  ;;  %v1447_v34 = vadd.f32 %v1446_v41, %v1427_v48 }
  0x94   :  { %v1971_v23 = vmul.f32 %v3144_v36, %v5995_v43  ;;  %v1972_v58 = vmul.f32 %v3145_v47, %v6030_v33  ;;  %v1973_v32 = vmul.f32 %v3148_v50, %v6031_v37  ;;  %v1974_v24 = vmul.f32 %v3149_v28, %v6032_v9  ;;  %v3221_v43 = vld [vmem:[%s5712_s1 + $0x80] sm:$0xff]   ;;  %v4356_v9 = vld [vmem:[%s5711_s0 + $0x10] sm:$0xff] }
  0x95   :  { %v1979_v44 = vmul.f32 %v3144_v36, %v5999_v31  ;;  %v1435_v1 = vadd.f32 %v1434_v38, %v1420_v5  ;;  %v1448_v60 = vadd.f32 %v1447_v34, %v1428_v39  ;;  %v1975_v26 = vmul.f32 %v3152_v61, %v3993_v42  ;;  %v3222_v36 = vld [vmem:[%s5712_s1 + $0x88] sm:$0xff]  }
  0x96   :  { %v1985_v17 = vadd.f32 %v1970_v21, %v1969_v18  ;;  %v885_v57 = vadd.f32 %v884_v27, %v883_v16  ;;  %v1976_v12 = vmul.f32 %v3153_v0, %v3998_v40  ;;  %v1980_v10 = vmul.f32 %v3145_v47, %v3988_v13  ;;  %v4315_v16 = vld [vmem:[%s5712_s1 + $0x90] sm:$0xff]  }
  0x97   :  { %v1998_v25 = vadd.f32 %v1978_v46, %v1977_v62  ;;  %v898_v11 = vadd.f32 %v897_v4, %v896_v59  ;;  %v1436_v56 = vrot.slane %v1435_v1, 4  ;;  %v1449_v45 = vrot.slane %v1448_v60, 4  ;;  %v4343_v62 = vld [vmem:[%s5711_s0 + $0x100] sm:$0xff]  ;;  %v4349_v4 = vld [vmem:[%s5711_s0 + $0x108] sm:$0xff] }
  0x98   :  { %v1986_v8 = vadd.f32 %v1985_v17, %v1971_v23  ;;  %v1981_v31 = vmul.f32 %v3148_v50, %v4006_v6  ;;  %v1982_v5 = vmul.f32 %v3149_v28, %v4013_v63  ;;  %v1983_v42 = vmul.f32 %v3152_v61, %v6000_v20  ;;  %v4368_v17 = vld [vmem:[%s5711_s0 + $0x18] sm:$0xff] }
  0x99   :  { %v1999_v48 = vadd.f32 %v1998_v25, %v1979_v44  ;;  %v1437_v29 = vadd.f32 %v1436_v56, %v1435_v1  ;;  %v1450_v40 = vadd.f32 %v1449_v45, %v1448_v60  ;;  %v2660_v13 = vunpack.c.l.bf16 %v3221_v43  ;;  %v4362_v44 = vld [vmem:[%s5711_s0 + $0x110] sm:$0xff] }
  0x9a   :  { %v1987_v39 = vadd.f32 %v1986_v8, %v1972_v58  ;;  %v4318_v6 = vadd.f32 %v885_v57, %v4272_v15  ;;  %v1984_v63 = vmul.f32 %v3153_v0, %v6001_v22  ;;  %v2661_v7 = vunpack.c.h.bf16 %v3221_v43  ;;  %v3224_v15 = vld [vmem:[%s5712_s1 + $0x98] sm:$0xff]   ;;  %v4337_v0 = vld [vmem:[%s5711_s0 + $0x8] sm:$0xff] }
  0x9b   :  { %v2000_v20 = vadd.f32 %v1999_v48, %v1980_v10  ;;  %v4322_v3 = vadd.f32 %v898_v11, %v4280_v55  ;;  %v1438_v47 = vrot.slane %v1437_v29, 2  ;;  %v1451_v59 = vrot.slane %v1450_v40, 2  ;;  %v4331_v55 = vld [vmem:[%s5711_s0] sm:$0xff]  ;;  %v4380_v11 = vld [vmem:[%s5711_s0 + $0x118] sm:$0xff] }
  0x9c   :  { %v1988_v50 = vadd.f32 %v1987_v39, %v1973_v32  ;;  %v2664_v61 = vunpack.c.l.bf16 %v3222_v36  ;;  %v2665_v52 = vunpack.c.h.bf16 %v3222_v36  ;;  %v2668_v41 = vunpack.c.l.bf16 %v4315_v16  ;;  %v4374_v10 = vld [vmem:[%s5711_s0 + $0x20] sm:$0xff] }
  0x9d   :  { %v2001_v28 = vadd.f32 %v2000_v20, %v1981_v31  ;;  %v1439_v18 = vadd.f32 %v1438_v47, %v1437_v29  ;;  %v1452_v35 = vadd.f32 %v1451_v59, %v1450_v40  ;;  %v114_v21 = vmul.f32 %v4331_v55, %v2660_v13  ;;  %v4386_v31 = vld [vmem:[%s5711_s0 + $0x28] sm:$0xff]  ;;  %v4398_v29 = vld [vmem:[%s5711_s0 + $0x120] sm:$0xff]  ;;  %v4407_v47 = vld [vmem:[%s5711_s0 + $0x38] sm:$0xff] }
  0x9e   :  { %v1989_v22 = vadd.f32 %v1988_v50, %v1974_v24  ;;  %v115_v19 = vmul.f32 %v4337_v0, %v2661_v7  ;;  %v122_v46 = vmul.f32 %v4343_v62, %v2660_v13  ;;  %v123_v38 = vmul.f32 %v4349_v4, %v2661_v7  ;;  %v4413_v50 = vld [vmem:[%s5711_s0 + $0x128] sm:$0xff] }
  0x9f   :  { %v2002_v27 = vadd.f32 %v2001_v28, %v1982_v5  ;;  %v2669_v23 = vunpack.c.h.bf16 %v4315_v16  ;;  %v2672_v33 = vunpack.c.l.bf16 %v3224_v15  ;;  %v2673_v58 = vunpack.c.h.bf16 %v3224_v15 }
  0xa0   :  { %v1990_v34 = vadd.f32 %v1989_v22, %v1975_v26  ;;  %v1440_v37 = vrot.slane %v1439_v18, 1  ;;  %v116_v24 = vmul.f32 %v4356_v9, %v2664_v61  ;;  %v124_v1 = vmul.f32 %v4362_v44, %v2664_v61 }
  0xa1   :  { %v2003_v32 = vadd.f32 %v2002_v27, %v1983_v42  ;;  %v1453_v60 = vrot.slane %v1452_v35, 1  ;;  %v117_v57 = vmul.f32 %v4368_v17, %v2665_v52  ;;  %v118_v25 = vmul.f32 %v4374_v10, %v2668_v41  ;;  %v4392_v42 = vld [vmem:[%s5711_s0 + $0x30] sm:$0xff] }
  0xa2   :  { %v1991_v26 = vadd.f32 %v1990_v34, %v1976_v12  ;;  %v125_v12 = vmul.f32 %v4380_v11, %v2665_v52  ;;  %v130_v56 = vadd.f32 %v115_v19, %v114_v21  ;;  %v143_v45 = vadd.f32 %v123_v38, %v122_v46  ;;  %v4419_v52 = vld [vmem:[%s5711_s0 + $0x130] sm:$0xff]  ;;  %v4428_v21 = vld [vmem:[%s5711_s0 + $0x138] sm:$0xff] }
  0xa3   :  { %v2004_v43 = vadd.f32 %v2003_v32, %v1984_v63  ;;  %v119_v5 = vmul.f32 %v4386_v31, %v2669_v23  ;;  %v120_v48 = vmul.f32 %v4392_v42, %v2672_v33  ;;  %v126_v40 = vmul.f32 %v4398_v29, %v2668_v41  ;;  %v3257_v63 = vld [vmem:[%s5712_s1 + $0xa0] sm:$0xff]   ;;  %v4434_v38 = vld [vmem:[%s5712_s1 + $0xb0] sm:$0xff]  }
  0xa4   :  { %v1992_v8 = vrot.slane %v1991_v26, 4  ;;  %v1441_v39 = vadd.f32 %v1440_v37, %v1439_v18  ;;  %v131_v36 = vadd.f32 %v130_v56, %v116_v24  ;;  %v144_v16 = vadd.f32 %v143_v45, %v124_v1 }
  0xa5   :  { %v2005_v13 = vrot.slane %v2004_v43, 4  ;;  %v1454_v20 = vadd.f32 %v1453_v60, %v1452_v35  ;;  %v121_v59 = vmul.f32 %v4407_v47, %v2673_v58  ;;  %v127_v28 = vmul.f32 %v4413_v50, %v2669_v23  ;;  %v3258_v35 = vld [vmem:[%s5712_s1 + $0xa8] sm:$0xff]  }
  0xa6   :  { %v1993_v7 = vadd.f32 %v1992_v8, %v1991_v26  ;;  %v128_v41 = vmul.f32 %v4419_v52, %v2672_v33  ;;  %v132_v15 = vadd.f32 %v131_v36, %v117_v57  ;;  %v145_v18 = vadd.f32 %v144_v16, %v125_v12  ;;  %v3260_v12 = vld [vmem:[%s5712_s1 + $0xb8] sm:$0xff]  }
  0xa7   :  { %v2006_v61 = vadd.f32 %v2005_v13, %v2004_v43  ;;  %v129_v27 = vmul.f32 %v4428_v21, %v2673_v58  ;;  %v2804_v19 = vunpack.c.l.bf16 %v3257_v63  ;;  %v2805_v46 = vunpack.c.h.bf16 %v3257_v63  ;;  %v4455_v63 = vld [vmem:[%s5711_s0 + $0x50] sm:$0xff] }
  0xa8   :  { %v1994_v22 = vrot.slane %v1993_v7, 2  ;;  %v1455_v34 = vadd.f32 %v1441_v39, %v4318_v6  ;;  %v133_v33 = vadd.f32 %v132_v15, %v118_v25  ;;  %v146_v37 = vadd.f32 %v145_v18, %v126_v40 }
  0xa9   :  { %v2007_v23 = vrot.slane %v2006_v61, 2  ;;  %v1456_v32 = vadd.f32 %v1454_v20, %v4322_v3  ;;  %v2808_v1 = vunpack.c.l.bf16 %v3258_v35  ;;  %v2809_v60 = vunpack.c.h.bf16 %v3258_v35  ;;  %v4447_v3 = vld [vmem:[%s5711_s0 + $0x140] sm:$0xff]  ;;  %v4468_v35 = vld [vmem:[%s5711_s0 + $0x158] sm:$0xff] }
  0xaa   :  { %v1995_v24 = vadd.f32 %v1994_v22, %v1993_v7  ;;  %v134_v57 = vadd.f32 %v133_v33, %v119_v5  ;;  %v147_v58 = vadd.f32 %v146_v37, %v127_v28  ;;  %v2812_v43 = vunpack.c.l.bf16 %v4434_v38  ;;  %v4480_v37 = vld [vmem:[%s5711_s0 + $0x160] sm:$0xff] }
  0xab   :  { %v2008_v26 = vadd.f32 %v2007_v23, %v2006_v61  ;;  %v677_v6 = vmul.f32 %v4197_v53, %v2804_v19  ;;  %v678_v25 = vmul.f32 %v4203_v14, %v2805_v46  ;;  %v685_v45 = vmul.f32 %v4447_v3, %v2804_v19  ;;  %v4474_v23 = vld [vmem:[%s5711_s0 + $0x60] sm:$0xff] }
  0xac   :  { %v1996_v56 = vrot.slane %v1995_v24, 1  ;;  %v135_v5 = vadd.f32 %v134_v57, %v120_v48  ;;  %v148_v40 = vadd.f32 %v147_v58, %v128_v41  ;;  %v686_v39 = vmul.f32 %v4210_v2, %v2805_v46  ;;  %v4462_v41 = vld [vmem:[%s5711_s0 + $0x58] sm:$0xff]  ;;  %v3293_v58 = vld [vmem:[%s5712_s1 + $0xc0] sm:$0xff]  }
  0xad   :  { %v2009_v8 = vrot.slane %v2008_v26, 1  ;;  %v2813_v36 = vunpack.c.h.bf16 %v4434_v38  ;;  %v2816_v16 = vunpack.c.l.bf16 %v3260_v12  ;;  %v679_v20 = vmul.f32 %v4455_v63, %v2808_v1 }
  0xae   :  { %v1997_v13 = vadd.f32 %v1996_v56, %v1995_v24  ;;  %v136_v28 = vadd.f32 %v135_v5, %v121_v59  ;;  %v149_v61 = vadd.f32 %v148_v40, %v129_v27  ;;  %v687_v15 = vmul.f32 %v4217_v51, %v2808_v1  ;;  %v4498_v5 = vld [vmem:[%s5711_s0 + $0x168] sm:$0xff] }
  0xaf   :  { %v2010_v7 = vadd.f32 %v2009_v8, %v2008_v26  ;;  %v680_v18 = vmul.f32 %v4462_v41, %v2809_v60  ;;  %v688_v22 = vmul.f32 %v4468_v35, %v2809_v60  ;;  %v693_v19 = vadd.f32 %v678_v25, %v677_v6  ;;  %v4492_v6 = vld [vmem:[%s5711_s0 + $0x70] sm:$0xff]  ;;  %6034 = vst [vmem:[#allocation35_spill] sm:$0xff] %v4498_v5 }
  0xb0   :  { %v2011_v48 = vadd.f32 %v1997_v13, %v1455_v34  ;;  %v137_v27 = vrot.slane %v136_v28, 4  ;;  %v150_v46 = vrot.slane %v149_v61, 4  ;;  %v706_v38 = vadd.f32 %v686_v39, %v685_v45  ;;  %6033 = vst [vmem:[#allocation18_spill] sm:$0xff] %v4492_v6  ;;  %v3294_v13 = vld [vmem:[%s5712_s1 + $0xc8] sm:$0xff]  }
  0xb1   :  { %v2012_v59 = vadd.f32 %v2010_v7, %v1456_v32  ;;  %v2817_v34 = vunpack.c.h.bf16 %v3260_v12  ;;  %v681_v33 = vmul.f32 %v4474_v23, %v2812_v43  ;;  %v689_v24 = vmul.f32 %v4480_v37, %v2812_v43  ;;  %v4512_v7 = vld [vmem:[%s5711_s0 + $0x78] sm:$0xff] }
  0xb2   :  { %v694_v1 = vadd.f32 %v693_v19, %v679_v20  ;;  %v138_v60 = vadd.f32 %v137_v27, %v136_v28  ;;  %v151_v26 = vadd.f32 %v150_v46, %v149_v61  ;;  %v707_v57 = vadd.f32 %v706_v38, %v687_v15  ;;  %v4507_v20 = vld [vmem:[%s5712_s1 + $0xd0] sm:$0xff]   ;;  %6035 = vst [vmem:[#allocation38_spill] sm:$0xff] %v4512_v7 }
  0xb3   :  { %v2285_v32 = vsel %vm2255_vm0, %v2012_v59, %v2011_v48  ;;  %v682_v56 = vmul.f32 %v4232_v54, %v2813_v36  ;;  %v683_v43 = vmul.f32 %v4492_v6, %v2816_v16  ;;  %v690_v40 = vmul.f32 %v4498_v5, %v2813_v36  ;;  %v4518_v48 = vld [vmem:[%s5712_s1 + $0xd8] sm:$0xff]  }
  0xb4   :  { %v2287_v12 = vsel %vm2258_vm1, %v2285_v32, 0.0  ;;  %v695_v25 = vadd.f32 %v694_v1, %v680_v18  ;;  %v139_v45 = vrot.slane %v138_v60, 2  ;;  %v152_v8 = vrot.slane %v151_v26, 2 }
  0xb5   :  { %2288 = vadd.xlane.f32.xlu2 %v2287_v12  ;;  %v708_v39 = vadd.f32 %v707_v57, %v688_v22  ;;  %v684_v28 = vmul.f32 %v4512_v7, %v2817_v34  ;;  %v2948_v15 = vunpack.c.l.bf16 %v3293_v58  ;;  %v2949_v36 = vunpack.c.h.bf16 %v3293_v58 }
  0xb6   :  { %v696_v61 = vadd.f32 %v695_v25, %v681_v33  ;;  %v140_v18 = vadd.f32 %v139_v45, %v138_v60  ;;  %v691_v22 = vmul.f32 %v4250_v30, %v2816_v16  ;;  %v692_v19 = vmul.f32 %v4256_v49, %v2817_v34  ;;  %v4528_v60 = vld [vmem:[%s5711_s0 + $0x80] sm:$0xff]  ;;  %v4534_v34 = vld [vmem:[%s5711_s0 + $0x88] sm:$0xff] }
  0xb7   :  { %v709_v59 = vadd.f32 %v708_v39, %v689_v24  ;;  %v2952_v46 = vunpack.c.l.bf16 %v3294_v13  ;;  %v2953_v38 = vunpack.c.h.bf16 %v3294_v13  ;;  %v2956_v1 = vunpack.c.l.bf16 %v4507_v20  ;;  %6036 = vst [vmem:[#allocation39_spill] sm:$0xff] %v4528_v60  ;;  %v4553_v13 = vld [vmem:[%s5711_s0 + $0x90] sm:$0xff] }
  0xb8   :  { %v697_v27 = vadd.f32 %v696_v61, %v682_v56  ;;  %v153_v32 = vadd.f32 %v152_v8, %v151_v26  ;;  %v2957_v57 = vunpack.c.h.bf16 %v4507_v20  ;;  %v2960_v58 = vunpack.c.l.bf16 %v4518_v48  ;;  %6037 = vst [vmem:[#allocation41_spill] sm:$0xff] %v4534_v34  ;;  %v4540_v26 = vld [vmem:[%s5711_s0 + $0x180] sm:$0xff]  ;;  %v4547_v8 = vld [vmem:[%s5711_s0 + $0x188] sm:$0xff]  ;;  %v4559_v61 = vld [vmem:[%s5711_s0 + $0x98] sm:$0xff] }
  0xb9   :  { %v710_v33 = vadd.f32 %v709_v59, %v690_v40  ;;  %v1233_v16 = vmul.f32 %v4528_v60, %v2948_v15  ;;  %v1234_v24 = vmul.f32 %v4534_v34, %v2949_v36  ;;  %6038 = vst [vmem:[#allocation44_spill] sm:$0xff] %v4540_v26  ;;  %v1241_v56 = vmul.f32 %v4540_v26, %v2948_v15  ;;  %v4571_v59 = vld [vmem:[%s5711_s0 + $0xa0] sm:$0xff] }
  0xba   :  { %v698_v12 = vadd.f32 %v697_v27, %v683_v43  ;;  %v141_v43 = vrot.slane %v140_v18, 1  ;;  %v2961_v45 = vunpack.c.h.bf16 %v4518_v48  ;;  %6039 = vst [vmem:[#allocation45_spill] sm:$0xff] %v4547_v8  ;;  %v1242_v40 = vmul.f32 %v4547_v8, %v2949_v36  ;;  %v4565_v48 = vld [vmem:[%s5711_s0 + $0x190] sm:$0xff] }
  0xbb   :  { %v711_v25 = vadd.f32 %v710_v33, %v691_v22  ;;  %6040 = vst [vmem:[#allocation8_spill] sm:$0xff] %v4553_v13  ;;  %v1235_v20 = vmul.f32 %v4553_v13, %v2952_v46  ;;  %v1236_v15 = vmul.f32 %v4559_v61, %v2953_v38  ;;  %v154_v36 = vrot.slane %v153_v32, 1  ;;  %v4577_v33 = vld [vmem:[%s5711_s0 + $0xa8] sm:$0xff] }
  0xbc   :  { %v699_v39 = vadd.f32 %v698_v12, %v684_v28  ;;  %6041 = vst [vmem:[#allocation9_spill] sm:$0xff] %v4559_v61  ;;  %v1243_v28 = vmul.f32 %v4565_v48, %v2952_v46  ;;  %v1237_v27 = vmul.f32 %v4571_v59, %v2956_v1  ;;  %v1238_v12 = vmul.f32 %v4577_v33, %v2957_v57  ;;  %v4583_v46 = vld [vmem:[%s5711_s0 + $0x198] sm:$0xff] }
  0xbd   :  { %6042 = vst [vmem:[#allocation10_spill] sm:$0xff] %v4565_v48  ;;  %v712_v22 = vadd.f32 %v711_v25, %v692_v19  ;;  %v1244_v19 = vmul.f32 %v4583_v46, %v2953_v38  ;;  %v1249_v25 = vadd.f32 %v1234_v24, %v1233_v16  ;;  %v1262_v48 = vadd.f32 %v1242_v40, %v1241_v56  ;;  %v4600_v38 = vld [vmem:[%s5711_s0 + $0xb8] sm:$0xff] }
  0xbe   :  { %6043 = vst [vmem:[#allocation11_spill] sm:$0xff] %v4571_v59  ;;  %v700_v61 = vrot.slane %v699_v39, 4  ;;  %v3329_v59 = vld [vmem:[%s5712_s1 + $0xe0] sm:$0xff]   ;;  %v4589_v13 = vadd.f32 %v141_v43, %v140_v18  ;;  %v1240_v16 = vmul.f32 %v4600_v38, %v2961_v45  ;;  %vm2318_vm2 = vcmask 7168  }
  0xbf   :  { %6044 = vst [vmem:[#allocation14_spill] sm:$0xff] %v4577_v33  ;;  %v713_v8 = vrot.slane %v712_v22, 4  ;;  %v4594_v33 = vld [vmem:[%s5711_s0 + $0xb0] sm:$0xff]  ;;  %v4606_v18 = vld [vmem:[%s5711_s0 + $0x1a0] sm:$0xff]  ;;  %v1250_v43 = vadd.f32 %v1249_v25, %v1235_v20  ;;  %v1263_v40 = vadd.f32 %v1262_v48, %v1243_v28  ;;  %v3093_v20 = vunpack.c.h.bf16 %v3329_v59 }
  0xc0   :  { %6045 = vst [vmem:[#allocation13_spill] sm:$0xff] %v4583_v46  ;;  %v1239_v26 = vmul.f32 %v4594_v33, %v2960_v58  ;;  %v701_v24 = vadd.f32 %v700_v61, %v699_v39  ;;  %v1245_v56 = vmul.f32 %v4606_v18, %v2956_v1  ;;  %v4612_v46 = vadd.f32 %v154_v36, %v153_v32  ;;  %v4617_v39 = vld [vmem:[%s5711_s0 + $0x1a8] sm:$0xff]  ;;  %v3331_v48 = vld [vmem:[%s5712_s1 + $0xf0] sm:$0xff]   ;;  %v4626_v32 = vld [vmem:[%s5712_s1 + $0xf8] sm:$0xff]  }
  0xc1   :  { %6046 = vst [vmem:[#allocation16_spill] sm:$0xff] %v4594_v33  ;;  %v3330_v33 = vld [vmem:[%s5712_s1 + $0xe8] sm:$0xff]   ;;  %v714_v34 = vadd.f32 %v713_v8, %v712_v22  ;;  %v1246_v61 = vmul.f32 %v4617_v39, %v2957_v57  ;;  %v1251_v49 = vadd.f32 %v1250_v43, %v1236_v15  ;;  %v1264_v1 = vadd.f32 %v1263_v40, %v1244_v19  ;;  %v4631_v28 = vld [vmem:[%s5711_s0 + $0x1b0] sm:$0xff]  ;;  %v4637_v15 = vld [vmem:[%s5711_s0 + $0x1b8] sm:$0xff] }
  0xc2   :  { %6047 = vst [vmem:[#allocation15_spill] sm:$0xff] %v4600_v38  ;;  %v3092_v38 = vunpack.c.l.bf16 %v3329_v59  ;;  %v702_v60 = vrot.slane %v701_v24, 2  ;;  %v1247_v57 = vmul.f32 %v4631_v28, %v2960_v58  ;;  %v1248_v36 = vmul.f32 %v4637_v15, %v2961_v45  ;;  %v4644_v58 = vld [vmem:[%s5711_s0 + $0xc0] sm:$0xff] }
  0xc3   :  { %6048 = vst [vmem:[#allocation19_spill] sm:$0xff] %v4606_v18  ;;  %v715_v8 = vrot.slane %v714_v34, 2  ;;  %v3096_v22 = vunpack.c.l.bf16 %v3330_v33  ;;  %v1252_v19 = vadd.f32 %v1251_v49, %v1237_v27  ;;  %v1265_v25 = vadd.f32 %v1264_v1, %v1245_v56  ;;  %v4650_v49 = vld [vmem:[%s5711_s0 + $0xc8] sm:$0xff]  ;;  %v4657_v27 = vld [vmem:[%s5711_s0 + $0x1c0] sm:$0xff] }
  0xc4   :  { %6049 = vst [vmem:[#allocation20_spill] sm:$0xff] %v4617_v39  ;;  %v703_v59 = vadd.f32 %v702_v60, %v701_v24  ;;  %v3097_v43 = vunpack.c.h.bf16 %v3330_v33  ;;  %v3100_v39 = vunpack.c.l.bf16 %v3331_v48  ;;  %v3101_v18 = vunpack.c.h.bf16 %v3331_v48  ;;  %v4669_v48 = vld [vmem:[%s5711_s0 + $0xd0] sm:$0xff] }
  0xc5   :  { %6050 = vst [vmem:[#allocation21_spill] sm:$0xff] %v4631_v28  ;;  %v716_v40 = vadd.f32 %v715_v8, %v714_v34  ;;  %v3104_v30 = vunpack.c.l.bf16 %v4626_v32  ;;  %v1253_v7 = vadd.f32 %v1252_v19, %v1238_v12  ;;  %v1266_v5 = vadd.f32 %v1265_v25, %v1246_v61  ;;  %v4663_v12 = vld [vmem:[%s5711_s0 + $0x1c8] sm:$0xff] }
  0xc6   :  { %6051 = vst [vmem:[#allocation22_spill] sm:$0xff] %v4637_v15  ;;  %v1789_v28 = vmul.f32 %v4644_v58, %v3092_v38  ;;  %v1790_v60 = vmul.f32 %v4650_v49, %v3093_v20  ;;  %v704_v34 = vrot.slane %v703_v59, 1  ;;  %v3105_v45 = vunpack.c.h.bf16 %v4626_v32 }
  0xc7   :  { %6052 = vst [vmem:[#allocation23_spill] sm:$0xff] %v4644_v58  ;;  %v1797_v33 = vmul.f32 %v4657_v27, %v3092_v38  ;;  %v1798_v24 = vmul.f32 %v4663_v12, %v3093_v20  ;;  %v717_v56 = vrot.slane %v716_v40, 1  ;;  %v1254_v61 = vadd.f32 %v1253_v7, %v1239_v26  ;;  %v4675_v38 = vld [vmem:[%s5711_s0 + $0xd8] sm:$0xff]  ;;  %v4681_v20 = vld [vmem:[%s5711_s0 + $0xe0] sm:$0xff]  ;;  %v4687_v7 = vld [vmem:[%s5711_s0 + $0xe8] sm:$0xff] }
  0xc8   :  { %6053 = vst [vmem:[#allocation25_spill] sm:$0xff] %v4650_v49  ;;  %v1267_v1 = vadd.f32 %v1266_v5, %v1247_v57  ;;  %v1791_v32 = vmul.f32 %v4669_v48, %v3096_v22  ;;  %v1792_v8 = vmul.f32 %v4675_v38, %v3097_v43  ;;  %v1793_v5 = vmul.f32 %v4681_v20, %v3100_v39  ;;  %v4693_v57 = vld [vmem:[%s5711_s0 + $0x1d0] sm:$0xff] }
  0xc9   :  { %6054 = vst [vmem:[#allocation24_spill] sm:$0xff] %v4657_v27  ;;  %v1794_v26 = vmul.f32 %v4687_v7, %v3101_v18  ;;  %v1799_v19 = vmul.f32 %v4693_v57, %v3096_v22  ;;  %v1255_v25 = vadd.f32 %v1254_v61, %v1240_v16  ;;  %v705_v27 = vadd.f32 %v704_v34, %v703_v59  ;;  %v4711_v16 = vld [vmem:[%s5711_s0 + $0x1d8] sm:$0xff] }
  0xca   :  { %6055 = vst [vmem:[#allocation27_spill] sm:$0xff] %v4663_v12  ;;  %v1805_v12 = vadd.f32 %v1790_v60, %v1789_v28  ;;  %v1818_v22 = vadd.f32 %v1798_v24, %v1797_v33  ;;  %v3229_v28 = vld [vmem:[%s5712_s1 + $0x180] sm:$0xff]   ;;  %v718_v59 = vadd.f32 %v717_v56, %v716_v40  ;;  %v4732_v40 = vld [vmem:[%s5711_s0 + $0x1f0] sm:$0xff]  ;;  %vm2320_vm3 = vcmask 15360  }
  0xcb   :  { %6056 = vst [vmem:[#allocation29_spill] sm:$0xff] %v4669_v48  ;;  %v1256_v60 = vrot.slane %v1255_v25, 4  ;;  %vm2322_vm4 = vcmask 23552   ;;  %vm2324_vm5 = vcmask 31744   ;;  %vm2326_vm6 = vcmask 39936  }
  0xcc   :  { %6057 = vst [vmem:[#allocation26_spill] sm:$0xff] %v4675_v38  ;;  %v1268_v38 = vadd.f32 %v1267_v1, %v1248_v36  ;;  %v1800_v36 = vmul.f32 %v4711_v16, %v3097_v43  ;;  %v1806_v61 = vadd.f32 %v1805_v12, %v1791_v32  ;;  %v4720_v1 = vld [vmem:[%s5711_s0 + $0x1e0] sm:$0xff]  ;;  %v4726_v43 = vld [vmem:[%s5711_s0 + $0x1e8] sm:$0xff]  ;;  %v1803_v12 = vmul.f32 %v4732_v40, %v3104_v30 }
  0xcd   :  { %6058 = vst [vmem:[#allocation31_spill] sm:$0xff] %v4681_v20  ;;  %v4699_v20 = vld [vmem:[%s5711_s0 + $0xf0] sm:$0xff]  ;;  %v1802_v33 = vmul.f32 %v4726_v43, %v3101_v18  ;;  %v1819_v24 = vadd.f32 %v1818_v22, %v1799_v19  ;;  %v1257_v56 = vadd.f32 %v1256_v60, %v1255_v25  ;;  %v720_v19 = vadd.f32 %v718_v59, %v4612_v46 }
  0xce   :  { %6059 = vst [vmem:[#allocation33_spill] sm:$0xff] %v4687_v7  ;;  %v1795_v48 = vmul.f32 %v4699_v20, %v3104_v30  ;;  %v4705_v7 = vld [vmem:[%s5711_s0 + $0xf8] sm:$0xff]  ;;  %v1269_v34 = vrot.slane %v1268_v38, 4  ;;  %v3231_v18 = vld [vmem:[%s5712_s1 + $0x190] sm:$0xff]   ;;  %vm2328_vm7 = vcmask 48128   ;;  %vm2330_vm8 = vcmask 56320  }
  0xcf   :  { %6060 = vst [vmem:[#allocation28_spill] sm:$0xff] %v4693_v57  ;;  %v1796_v49 = vmul.f32 %v4705_v7, %v3105_v45  ;;  %v1258_v25 = vrot.slane %v1257_v56, 2  ;;  %v2700_v57 = vunpack.c.l.bf16 %v3231_v18  ;;  %vm2332_vm9 = vcmask 64512  }
  0xd0   :  { %6061 = vst [vmem:[#allocation30_spill] sm:$0xff] %v4699_v20  ;;  %v1270_v32 = vadd.f32 %v1269_v34, %v1268_v38  ;;  %v2692_v20 = vunpack.c.l.bf16 %v3229_v28  ;;  %v1820_v38 = vadd.f32 %v1819_v24, %v1800_v36  ;;  %vm2339_vm10 = vcmask 25600  }
  0xd1   :  { %6062 = vst [vmem:[#allocation32_spill] sm:$0xff] %v4705_v7  ;;  %v1801_v7 = vmul.f32 %v4720_v1, %v3100_v39  ;;  %v3230_v39 = vld [vmem:[%s5712_s1 + $0x188] sm:$0xff]   ;;  %vm2352_vm11 = vcmask 33792  }
  0xd2   :  { %6063 = vst [vmem:[#allocation34_spill] sm:$0xff] %v4711_v16  ;;  %v1807_v16 = vadd.f32 %v1806_v61, %v1792_v8  ;;  %v2693_v8 = vunpack.c.h.bf16 %v3229_v28  ;;  %v1271_v22 = vrot.slane %v1270_v32, 2  ;;  %v2696_v61 = vunpack.c.l.bf16 %v3230_v39 }
  0xd3   :  { %6064 = vst [vmem:[#allocation36_spill] sm:$0xff] %v4720_v1  ;;  %v4745_v1 = vld [vmem:[%s5711_s0 + $0x1f8] sm:$0xff]  ;;  %v1821_v34 = vadd.f32 %v1820_v38, %v1801_v7  ;;  %v244_v46 = vmul.f32 %v4343_v62, %v2692_v20 }
  0xd4   :  { %6065 = vst [vmem:[#allocation37_spill] sm:$0xff] %v4726_v43  ;;  %v719_v43 = vadd.f32 %v705_v27, %v4589_v13  ;;  %v1804_v30 = vmul.f32 %v4745_v1, %v3105_v45  ;;  %v1808_v60 = vadd.f32 %v1807_v16, %v1793_v5  ;;  %v3232_v13 = vld [vmem:[%s5712_s1 + $0x198] sm:$0xff]   ;;  %v1259_v27 = vadd.f32 %v1258_v25, %v1257_v56 }
  0xd5   :  { %6066 = vst [vmem:[#allocation40_spill] sm:$0xff] %v4732_v40  ;;  %v2697_v40 = vunpack.c.h.bf16 %v3230_v39  ;;  %v1272_v58 = vadd.f32 %v1271_v22, %v1270_v32  ;;  %v236_v45 = vmul.f32 %v4331_v55, %v2692_v20  ;;  %v1822_v36 = vadd.f32 %v1821_v34, %v1802_v33 }
  0xd6   :  { %6067 = vst [vmem:[#allocation42_spill] sm:$0xff] %v4745_v1  ;;  %v1809_v15 = vadd.f32 %v1808_v60, %v1794_v26  ;;  %v237_v28 = vmul.f32 %v4337_v0, %v2693_v8  ;;  %v245_v5 = vmul.f32 %v4349_v4, %v2693_v8  ;;  %v2701_v16 = vunpack.c.h.bf16 %v3231_v18 }
  0xd7   :  { %v2704_v59 = vunpack.c.l.bf16 %v3232_v13  ;;  %v2705_v24 = vunpack.c.h.bf16 %v3232_v13  ;;  %v1260_v39 = vrot.slane %v1259_v27, 1  ;;  %v1823_v38 = vadd.f32 %v1822_v36, %v1803_v12  ;;  %v3265_v36 = vld [vmem:[%s5712_s1 + $0x1a0] sm:$0xff]  }
  0xd8   :  { %v1810_v7 = vadd.f32 %v1809_v15, %v1795_v48  ;;  %v238_v1 = vmul.f32 %v4356_v9, %v2696_v61  ;;  %v246_v56 = vmul.f32 %v4362_v44, %v2696_v61  ;;  %v1273_v26 = vrot.slane %v1272_v58, 1 }
  0xd9   :  { %v239_v33 = vmul.f32 %v4368_v17, %v2697_v40  ;;  %v240_v25 = vmul.f32 %v4374_v10, %v2700_v57  ;;  %v1824_v22 = vadd.f32 %v1823_v38, %v1804_v30  ;;  %v247_v20 = vmul.f32 %v4380_v11, %v2697_v40 }
  0xda   :  { %v1811_v32 = vadd.f32 %v1810_v7, %v1796_v49  ;;  %v252_v8 = vadd.f32 %v237_v28, %v236_v45  ;;  %v265_v15 = vadd.f32 %v245_v5, %v244_v46  ;;  %v241_v18 = vmul.f32 %v4386_v31, %v2701_v16 }
  0xdb   :  { %v242_v12 = vmul.f32 %v4392_v42, %v2704_v59  ;;  %v248_v60 = vmul.f32 %v4398_v29, %v2700_v57  ;;  %v1261_v34 = vadd.f32 %v1260_v39, %v1259_v27  ;;  %v1825_v61 = vrot.slane %v1824_v22, 4  ;;  %v3266_v57 = vld [vmem:[%s5712_s1 + $0x1a8] sm:$0xff]  }
  0xdc   :  { %v1812_v48 = vrot.slane %v1811_v32, 4  ;;  %v253_v13 = vadd.f32 %v252_v8, %v238_v1  ;;  %v266_v49 = vadd.f32 %v265_v15, %v246_v56  ;;  %v1274_v30 = vadd.f32 %v1273_v26, %v1272_v58  ;;  %v3267_v58 = vld [vmem:[%s5712_s1 + $0x1b0] sm:$0xff]  }
  0xdd   :  { %v243_v40 = vmul.f32 %v4407_v47, %v2705_v24  ;;  %v249_v45 = vmul.f32 %v4413_v50, %v2701_v16  ;;  %v1826_v28 = vadd.f32 %v1825_v61, %v1824_v22  ;;  %v250_v46 = vmul.f32 %v4419_v52, %v2704_v59 }
  0xde   :  { %v1813_v7 = vadd.f32 %v1812_v48, %v1811_v32  ;;  %v254_v5 = vadd.f32 %v253_v13, %v239_v33  ;;  %v267_v38 = vadd.f32 %v266_v49, %v247_v20  ;;  %v251_v27 = vmul.f32 %v4428_v21, %v2705_v24  ;;  %v3268_v24 = vld [vmem:[%s5712_s1 + $0x1b8] sm:$0xff]  }
  0xdf   :  { %v2836_v39 = vunpack.c.l.bf16 %v3265_v36  ;;  %v2837_v56 = vunpack.c.h.bf16 %v3265_v36  ;;  %v1275_v26 = vadd.f32 %v1261_v34, %v719_v43  ;;  %v1827_v16 = vrot.slane %v1826_v28, 2 }
  0xe0   :  { %v1814_v1 = vrot.slane %v1813_v7, 2  ;;  %v255_v32 = vadd.f32 %v254_v5, %v240_v25  ;;  %v268_v22 = vadd.f32 %v267_v38, %v248_v60  ;;  %v1276_v59 = vadd.f32 %v1274_v30, %v720_v19 }
  0xe1   :  { %v2840_v20 = vunpack.c.l.bf16 %v3266_v57  ;;  %v2841_v8 = vunpack.c.h.bf16 %v3266_v57  ;;  %v1828_v15 = vadd.f32 %v1827_v16, %v1826_v28  ;;  %v2844_v13 = vunpack.c.l.bf16 %v3267_v58 }
  0xe2   :  { %v1815_v33 = vadd.f32 %v1814_v1, %v1813_v7  ;;  %v256_v48 = vadd.f32 %v255_v32, %v241_v18  ;;  %v269_v61 = vadd.f32 %v268_v22, %v249_v45  ;;  %v797_v36 = vmul.f32 %v4197_v53, %v2836_v39 }
  0xe3   :  { %v798_v43 = vmul.f32 %v4203_v14, %v2837_v56  ;;  %v805_v25 = vmul.f32 %v4447_v3, %v2836_v39  ;;  %v1829_v60 = vrot.slane %v1828_v15, 1  ;;  %v806_v30 = vmul.f32 %v4210_v2, %v2837_v56 }
  0xe4   :  { %v1816_v49 = vrot.slane %v1815_v33, 1  ;;  %v257_v19 = vadd.f32 %v256_v48, %v242_v12  ;;  %v270_v34 = vadd.f32 %v269_v61, %v250_v46  ;;  %v2845_v18 = vunpack.c.h.bf16 %v3267_v58 }
  0xe5   :  { %v2848_v45 = vunpack.c.l.bf16 %v3268_v24  ;;  %v799_v28 = vmul.f32 %v4455_v63, %v2840_v20  ;;  %v1830_v5 = vadd.f32 %v1829_v60, %v1828_v15  ;;  %v807_v1 = vmul.f32 %v4217_v51, %v2840_v20  ;;  %v3301_v20 = vld [vmem:[%s5712_s1 + $0x1c0] sm:$0xff]   ;;  %v6069_v60 = vld [vmem:[#allocation38_spill] sm:$0xff] }
  0xe6   :  { %v1817_v7 = vadd.f32 %v1816_v49, %v1815_v33  ;;  %v258_v38 = vadd.f32 %v257_v19, %v243_v40  ;;  %v271_v57 = vadd.f32 %v270_v34, %v251_v27  ;;  %v800_v14 = vmul.f32 %v4462_v41, %v2841_v8 }
  0xe7   :  { %v808_v39 = vmul.f32 %v4468_v35, %v2841_v8  ;;  %v813_v16 = vadd.f32 %v798_v43, %v797_v36  ;;  %v1832_v12 = vadd.f32 %v1830_v5, %v1276_v59  ;;  %v826_v2 = vadd.f32 %v806_v30, %v805_v25  ;;  %v3302_v43 = vld [vmem:[%s5712_s1 + $0x1c8] sm:$0xff]   ;;  %v3303_v25 = vld [vmem:[%s5712_s1 + $0x1d0] sm:$0xff]  }
  0xe8   :  { %v1831_v53 = vadd.f32 %v1817_v7, %v1275_v26  ;;  %v259_v46 = vrot.slane %v258_v38, 4  ;;  %v272_v32 = vrot.slane %v271_v57, 4  ;;  %v2849_v56 = vunpack.c.h.bf16 %v3268_v24  ;;  %v6068_v24 = vld [vmem:[#allocation35_spill] sm:$0xff] }
  0xe9   :  { %v801_v58 = vmul.f32 %v4474_v23, %v2844_v13  ;;  %v809_v22 = vmul.f32 %v4480_v37, %v2844_v13  ;;  %v814_v33 = vadd.f32 %v813_v16, %v799_v28  ;;  %v827_v26 = vadd.f32 %v826_v2, %v807_v1  ;;  %v3304_v7 = vld [vmem:[%s5712_s1 + $0x1d8] sm:$0xff]  }
  0xea   :  { %v2264_v40 = vsel %vm2255_vm0, %v1832_v12, %v1831_v53  ;;  %v260_v27 = vadd.f32 %v259_v46, %v258_v38  ;;  %v273_v51 = vadd.f32 %v272_v32, %v271_v57  ;;  %v802_v8 = vmul.f32 %v4232_v54, %v2845_v18  ;;  %v6071_v38 = vld [vmem:[#allocation17_spill] sm:$0xff] }
  0xeb   :  { %v2266_v59 = vsel %vm2258_vm1, %v2264_v40, 0.0  ;;  %v803_v15 = vmul.f32 %v4492_v6, %v2848_v45  ;;  %v815_v48 = vadd.f32 %v814_v33, %v800_v14  ;;  %v810_v49 = vmul.f32 %v6068_v24, %v2845_v18  ;;  %v6070_v18 = vld [vmem:[#allocation12_spill] sm:$0xff]  ;;  %v6072_v33 = vld [vmem:[#allocation39_spill] sm:$0xff] }
  0xec   :  { %2267 = vadd.xlane.f32.xlu0 %v2266_v59  ;;  %v261_v61 = vrot.slane %v260_v27, 2  ;;  %v274_v13 = vrot.slane %v273_v51, 2  ;;  %v828_v36 = vadd.f32 %v827_v26, %v808_v39  ;;  %v804_v19 = vmul.f32 %v6069_v60, %v2849_v56  ;;  %v6073_v26 = vld [vmem:[#allocation41_spill] sm:$0xff]  ;;  %v6074_v59 = vld [vmem:[#allocation44_spill] sm:$0xff] }
  0xed   :  { %v816_v54 = vadd.f32 %v815_v48, %v801_v58  ;;  %v2980_v34 = vunpack.c.l.bf16 %v3301_v20  ;;  %v2981_v30 = vunpack.c.h.bf16 %v3301_v20  ;;  %v811_v5 = vmul.f32 %v6070_v18, %v2848_v45  ;;  %v6079_v18 = vld [vmem:[#allocation11_spill] sm:$0xff] }
  0xee   :  { %v262_v28 = vadd.f32 %v261_v61, %v260_v27  ;;  %v812_v57 = vmul.f32 %v6071_v38, %v2849_v56  ;;  %v829_v1 = vadd.f32 %v828_v36, %v809_v22  ;;  %v2984_v14 = vunpack.c.l.bf16 %v3302_v43  ;;  %v6075_v56 = vld [vmem:[#allocation45_spill] sm:$0xff]  ;;  %v6076_v36 = vld [vmem:[#allocation8_spill] sm:$0xff] }
  0xef   :  { %v817_v53 = vadd.f32 %v816_v54, %v802_v8  ;;  %v2985_v39 = vunpack.c.h.bf16 %v3302_v43  ;;  %v2988_v16 = vunpack.c.l.bf16 %v3303_v25  ;;  %v275_v12 = vadd.f32 %v274_v13, %v273_v51  ;;  %v6077_v54 = vld [vmem:[#allocation9_spill] sm:$0xff]  ;;  %v6078_v13 = vld [vmem:[#allocation10_spill] sm:$0xff] }
  0xf0   :  { %v830_v46 = vadd.f32 %v829_v1, %v810_v49  ;;  %v2989_v32 = vunpack.c.h.bf16 %v3303_v25  ;;  %v2992_v2 = vunpack.c.l.bf16 %v3304_v7  ;;  %v1353_v40 = vmul.f32 %v6072_v33, %v2980_v34  ;;  %v6080_v1 = vld [vmem:[#allocation14_spill] sm:$0xff]  ;;  %v6089_v33 = vld [vmem:[#allocation25_spill] sm:$0xff] }
  0xf1   :  { %v818_v58 = vadd.f32 %v817_v53, %v803_v15  ;;  %v1354_v20 = vmul.f32 %v6073_v26, %v2981_v30  ;;  %v1361_v27 = vmul.f32 %v6074_v59, %v2980_v34  ;;  %v263_v48 = vrot.slane %v262_v28, 1  ;;  %v6081_v34 = vld [vmem:[#allocation13_spill] sm:$0xff] }
  0xf2   :  { %v831_v45 = vadd.f32 %v830_v46, %v811_v5  ;;  %v2993_v61 = vunpack.c.h.bf16 %v3304_v7  ;;  %v1362_v22 = vmul.f32 %v6075_v56, %v2981_v30  ;;  %v1355_v43 = vmul.f32 %v6076_v36, %v2984_v14 }
  0xf3   :  { %v819_v8 = vadd.f32 %v818_v58, %v804_v19  ;;  %v1356_v51 = vmul.f32 %v6077_v54, %v2985_v39  ;;  %v1363_v49 = vmul.f32 %v6078_v13, %v2984_v14  ;;  %v276_v25 = vrot.slane %v275_v12, 1  ;;  %v3337_v19 = vld [vmem:[%s5712_s1 + $0x1e0] sm:$0xff]  }
  0xf4   :  { %v832_v15 = vadd.f32 %v831_v45, %v812_v57  ;;  %v1357_v38 = vmul.f32 %v6079_v18, %v2988_v16  ;;  %v1358_v53 = vmul.f32 %v6080_v1, %v2989_v32  ;;  %v1364_v59 = vmul.f32 %v6081_v34, %v2985_v39  ;;  %v6082_v58 = vld [vmem:[#allocation16_spill] sm:$0xff]  ;;  %v6083_v13 = vld [vmem:[#allocation15_spill] sm:$0xff] }
  0xf5   :  { %v820_v26 = vrot.slane %v819_v8, 4  ;;  %v1369_v5 = vadd.f32 %v1354_v20, %v1353_v40  ;;  %v1382_v7 = vadd.f32 %v1362_v22, %v1361_v27  ;;  %v4823_v30 = vadd.f32 %v263_v48, %v262_v28  ;;  %v6084_v18 = vld [vmem:[#allocation19_spill] sm:$0xff]  ;;  %v3338_v39 = vld [vmem:[%s5712_s1 + $0x1e8] sm:$0xff]  }
  0xf6   :  { %v833_v46 = vrot.slane %v832_v15, 4  ;;  %v1359_v14 = vmul.f32 %v6082_v58, %v2992_v2  ;;  %v1360_v57 = vmul.f32 %v6083_v13, %v2993_v61  ;;  %v1365_v54 = vmul.f32 %v6084_v18, %v2988_v16  ;;  %v6085_v27 = vld [vmem:[#allocation20_spill] sm:$0xff]  ;;  %v3339_v16 = vld [vmem:[%s5712_s1 + $0x1f0] sm:$0xff]   ;;  %v6088_v18 = vld [vmem:[#allocation23_spill] sm:$0xff] }
  0xf7   :  { %v821_v45 = vadd.f32 %v820_v26, %v819_v8  ;;  %v1370_v1 = vadd.f32 %v1369_v5, %v1355_v43  ;;  %v1383_v36 = vadd.f32 %v1382_v7, %v1363_v49  ;;  %v4831_v40 = vadd.f32 %v276_v25, %v275_v12  ;;  %v3340_v26 = vld [vmem:[%s5712_s1 + $0x1f8] sm:$0xff]   ;;  %v6086_v43 = vld [vmem:[#allocation21_spill] sm:$0xff] }
  0xf8   :  { %v834_v20 = vadd.f32 %v833_v46, %v832_v15  ;;  %v1366_v28 = vmul.f32 %v6085_v27, %v2989_v32  ;;  %v3124_v48 = vunpack.c.l.bf16 %v3337_v19  ;;  %v3125_v56 = vunpack.c.h.bf16 %v3337_v19  ;;  %v6087_v49 = vld [vmem:[#allocation22_spill] sm:$0xff] }
  0xf9   :  { %v822_v22 = vrot.slane %v821_v45, 2  ;;  %v1371_v34 = vadd.f32 %v1370_v1, %v1356_v51  ;;  %v1384_v58 = vadd.f32 %v1383_v36, %v1364_v59  ;;  %v1367_v12 = vmul.f32 %v6086_v43, %v2992_v2  ;;  %v6090_v2 = vld [vmem:[#allocation24_spill] sm:$0xff] }
  0xfa   :  { %v835_v8 = vrot.slane %v834_v20, 2  ;;  %v1368_v25 = vmul.f32 %v6087_v49, %v2993_v61  ;;  %v3128_v15 = vunpack.c.l.bf16 %v3338_v39  ;;  %v3129_v51 = vunpack.c.h.bf16 %v3338_v39  ;;  %v6091_v61 = vld [vmem:[#allocation27_spill] sm:$0xff]  ;;  %v6093_v39 = vld [vmem:[#allocation26_spill] sm:$0xff] }
  0xfb   :  { %v823_v32 = vadd.f32 %v822_v22, %v821_v45  ;;  %v1372_v5 = vadd.f32 %v1371_v34, %v1357_v38  ;;  %v1385_v7 = vadd.f32 %v1384_v58, %v1365_v54  ;;  %v3132_v36 = vunpack.c.l.bf16 %v3339_v16  ;;  %v6092_v34 = vld [vmem:[#allocation29_spill] sm:$0xff]  ;;  %v6094_v22 = vld [vmem:[#allocation31_spill] sm:$0xff] }
  0xfc   :  { %v836_v59 = vadd.f32 %v835_v8, %v834_v20  ;;  %v3133_v1 = vunpack.c.h.bf16 %v3339_v16  ;;  %v3136_v19 = vunpack.c.l.bf16 %v3340_v26  ;;  %v1909_v13 = vmul.f32 %v6088_v18, %v3124_v48  ;;  %v6096_v8 = vld [vmem:[#allocation28_spill] sm:$0xff] }
  0xfd   :  { %v1373_v46 = vadd.f32 %v1372_v5, %v1358_v53  ;;  %v1386_v27 = vadd.f32 %v1385_v7, %v1366_v28  ;;  %v1910_v60 = vmul.f32 %v6089_v33, %v3125_v56  ;;  %v824_v24 = vrot.slane %v823_v32, 1  ;;  %v6095_v28 = vld [vmem:[#allocation33_spill] sm:$0xff] }
  0xfe   :  { %v3137_v6 = vunpack.c.h.bf16 %v3340_v26  ;;  %v1917_v43 = vmul.f32 %v6090_v2, %v3124_v48  ;;  %v1918_v49 = vmul.f32 %v6091_v61, %v3125_v56  ;;  %v837_v45 = vrot.slane %v836_v59, 1  ;;  %v6097_v26 = vld [vmem:[#allocation30_spill] sm:$0xff]  ;;  %v6098_v56 = vld [vmem:[#allocation32_spill] sm:$0xff] }
  0xff   :  { %v1374_v38 = vadd.f32 %v1373_v46, %v1359_v14  ;;  %v1387_v54 = vadd.f32 %v1386_v27, %v1367_v12  ;;  %v1911_v58 = vmul.f32 %v6092_v34, %v3128_v15  ;;  %v1912_v20 = vmul.f32 %v6093_v39, %v3129_v51  ;;  %v6099_v14 = vld [vmem:[#allocation34_spill] sm:$0xff]  ;;  %v3237_v46 = vld [vmem:[%s5712_s1 + $0x280] sm:$0xff]  }
 0x100   :  { %v1913_v53 = vmul.f32 %v6094_v22, %v3132_v36  ;;  %v1914_v16 = vmul.f32 %v6095_v28, %v3133_v1  ;;  %v1919_v5 = vmul.f32 %v6096_v8, %v3128_v15  ;;  %v1915_v18 = vmul.f32 %v6097_v26, %v3136_v19  ;;  %v6100_v15 = vld [vmem:[#allocation36_spill] sm:$0xff] }
 0x101   :  { %v1375_v7 = vadd.f32 %v1374_v38, %v1360_v57  ;;  %v1388_v33 = vadd.f32 %v1387_v54, %v1368_v25  ;;  %v1925_v48 = vadd.f32 %v1910_v60, %v1909_v13  ;;  %v825_v2 = vadd.f32 %v824_v24, %v823_v32  ;;  %v6101_v25 = vld [vmem:[#allocation37_spill] sm:$0xff]  ;;  %v6102_v54 = vld [vmem:[#allocation40_spill] sm:$0xff] }
 0x102   :  { %v1916_v61 = vmul.f32 %v6098_v56, %v3137_v6  ;;  %v1920_v27 = vmul.f32 %v6099_v14, %v3129_v51  ;;  %v1938_v12 = vadd.f32 %v1918_v49, %v1917_v43  ;;  %v838_v22 = vadd.f32 %v837_v45, %v836_v59  ;;  %v3238_v43 = vld [vmem:[%s5712_s1 + $0x288] sm:$0xff]   ;;  %v3239_v49 = vld [vmem:[%s5712_s1 + $0x290] sm:$0xff]  }
 0x103   :  { %v1376_v39 = vrot.slane %v1375_v7, 4  ;;  %v1389_v28 = vrot.slane %v1388_v33, 4  ;;  %v1926_v34 = vadd.f32 %v1925_v48, %v1911_v58  ;;  %v1921_v57 = vmul.f32 %v6100_v15, %v3132_v36  ;;  %v6103_v36 = vld [vmem:[#allocation42_spill] sm:$0xff] }
 0x104   :  { %v1922_v38 = vmul.f32 %v6101_v25, %v3133_v1  ;;  %v1923_v60 = vmul.f32 %v6102_v54, %v3136_v19  ;;  %v1939_v24 = vadd.f32 %v1938_v12, %v1919_v5  ;;  %v2724_v51 = vunpack.c.l.bf16 %v3237_v46  ;;  %v3240_v48 = vld [vmem:[%s5712_s1 + $0x298] sm:$0xff]  }
 0x105   :  { %v1377_v13 = vadd.f32 %v1376_v39, %v1375_v7  ;;  %v1390_v32 = vadd.f32 %v1389_v28, %v1388_v33  ;;  %v1927_v56 = vadd.f32 %v1926_v34, %v1912_v20  ;;  %v839_v59 = vadd.f32 %v825_v2, %v4823_v30 }
 0x106   :  { %v1924_v45 = vmul.f32 %v6103_v36, %v3137_v6  ;;  %v1940_v1 = vadd.f32 %v1939_v24, %v1920_v27  ;;  %v2725_v58 = vunpack.c.h.bf16 %v3237_v46  ;;  %v840_v19 = vadd.f32 %v838_v22, %v4831_v40 }
 0x107   :  { %v1378_v39 = vrot.slane %v1377_v13, 2  ;;  %v1391_v33 = vrot.slane %v1390_v32, 2  ;;  %v1928_v34 = vadd.f32 %v1927_v56, %v1913_v53  ;;  %v2728_v28 = vunpack.c.l.bf16 %v3238_v43 }
 0x108   :  { %v1941_v20 = vadd.f32 %v1940_v1, %v1921_v57  ;;  %v2729_v5 = vunpack.c.h.bf16 %v3238_v43  ;;  %v2732_v7 = vunpack.c.l.bf16 %v3239_v49  ;;  %v358_v6 = vmul.f32 %v4331_v55, %v2724_v51 }
 0x109   :  { %v1379_v12 = vadd.f32 %v1378_v39, %v1377_v13  ;;  %v1392_v54 = vadd.f32 %v1391_v33, %v1390_v32  ;;  %v1929_v30 = vadd.f32 %v1928_v34, %v1914_v16  ;;  %v359_v27 = vmul.f32 %v4337_v0, %v2725_v58 }
 0x10a   :  { %v1942_v2 = vadd.f32 %v1941_v20, %v1922_v38  ;;  %v366_v40 = vmul.f32 %v4343_v62, %v2724_v51  ;;  %v367_v22 = vmul.f32 %v4349_v4, %v2725_v58  ;;  %v2733_v56 = vunpack.c.h.bf16 %v3239_v49 }
 0x10b   :  { %v1930_v53 = vadd.f32 %v1929_v30, %v1915_v18  ;;  %v2736_v46 = vunpack.c.l.bf16 %v3240_v48  ;;  %v2737_v57 = vunpack.c.h.bf16 %v3240_v48  ;;  %v1380_v24 = vrot.slane %v1379_v12, 1 }
 0x10c   :  { %v1943_v43 = vadd.f32 %v1942_v2, %v1923_v60  ;;  %v360_v1 = vmul.f32 %v4356_v9, %v2728_v28  ;;  %v368_v13 = vmul.f32 %v4362_v44, %v2728_v28  ;;  %v1393_v16 = vrot.slane %v1392_v54, 1 }
 0x10d   :  { %v1931_v32 = vadd.f32 %v1930_v53, %v1916_v61  ;;  %v361_v55 = vmul.f32 %v4368_v17, %v2729_v5  ;;  %v362_v0 = vmul.f32 %v4374_v10, %v2732_v7  ;;  %v369_v62 = vmul.f32 %v4380_v11, %v2729_v5  ;;  %v3273_v17 = vld [vmem:[%s5712_s1 + $0x2a0] sm:$0xff]  }
 0x10e   :  { %v1944_v38 = vadd.f32 %v1943_v43, %v1924_v45  ;;  %v374_v4 = vadd.f32 %v359_v27, %v358_v6  ;;  %v387_v18 = vadd.f32 %v367_v22, %v366_v40  ;;  %v363_v49 = vmul.f32 %v4386_v31, %v2733_v56 }
 0x10f   :  { %v1932_v51 = vrot.slane %v1931_v32, 4  ;;  %v364_v60 = vmul.f32 %v4392_v42, %v2736_v46  ;;  %v370_v9 = vmul.f32 %v4398_v29, %v2732_v7  ;;  %v1381_v58 = vadd.f32 %v1380_v24, %v1379_v12  ;;  %v3274_v29 = vld [vmem:[%s5712_s1 + $0x2a8] sm:$0xff]  }
 0x110   :  { %v1945_v44 = vrot.slane %v1944_v38, 4  ;;  %v375_v39 = vadd.f32 %v374_v4, %v360_v1  ;;  %v388_v61 = vadd.f32 %v387_v18, %v368_v13  ;;  %v1394_v10 = vadd.f32 %v1393_v16, %v1392_v54 }
 0x111   :  { %v1933_v45 = vadd.f32 %v1932_v51, %v1931_v32  ;;  %v365_v11 = vmul.f32 %v4407_v47, %v2737_v57  ;;  %v371_v33 = vmul.f32 %v4413_v50, %v2733_v56  ;;  %v372_v31 = vmul.f32 %v4419_v52, %v2736_v46  ;;  %v3275_v47 = vld [vmem:[%s5712_s1 + $0x2b0] sm:$0xff]   ;;  %v4916_v32 = vld [vmem:[%s5711_s0 + $0x148] sm:$0xff] }
 0x112   :  { %v1946_v34 = vadd.f32 %v1945_v44, %v1944_v38  ;;  %v376_v42 = vadd.f32 %v375_v39, %v361_v55  ;;  %v389_v20 = vadd.f32 %v388_v61, %v369_v62  ;;  %v373_v5 = vmul.f32 %v4428_v21, %v2737_v57  ;;  %v3276_v21 = vld [vmem:[%s5712_s1 + $0x2b8] sm:$0xff]  }
 0x113   :  { %v1934_v28 = vrot.slane %v1933_v45, 2  ;;  %v2868_v7 = vunpack.c.l.bf16 %v3273_v17  ;;  %v2869_v48 = vunpack.c.h.bf16 %v3273_v17  ;;  %v1395_v54 = vadd.f32 %v1381_v58, %v839_v59  ;;  %v4903_v59 = vld [vmem:[%s5711_s0 + $0x40] sm:$0xff] }
 0x114   :  { %v1947_v50 = vrot.slane %v1946_v34, 2  ;;  %v377_v12 = vadd.f32 %v376_v42, %v362_v0  ;;  %v390_v30 = vadd.f32 %v389_v20, %v370_v9  ;;  %v1396_v52 = vadd.f32 %v1394_v10, %v840_v19  ;;  %v4909_v19 = vld [vmem:[%s5711_s0 + $0x48] sm:$0xff] }
 0x115   :  { %v1935_v6 = vadd.f32 %v1934_v28, %v1933_v45  ;;  %v2872_v2 = vunpack.c.l.bf16 %v3274_v29  ;;  %v2873_v27 = vunpack.c.h.bf16 %v3274_v29  ;;  %v2876_v56 = vunpack.c.l.bf16 %v3275_v47  ;;  %v4938_v28 = vld [vmem:[%s5711_s0 + $0x68] sm:$0xff] }
 0x116   :  { %v1948_v40 = vadd.f32 %v1947_v50, %v1946_v34  ;;  %v378_v22 = vadd.f32 %v377_v12, %v363_v49  ;;  %v391_v53 = vadd.f32 %v390_v30, %v371_v33  ;;  %v917_v57 = vmul.f32 %v4903_v59, %v2868_v7  ;;  %v3310_v30 = vld [vmem:[%s5712_s1 + $0x2c8] sm:$0xff]  }
 0x117   :  { %v1936_v46 = vrot.slane %v1935_v6, 1  ;;  %v918_v24 = vmul.f32 %v4909_v19, %v2869_v48  ;;  %v925_v43 = vmul.f32 %v4447_v3, %v2868_v7  ;;  %v926_v55 = vmul.f32 %v4916_v32, %v2869_v48  ;;  %v4923_v3 = vld [vmem:[%s5711_s0 + $0x150] sm:$0xff] }
 0x118   :  { %v1949_v1 = vrot.slane %v1948_v40, 1  ;;  %v379_v13 = vadd.f32 %v378_v22, %v364_v60  ;;  %v392_v16 = vadd.f32 %v391_v53, %v372_v31  ;;  %v2877_v38 = vunpack.c.h.bf16 %v3275_v47  ;;  %v3312_v53 = vld [vmem:[%s5712_s1 + $0x2d8] sm:$0xff]  }
 0x119   :  { %v1937_v0 = vadd.f32 %v1936_v46, %v1935_v6  ;;  %v2880_v62 = vunpack.c.l.bf16 %v3276_v21  ;;  %v919_v4 = vmul.f32 %v4455_v63, %v2872_v2  ;;  %v927_v60 = vmul.f32 %v4923_v3, %v2872_v2  ;;  %v6106_v6 = vld [vmem:[#allocation38_spill] sm:$0xff] }
 0x11a   :  { %v1950_v18 = vadd.f32 %v1949_v1, %v1948_v40  ;;  %v380_v51 = vadd.f32 %v379_v13, %v365_v11  ;;  %v393_v49 = vadd.f32 %v392_v16, %v373_v5  ;;  %v920_v58 = vmul.f32 %v4462_v41, %v2873_v27  ;;  %v3309_v41 = vld [vmem:[%s5712_s1 + $0x2c0] sm:$0xff]  }
 0x11b   :  { %v1951_v9 = vadd.f32 %v1937_v0, %v1395_v54  ;;  %v928_v44 = vmul.f32 %v4468_v35, %v2873_v27  ;;  %v933_v39 = vadd.f32 %v918_v24, %v917_v57  ;;  %v946_v63 = vadd.f32 %v926_v55, %v925_v43  ;;  %v6105_v54 = vld [vmem:[#allocation35_spill] sm:$0xff] }
 0x11c   :  { %v1952_v61 = vadd.f32 %v1950_v18, %v1396_v52  ;;  %v381_v17 = vrot.slane %v380_v51, 4  ;;  %v394_v10 = vrot.slane %v393_v49, 4  ;;  %v2881_v45 = vunpack.c.h.bf16 %v3276_v21  ;;  %v3311_v52 = vld [vmem:[%s5712_s1 + $0x2d0] sm:$0xff]   ;;  %v4962_v57 = vld [vmem:[%s5711_s0 + $0x178] sm:$0xff] }
 0x11d   :  { %v921_v11 = vmul.f32 %v4474_v23, %v2876_v56  ;;  %v929_v33 = vmul.f32 %v4480_v37, %v2876_v56  ;;  %v934_v34 = vadd.f32 %v933_v39, %v919_v4  ;;  %v947_v29 = vadd.f32 %v946_v63, %v927_v60  ;;  %v6104_v37 = vld [vmem:[#allocation18_spill] sm:$0xff]  ;;  %6108 = vst [vmem:[#allocation12_spill] sm:$0xff] %v4962_v57 }
 0x11e   :  { %v2278_v31 = vsel %vm2255_vm0, %v1952_v61, %v1951_v9  ;;  %v382_v42 = vadd.f32 %v381_v17, %v380_v51  ;;  %v395_v20 = vadd.f32 %v394_v10, %v393_v49  ;;  %v922_v23 = vmul.f32 %v4938_v28, %v2877_v38  ;;  %v4956_v21 = vld [vmem:[%s5711_s0 + $0x170] sm:$0xff]  ;;  %v6109_v49 = vld [vmem:[#allocation39_spill] sm:$0xff] }
 0x11f   :  { %v2280_v35 = vsel %vm2258_vm1, %v2278_v31, 0.0  ;;  %v923_v5 = vmul.f32 %v6104_v37, %v2880_v62  ;;  %v935_v7 = vadd.f32 %v934_v34, %v920_v58  ;;  %v930_v50 = vmul.f32 %v6105_v54, %v2877_v38  ;;  %6107 = vst [vmem:[#allocation43_spill] sm:$0xff] %v4956_v21  ;;  %v6111_v58 = vld [vmem:[#allocation44_spill] sm:$0xff]  ;;  %v6112_v10 = vld [vmem:[#allocation45_spill] sm:$0xff]  ;;  %v6117_v37 = vld [vmem:[#allocation14_spill] sm:$0xff] }
 0x120   :  { %2281 = vadd.xlane.f32.xlu1 %v2280_v35  ;;  %v383_v48 = vrot.slane %v382_v42, 2  ;;  %v396_v47 = vrot.slane %v395_v20, 2  ;;  %v948_v12 = vadd.f32 %v947_v29, %v928_v44  ;;  %v924_v2 = vmul.f32 %v6106_v6, %v2881_v45  ;;  %v6114_v34 = vld [vmem:[#allocation9_spill] sm:$0xff]  ;;  %v6116_v35 = vld [vmem:[#allocation11_spill] sm:$0xff]  ;;  %v6119_v6 = vld [vmem:[#allocation16_spill] sm:$0xff] }
 0x121   :  { %v936_v27 = vadd.f32 %v935_v7, %v921_v11  ;;  %v3012_v40 = vunpack.c.l.bf16 %v3309_v41  ;;  %v3013_v22 = vunpack.c.h.bf16 %v3309_v41  ;;  %v931_v46 = vmul.f32 %v4956_v21, %v2880_v62  ;;  %v6110_v62 = vld [vmem:[#allocation41_spill] sm:$0xff]  ;;  %v6113_v11 = vld [vmem:[#allocation8_spill] sm:$0xff] }
 0x122   :  { %v384_v56 = vadd.f32 %v383_v48, %v382_v42  ;;  %v932_v24 = vmul.f32 %v4962_v57, %v2881_v45  ;;  %v949_v43 = vadd.f32 %v948_v12, %v929_v33  ;;  %v3016_v13 = vunpack.c.l.bf16 %v3310_v30  ;;  %v6115_v42 = vld [vmem:[#allocation10_spill] sm:$0xff]  ;;  %v6118_v48 = vld [vmem:[#allocation13_spill] sm:$0xff]  ;;  %v3345_v12 = vld [vmem:[%s5712_s1 + $0x2e0] sm:$0xff]  }
 0x123   :  { %v937_v1 = vadd.f32 %v936_v27, %v922_v23  ;;  %v3017_v16 = vunpack.c.h.bf16 %v3310_v30  ;;  %v3020_v55 = vunpack.c.l.bf16 %v3311_v52  ;;  %v397_v0 = vadd.f32 %v396_v47, %v395_v20  ;;  %v6120_v27 = vld [vmem:[#allocation15_spill] sm:$0xff] }
 0x124   :  { %v950_v38 = vadd.f32 %v949_v43, %v930_v50  ;;  %v3021_v4 = vunpack.c.h.bf16 %v3311_v52  ;;  %v3024_v18 = vunpack.c.l.bf16 %v3312_v53  ;;  %v1473_v60 = vmul.f32 %v6109_v49, %v3012_v40 }
 0x125   :  { %v938_v51 = vadd.f32 %v937_v1, %v923_v5  ;;  %v1474_v9 = vmul.f32 %v6110_v62, %v3013_v22  ;;  %v1481_v44 = vmul.f32 %v6111_v58, %v3012_v40  ;;  %v385_v39 = vrot.slane %v384_v56, 1  ;;  %v3346_v1 = vld [vmem:[%s5712_s1 + $0x2e8] sm:$0xff]   ;;  %v3348_v58 = vld [vmem:[%s5712_s1 + $0x2f8] sm:$0xff]  }
 0x126   :  { %v951_v61 = vadd.f32 %v950_v38, %v931_v46  ;;  %v3025_v17 = vunpack.c.h.bf16 %v3312_v53  ;;  %v1482_v63 = vmul.f32 %v6112_v10, %v3013_v22  ;;  %v1475_v33 = vmul.f32 %v6113_v11, %v3016_v13  ;;  %v6121_v53 = vld [vmem:[#allocation19_spill] sm:$0xff]  ;;  %v6122_v38 = vld [vmem:[#allocation20_spill] sm:$0xff] }
 0x127   :  { %v939_v45 = vadd.f32 %v938_v51, %v924_v2  ;;  %v1476_v31 = vmul.f32 %v6114_v34, %v3017_v16  ;;  %v1483_v20 = vmul.f32 %v6115_v42, %v3016_v13  ;;  %v398_v29 = vrot.slane %v397_v0, 1 }
 0x128   :  { %v952_v41 = vadd.f32 %v951_v61, %v932_v24  ;;  %v1477_v23 = vmul.f32 %v6116_v35, %v3020_v55  ;;  %v1478_v5 = vmul.f32 %v6117_v37, %v3021_v4  ;;  %v1484_v47 = vmul.f32 %v6118_v48, %v3017_v16  ;;  %v6124_v61 = vld [vmem:[#allocation22_spill] sm:$0xff]  ;;  %v6125_v35 = vld [vmem:[#allocation23_spill] sm:$0xff] }
 0x129   :  { %v940_v7 = vrot.slane %v939_v45, 4  ;;  %v1489_v54 = vadd.f32 %v1474_v9, %v1473_v60  ;;  %v1502_v50 = vadd.f32 %v1482_v63, %v1481_v44  ;;  %v4978_v30 = vadd.f32 %v385_v39, %v384_v56  ;;  %v6123_v39 = vld [vmem:[#allocation21_spill] sm:$0xff] }
 0x12a   :  { %v953_v52 = vrot.slane %v952_v41, 4  ;;  %v1479_v2 = vmul.f32 %v6119_v6, %v3024_v18  ;;  %v1480_v40 = vmul.f32 %v6120_v27, %v3025_v17  ;;  %v1485_v46 = vmul.f32 %v6121_v53, %v3020_v55  ;;  %v3347_v55 = vld [vmem:[%s5712_s1 + $0x2f0] sm:$0xff]  }
 0x12b   :  { %v941_v22 = vadd.f32 %v940_v7, %v939_v45  ;;  %v1490_v24 = vadd.f32 %v1489_v54, %v1475_v33  ;;  %v1503_v43 = vadd.f32 %v1502_v50, %v1483_v20  ;;  %v4986_v13 = vadd.f32 %v398_v29, %v397_v0  ;;  %v6126_v7 = vld [vmem:[#allocation25_spill] sm:$0xff]  ;;  %v6130_v53 = vld [vmem:[#allocation26_spill] sm:$0xff] }
 0x12c   :  { %v954_v16 = vadd.f32 %v953_v52, %v952_v41  ;;  %v1486_v56 = vmul.f32 %v6122_v38, %v3021_v4  ;;  %v3156_v51 = vunpack.c.l.bf16 %v3345_v12  ;;  %v3157_v9 = vunpack.c.h.bf16 %v3345_v12  ;;  %v6129_v27 = vld [vmem:[#allocation29_spill] sm:$0xff] }
 0x12d   :  { %v942_v49 = vrot.slane %v941_v22, 2  ;;  %v1491_v60 = vadd.f32 %v1490_v24, %v1476_v31  ;;  %v1504_v62 = vadd.f32 %v1503_v43, %v1484_v47  ;;  %v1487_v0 = vmul.f32 %v6123_v39, %v3024_v18  ;;  %v6127_v18 = vld [vmem:[#allocation24_spill] sm:$0xff]  ;;  %v6131_v24 = vld [vmem:[#allocation31_spill] sm:$0xff]  ;;  %v6132_v43 = vld [vmem:[#allocation33_spill] sm:$0xff] }
 0x12e   :  { %v955_v44 = vrot.slane %v954_v16, 2  ;;  %v1488_v10 = vmul.f32 %v6124_v61, %v3025_v17  ;;  %v3160_v63 = vunpack.c.l.bf16 %v3346_v1  ;;  %v3161_v33 = vunpack.c.h.bf16 %v3346_v1  ;;  %v6128_v17 = vld [vmem:[#allocation27_spill] sm:$0xff] }
 0x12f   :  { %v943_v4 = vadd.f32 %v942_v49, %v941_v22  ;;  %v1492_v45 = vadd.f32 %v1491_v60, %v1477_v23  ;;  %v1505_v11 = vadd.f32 %v1504_v62, %v1485_v46  ;;  %v3164_v31 = vunpack.c.l.bf16 %v3347_v55  ;;  %v6133_v62 = vld [vmem:[#allocation32_spill] sm:$0xff] }
 0x130   :  { %v956_v34 = vadd.f32 %v955_v44, %v954_v16  ;;  %v3165_v42 = vunpack.c.h.bf16 %v3347_v55  ;;  %v3168_v20 = vunpack.c.l.bf16 %v3348_v58  ;;  %v2029_v37 = vmul.f32 %v6125_v35, %v3156_v51 }
 0x131   :  { %v1493_v29 = vadd.f32 %v1492_v45, %v1478_v5  ;;  %v1506_v41 = vadd.f32 %v1505_v11, %v1486_v56  ;;  %v2030_v48 = vmul.f32 %v6126_v7, %v3157_v9  ;;  %v944_v47 = vrot.slane %v943_v4, 1 }
 0x132   :  { %v3169_v54 = vunpack.c.h.bf16 %v3348_v58  ;;  %v2037_v50 = vmul.f32 %v6127_v18, %v3156_v51  ;;  %v2038_v12 = vmul.f32 %v6128_v17, %v3157_v9  ;;  %v957_v52 = vrot.slane %v956_v34, 1  ;;  %v3241_v58 = vld [vmem:[%s5712_s1 + $0x300] sm:$0xff]  }
 0x133   :  { %v1494_v23 = vadd.f32 %v1493_v29, %v1479_v2  ;;  %v1507_v6 = vadd.f32 %v1506_v41, %v1487_v0  ;;  %v2031_v22 = vmul.f32 %v6129_v27, %v3160_v63  ;;  %v2032_v46 = vmul.f32 %v6130_v53, %v3161_v33  ;;  %v5055_v27 = vld [vmem:[%s5711_s0 + $0x108] sm:$0xff] }
 0x134   :  { %v2033_v5 = vmul.f32 %v6131_v24, %v3164_v31  ;;  %v2034_v1 = vmul.f32 %v6132_v43, %v3165_v42  ;;  %v2039_v16 = vmul.f32 %v6096_v8, %v3160_v63  ;;  %v2035_v49 = vmul.f32 %v6097_v26, %v3168_v20  ;;  %v6134_v26 = vld [vmem:[#allocation40_spill] sm:$0xff] }
 0x135   :  { %v1495_v38 = vadd.f32 %v1494_v23, %v1480_v40  ;;  %v1508_v56 = vadd.f32 %v1507_v6, %v1488_v10  ;;  %v2045_v51 = vadd.f32 %v2030_v48, %v2029_v37  ;;  %v945_v60 = vadd.f32 %v944_v47, %v943_v4  ;;  %v5049_v23 = vld [vmem:[%s5711_s0 + $0x100] sm:$0xff] }
 0x136   :  { %v2036_v9 = vmul.f32 %v6133_v62, %v3169_v54  ;;  %v2040_v2 = vmul.f32 %v6099_v14, %v3161_v33  ;;  %v2058_v55 = vadd.f32 %v2038_v12, %v2037_v50  ;;  %v958_v44 = vadd.f32 %v957_v52, %v956_v34  ;;  %v3242_v33 = vld [vmem:[%s5712_s1 + $0x308] sm:$0xff]   ;;  %v5021_v34 = vld [vmem:[%s5712_s1 + $0x310] sm:$0xff]   ;;  %v5074_v62 = vld [vmem:[%s5711_s0 + $0x18] sm:$0xff] }
 0x137   :  { %v1496_v39 = vrot.slane %v1495_v38, 4  ;;  %v1509_v0 = vrot.slane %v1508_v56, 4  ;;  %v2046_v61 = vadd.f32 %v2045_v51, %v2031_v22  ;;  %v2041_v8 = vmul.f32 %v6100_v15, %v3164_v31  ;;  %v5043_v12 = vld [vmem:[%s5711_s0 + $0x8] sm:$0xff] }
 0x138   :  { %v2042_v40 = vmul.f32 %v6101_v25, %v3165_v42  ;;  %v2043_v10 = vmul.f32 %v6134_v26, %v3168_v20  ;;  %v2059_v63 = vadd.f32 %v2058_v55, %v2039_v16  ;;  %v2740_v14 = vunpack.c.l.bf16 %v3241_v58  ;;  %v5062_v16 = vld [vmem:[%s5711_s0 + $0x10] sm:$0xff]  ;;  %v5080_v55 = vld [vmem:[%s5711_s0 + $0x20] sm:$0xff] }
 0x139   :  { %v1497_v4 = vadd.f32 %v1496_v39, %v1495_v38  ;;  %v1510_v45 = vadd.f32 %v1509_v0, %v1508_v56  ;;  %v2047_v11 = vadd.f32 %v2046_v61, %v2032_v46  ;;  %v5024_v15 = vadd.f32 %v945_v60, %v4978_v30  ;;  %v3244_v30 = vld [vmem:[%s5712_s1 + $0x318] sm:$0xff]   ;;  %v5068_v56 = vld [vmem:[%s5711_s0 + $0x110] sm:$0xff] }
 0x13a   :  { %v2044_v25 = vmul.f32 %v6103_v36, %v3169_v54  ;;  %v2060_v31 = vadd.f32 %v2059_v63, %v2040_v2  ;;  %v2741_v42 = vunpack.c.h.bf16 %v3241_v58  ;;  %v5028_v20 = vadd.f32 %v958_v44, %v4986_v13  ;;  %v5037_v13 = vld [vmem:[%s5711_s0] sm:$0xff]  ;;  %v5086_v39 = vld [vmem:[%s5711_s0 + $0x118] sm:$0xff] }
 0x13b   :  { %v1498_v29 = vrot.slane %v1497_v4, 2  ;;  %v1511_v41 = vrot.slane %v1510_v45, 2  ;;  %v2048_v35 = vadd.f32 %v2047_v11, %v2033_v5  ;;  %v2744_v7 = vunpack.c.l.bf16 %v3242_v33 }
 0x13c   :  { %v2061_v37 = vadd.f32 %v2060_v31, %v2041_v8  ;;  %v2745_v48 = vunpack.c.h.bf16 %v3242_v33  ;;  %v2748_v47 = vunpack.c.l.bf16 %v5021_v34  ;;  %v419_v54 = vmul.f32 %v5037_v13, %v2740_v14 }
 0x13d   :  { %v1499_v18 = vadd.f32 %v1498_v29, %v1497_v4  ;;  %v1512_v50 = vadd.f32 %v1511_v41, %v1510_v45  ;;  %v2049_v36 = vadd.f32 %v2048_v35, %v2034_v1  ;;  %v420_v52 = vmul.f32 %v5043_v12, %v2741_v42  ;;  %v5104_v4 = vld [vmem:[%s5711_s0 + $0x120] sm:$0xff]  ;;  %v5113_v29 = vld [vmem:[%s5711_s0 + $0x38] sm:$0xff]  ;;  %v5119_v35 = vld [vmem:[%s5711_s0 + $0x128] sm:$0xff] }
 0x13e   :  { %v2062_v17 = vadd.f32 %v2061_v37, %v2042_v40  ;;  %v427_v6 = vmul.f32 %v5049_v23, %v2740_v14  ;;  %v428_v22 = vmul.f32 %v5055_v27, %v2741_v42  ;;  %v2749_v46 = vunpack.c.h.bf16 %v5021_v34  ;;  %v5092_v40 = vld [vmem:[%s5711_s0 + $0x28] sm:$0xff]  ;;  %6135 = vst [vmem:[#allocation17_spill] sm:$0xff] %v5104_v4 }
 0x13f   :  { %v2050_v53 = vadd.f32 %v2049_v36, %v2035_v49  ;;  %v2752_v24 = vunpack.c.l.bf16 %v3244_v30  ;;  %v2753_v5 = vunpack.c.h.bf16 %v3244_v30  ;;  %v1500_v43 = vrot.slane %v1499_v18, 1 }
 0x140   :  { %v2063_v1 = vadd.f32 %v2062_v17, %v2043_v10  ;;  %v421_v38 = vmul.f32 %v5062_v16, %v2744_v7  ;;  %v429_v49 = vmul.f32 %v5068_v56, %v2744_v7  ;;  %v1513_v51 = vrot.slane %v1512_v50, 1  ;;  %v5098_v10 = vld [vmem:[%s5711_s0 + $0x30] sm:$0xff] }
 0x141   :  { %v2051_v60 = vadd.f32 %v2050_v53, %v2036_v9  ;;  %v422_v2 = vmul.f32 %v5074_v62, %v2745_v48  ;;  %v423_v58 = vmul.f32 %v5080_v55, %v2748_v47  ;;  %v430_v9 = vmul.f32 %v5086_v39, %v2745_v48  ;;  %v5125_v48 = vld [vmem:[%s5711_s0 + $0x130] sm:$0xff] }
 0x142   :  { %v2064_v44 = vadd.f32 %v2063_v1, %v2044_v25  ;;  %v435_v0 = vadd.f32 %v420_v52, %v419_v54  ;;  %v448_v61 = vadd.f32 %v428_v22, %v427_v6  ;;  %v424_v26 = vmul.f32 %v5092_v40, %v2749_v46  ;;  %v3277_v25 = vld [vmem:[%s5712_s1 + $0x320] sm:$0xff]   ;;  %v5134_v54 = vld [vmem:[%s5711_s0 + $0x138] sm:$0xff]  ;;  %v3279_v22 = vld [vmem:[%s5712_s1 + $0x330] sm:$0xff]  }
 0x143   :  { %v2052_v8 = vrot.slane %v2051_v60, 4  ;;  %v425_v63 = vmul.f32 %v5098_v10, %v2752_v24  ;;  %v431_v45 = vmul.f32 %v5104_v4, %v2748_v47  ;;  %v1501_v11 = vadd.f32 %v1500_v43, %v1499_v18 }
 0x144   :  { %v2065_v14 = vrot.slane %v2064_v44, 4  ;;  %v436_v33 = vadd.f32 %v435_v0, %v421_v38  ;;  %v449_v34 = vadd.f32 %v448_v61, %v429_v49  ;;  %v1514_v31 = vadd.f32 %v1513_v51, %v1512_v50  ;;  %v3278_v50 = vld [vmem:[%s5712_s1 + $0x328] sm:$0xff]  }
 0x145   :  { %v2053_v42 = vadd.f32 %v2052_v8, %v2051_v60  ;;  %v426_v41 = vmul.f32 %v5113_v29, %v2753_v5  ;;  %v432_v37 = vmul.f32 %v5119_v35, %v2749_v46  ;;  %v433_v47 = vmul.f32 %v5125_v48, %v2752_v24 }
 0x146   :  { %v2066_v7 = vadd.f32 %v2065_v14, %v2064_v44  ;;  %v437_v30 = vadd.f32 %v436_v33, %v422_v2  ;;  %v450_v18 = vadd.f32 %v449_v34, %v430_v9  ;;  %v434_v17 = vmul.f32 %v5134_v54, %v2753_v5  ;;  %v3280_v9 = vld [vmem:[%s5712_s1 + $0x338] sm:$0xff]  }
 0x147   :  { %v2054_v36 = vrot.slane %v2053_v42, 2  ;;  %v2884_v52 = vunpack.c.l.bf16 %v3277_v25  ;;  %v2885_v6 = vunpack.c.h.bf16 %v3277_v25  ;;  %v1515_v53 = vadd.f32 %v1501_v11, %v5024_v15  ;;  %v5157_v25 = vld [vmem:[%s5711_s0 + $0x50] sm:$0xff] }
 0x148   :  { %v2067_v46 = vrot.slane %v2066_v7, 2  ;;  %v438_v24 = vadd.f32 %v437_v30, %v423_v58  ;;  %v451_v43 = vadd.f32 %v450_v18, %v431_v45  ;;  %v1516_v1 = vadd.f32 %v1514_v31, %v5028_v20  ;;  %v5150_v20 = vld [vmem:[%s5711_s0 + $0x140] sm:$0xff] }
 0x149   :  { %v2055_v38 = vadd.f32 %v2054_v36, %v2053_v42  ;;  %v2888_v49 = vunpack.c.l.bf16 %v3278_v50  ;;  %v2889_v51 = vunpack.c.h.bf16 %v3278_v50  ;;  %v2892_v5 = vunpack.c.l.bf16 %v3279_v22  ;;  %v5170_v50 = vld [vmem:[%s5711_s0 + $0x158] sm:$0xff] }
 0x14a   :  { %v2068_v60 = vadd.f32 %v2067_v46, %v2066_v7  ;;  %v439_v2 = vadd.f32 %v438_v24, %v424_v26  ;;  %v452_v44 = vadd.f32 %v451_v43, %v432_v37  ;;  %v977_v61 = vmul.f32 %v4903_v59, %v2884_v52  ;;  %v5176_v46 = vld [vmem:[%s5711_s0 + $0x60] sm:$0xff] }
 0x14b   :  { %v2056_v0 = vrot.slane %v2055_v38, 1  ;;  %v978_v15 = vmul.f32 %v4909_v19, %v2885_v6  ;;  %v985_v58 = vmul.f32 %v5150_v20, %v2884_v52  ;;  %v986_v11 = vmul.f32 %v4916_v32, %v2885_v6  ;;  %v5182_v43 = vld [vmem:[%s5711_s0 + $0x160] sm:$0xff] }
 0x14c   :  { %v2069_v8 = vrot.slane %v2068_v60, 1  ;;  %v440_v26 = vadd.f32 %v439_v2, %v425_v63  ;;  %v453_v45 = vadd.f32 %v452_v44, %v433_v47  ;;  %v2893_v33 = vunpack.c.h.bf16 %v3279_v22  ;;  %v5164_v63 = vld [vmem:[%s5711_s0 + $0x58] sm:$0xff]  ;;  %v3313_v44 = vld [vmem:[%s5712_s1 + $0x340] sm:$0xff]  }
 0x14d   :  { %v2057_v14 = vadd.f32 %v2056_v0, %v2055_v38  ;;  %v2896_v34 = vunpack.c.l.bf16 %v3280_v9  ;;  %v979_v31 = vmul.f32 %v5157_v25, %v2888_v49  ;;  %v987_v30 = vmul.f32 %v4923_v3, %v2888_v49 }
 0x14e   :  { %v2070_v42 = vadd.f32 %v2069_v8, %v2068_v60  ;;  %v441_v37 = vadd.f32 %v440_v26, %v426_v41  ;;  %v454_v7 = vadd.f32 %v453_v45, %v434_v17  ;;  %v980_v47 = vmul.f32 %v5164_v63, %v2889_v51  ;;  %v3314_v45 = vld [vmem:[%s5712_s1 + $0x348] sm:$0xff]  }
 0x14f   :  { %v2071_v18 = vadd.f32 %v2057_v14, %v1515_v53  ;;  %v988_v36 = vmul.f32 %v5170_v50, %v2889_v51  ;;  %v993_v52 = vadd.f32 %v978_v15, %v977_v61  ;;  %v1006_v22 = vadd.f32 %v986_v11, %v985_v58  ;;  %v5203_v11 = vld [vmem:[%s5712_s1 + $0x350] sm:$0xff]  }
 0x150   :  { %v2072_v41 = vadd.f32 %v2070_v42, %v1516_v1  ;;  %v442_v17 = vrot.slane %v441_v37, 4  ;;  %v455_v6 = vrot.slane %v454_v7, 4  ;;  %v2897_v53 = vunpack.c.h.bf16 %v3280_v9  ;;  %v5208_v14 = vld [vmem:[%s5711_s0 + $0x70] sm:$0xff] }
 0x151   :  { %v981_v24 = vmul.f32 %v5176_v46, %v2892_v5  ;;  %v989_v38 = vmul.f32 %v5182_v43, %v2892_v5  ;;  %v994_v49 = vadd.f32 %v993_v52, %v979_v31  ;;  %v1007_v2 = vadd.f32 %v1006_v22, %v987_v30  ;;  %v5194_v5 = vld [vmem:[%s5711_s0 + $0x168] sm:$0xff]  ;;  %v5223_v22 = vld [vmem:[%s5712_s1 + $0x358] sm:$0xff]  }
 0x152   :  { %v2292_v1 = vsel %vm2255_vm0, %v2072_v41, %v2071_v18  ;;  %v443_v51 = vadd.f32 %v442_v17, %v441_v37  ;;  %v456_v60 = vadd.f32 %v455_v6, %v454_v7  ;;  %v982_v0 = vmul.f32 %v4938_v28, %v2893_v33  ;;  %v5214_v7 = vld [vmem:[%s5711_s0 + $0x78] sm:$0xff] }
 0x153   :  { %v2294_v9 = vsel %vm2258_vm1, %v2292_v1, 0.0  ;;  %v995_v61 = vadd.f32 %v994_v49, %v980_v47  ;;  %v990_v8 = vmul.f32 %v5194_v5, %v2893_v33  ;;  %v1008_v26 = vadd.f32 %v1007_v2, %v988_v36  ;;  %6136 = vst [vmem:[#allocation28_spill] sm:$0xff] %v5214_v7 }
 0x154   :  { %2295 = vadd.xlane.f32.xlu2 %v2294_v9  ;;  %v444_v15 = vrot.slane %v443_v51, 2  ;;  %v457_v58 = vrot.slane %v456_v60, 2  ;;  %v983_v31 = vmul.f32 %v5208_v14, %v2896_v34  ;;  %v3028_v37 = vunpack.c.l.bf16 %v3313_v44 }
 0x155   :  { %v996_v42 = vadd.f32 %v995_v61, %v981_v24  ;;  %v3029_v33 = vunpack.c.h.bf16 %v3313_v44  ;;  %v984_v30 = vmul.f32 %v5214_v7, %v2897_v53  ;;  %v991_v18 = vmul.f32 %v4956_v21, %v2896_v34  ;;  %v5229_v34 = vld [vmem:[%s5711_s0 + $0x80] sm:$0xff] }
 0x156   :  { %v992_v47 = vmul.f32 %v4962_v57, %v2897_v53  ;;  %v1009_v36 = vadd.f32 %v1008_v26, %v989_v38  ;;  %v3032_v41 = vunpack.c.l.bf16 %v3314_v45  ;;  %v3033_v17 = vunpack.c.h.bf16 %v3314_v45  ;;  %6137 = vst [vmem:[#allocation30_spill] sm:$0xff] %v5229_v34  ;;  %v5235_v38 = vld [vmem:[%s5711_s0 + $0x88] sm:$0xff]  ;;  %v5255_v45 = vld [vmem:[%s5711_s0 + $0x90] sm:$0xff] }
 0x157   :  { %v997_v52 = vadd.f32 %v996_v42, %v982_v0  ;;  %v3036_v6 = vunpack.c.l.bf16 %v5203_v11  ;;  %v445_v24 = vadd.f32 %v444_v15, %v443_v51  ;;  %v458_v49 = vadd.f32 %v457_v58, %v456_v60  ;;  %6138 = vst [vmem:[#allocation34_spill] sm:$0xff] %v5235_v38  ;;  %v5241_v51 = vld [vmem:[%s5711_s0 + $0x180] sm:$0xff]  ;;  %v5249_v58 = vld [vmem:[%s5711_s0 + $0x188] sm:$0xff] }
 0x158   :  { %v1010_v1 = vadd.f32 %v1009_v36, %v990_v8  ;;  %v3037_v2 = vunpack.c.h.bf16 %v5203_v11  ;;  %v1533_v53 = vmul.f32 %v5229_v34, %v3028_v37  ;;  %v1534_v9 = vmul.f32 %v5235_v38, %v3029_v33  ;;  %6139 = vst [vmem:[#allocation36_spill] sm:$0xff] %v5241_v51  ;;  %v5314_v34 = vld [vmem:[%s5711_s0 + $0x1a8] sm:$0xff] }
 0x159   :  { %v998_v44 = vadd.f32 %v997_v52, %v983_v31  ;;  %v1541_v60 = vmul.f32 %v5241_v51, %v3028_v37  ;;  %v3040_v61 = vunpack.c.l.bf16 %v5223_v22  ;;  %v3041_v15 = vunpack.c.h.bf16 %v5223_v22  ;;  %6140 = vst [vmem:[#allocation37_spill] sm:$0xff] %v5249_v58  ;;  %v5261_v31 = vld [vmem:[%s5711_s0 + $0x98] sm:$0xff]  ;;  %v5267_v37 = vld [vmem:[%s5711_s0 + $0x190] sm:$0xff]  ;;  %v5273_v52 = vld [vmem:[%s5711_s0 + $0xa0] sm:$0xff] }
 0x15a   :  { %v1011_v0 = vadd.f32 %v1010_v1, %v991_v18  ;;  %v1542_v8 = vmul.f32 %v5249_v58, %v3029_v33  ;;  %6141 = vst [vmem:[#allocation42_spill] sm:$0xff] %v5255_v45  ;;  %v1535_v11 = vmul.f32 %v5255_v45, %v3032_v41  ;;  %v1536_v42 = vmul.f32 %v5261_v31, %v3033_v17  ;;  %v5294_v58 = vld [vmem:[%s5711_s0 + $0xb0] sm:$0xff] }
 0x15b   :  { %v999_v26 = vadd.f32 %v998_v44, %v984_v30  ;;  %6142 = vst [vmem:[#allocation18_spill] sm:$0xff] %v5261_v31  ;;  %v1543_v33 = vmul.f32 %v5267_v37, %v3032_v41  ;;  %v446_v30 = vrot.slane %v445_v24, 1  ;;  %v459_v18 = vrot.slane %v458_v49, 1  ;;  %v5279_v44 = vld [vmem:[%s5711_s0 + $0x198] sm:$0xff] }
 0x15c   :  { %6143 = vst [vmem:[#allocation35_spill] sm:$0xff] %v5267_v37  ;;  %v1012_v36 = vadd.f32 %v1011_v0, %v992_v47  ;;  %v1537_v22 = vmul.f32 %v5273_v52, %v3036_v6  ;;  %v1544_v31 = vmul.f32 %v5279_v44, %v3033_v17  ;;  %v1549_v45 = vadd.f32 %v1534_v9, %v1533_v53  ;;  %v3349_v47 = vld [vmem:[%s5712_s1 + $0x360] sm:$0xff]   ;;  %v5288_v37 = vld [vmem:[%s5711_s0 + $0xa8] sm:$0xff]  ;;  %v5300_v53 = vld [vmem:[%s5711_s0 + $0xb8] sm:$0xff] }
 0x15d   :  { %6144 = vst [vmem:[#allocation38_spill] sm:$0xff] %v5273_v52  ;;  %v1000_v1 = vrot.slane %v999_v26, 4  ;;  %v1562_v41 = vadd.f32 %v1542_v8, %v1541_v60  ;;  %v1538_v52 = vmul.f32 %v5288_v37, %v3037_v2  ;;  %v1539_v17 = vmul.f32 %v5294_v58, %v3040_v61  ;;  %v5306_v8 = vld [vmem:[%s5711_s0 + $0x1a0] sm:$0xff] }
 0x15e   :  { %6145 = vst [vmem:[#allocation39_spill] sm:$0xff] %v5279_v44  ;;  %v1013_v0 = vrot.slane %v1012_v36, 4  ;;  %v1540_v9 = vmul.f32 %v5300_v53, %v3041_v15  ;;  %v1550_v44 = vadd.f32 %v1549_v45, %v1535_v11  ;;  %v5309_v38 = vadd.f32 %v446_v30, %v445_v24  ;;  %v3351_v24 = vld [vmem:[%s5712_s1 + $0x370] sm:$0xff]  }
 0x15f   :  { %6146 = vst [vmem:[#allocation41_spill] sm:$0xff] %v5288_v37  ;;  %v1001_v60 = vadd.f32 %v1000_v1, %v999_v26  ;;  %v1545_v37 = vmul.f32 %v5306_v8, %v3036_v6  ;;  %v1563_v51 = vadd.f32 %v1562_v41, %v1543_v33  ;;  %v3172_v26 = vunpack.c.l.bf16 %v3349_v47  ;;  %v3350_v1 = vld [vmem:[%s5712_s1 + $0x368] sm:$0xff]  }
 0x160   :  { %6147 = vst [vmem:[#allocation44_spill] sm:$0xff] %v5294_v58  ;;  %v1014_v58 = vadd.f32 %v1013_v0, %v1012_v36  ;;  %v1551_v7 = vadd.f32 %v1550_v44, %v1536_v42  ;;  %v3173_v45 = vunpack.c.h.bf16 %v3349_v47  ;;  %v5323_v11 = vadd.f32 %v459_v18, %v458_v49  ;;  %v5334_v42 = vld [vmem:[%s5711_s0 + $0x1b8] sm:$0xff] }
 0x161   :  { %6148 = vst [vmem:[#allocation45_spill] sm:$0xff] %v5300_v53  ;;  %v1546_v53 = vmul.f32 %v5314_v34, %v3037_v2  ;;  %v1002_v57 = vrot.slane %v1001_v60, 2  ;;  %v1564_v6 = vadd.f32 %v1563_v51, %v1544_v31  ;;  %v5328_v2 = vld [vmem:[%s5711_s0 + $0x1b0] sm:$0xff]  ;;  %v1548_v51 = vmul.f32 %v5334_v42, %v3041_v15  ;;  %v3352_v18 = vld [vmem:[%s5712_s1 + $0x378] sm:$0xff]  }
 0x162   :  { %6149 = vst [vmem:[#allocation8_spill] sm:$0xff] %v5306_v8  ;;  %v1015_v33 = vrot.slane %v1014_v58, 2  ;;  %v1547_v30 = vmul.f32 %v5328_v2, %v3040_v61  ;;  %v1552_v36 = vadd.f32 %v1551_v7, %v1537_v22  ;;  %v3176_v49 = vunpack.c.l.bf16 %v3350_v1  ;;  %v5343_v8 = vld [vmem:[%s5711_s0 + $0xc0] sm:$0xff]  ;;  %v5349_v7 = vld [vmem:[%s5711_s0 + $0xc8] sm:$0xff] }
 0x163   :  { %6150 = vst [vmem:[#allocation9_spill] sm:$0xff] %v5314_v34  ;;  %v1003_v31 = vadd.f32 %v1002_v57, %v1001_v60  ;;  %v1565_v44 = vadd.f32 %v1564_v6, %v1545_v37  ;;  %v3177_v47 = vunpack.c.h.bf16 %v3350_v1  ;;  %v3180_v0 = vunpack.c.l.bf16 %v3351_v24 }
 0x164   :  { %6151 = vst [vmem:[#allocation10_spill] sm:$0xff] %v5328_v2  ;;  %v1016_v41 = vadd.f32 %v1015_v33, %v1014_v58  ;;  %v3181_v34 = vunpack.c.h.bf16 %v3351_v24  ;;  %v1553_v61 = vadd.f32 %v1552_v36, %v1538_v52  ;;  %v2089_v57 = vmul.f32 %v5343_v8, %v3172_v26  ;;  %v5355_v52 = vld [vmem:[%s5711_s0 + $0x1c0] sm:$0xff]  ;;  %v5367_v33 = vld [vmem:[%s5711_s0 + $0xd0] sm:$0xff] }
 0x165   :  { %6152 = vst [vmem:[#allocation11_spill] sm:$0xff] %v5334_v42  ;;  %v1566_v2 = vadd.f32 %v1565_v44, %v1546_v53  ;;  %v2090_v15 = vmul.f32 %v5349_v7, %v3173_v45  ;;  %v3184_v58 = vunpack.c.l.bf16 %v3352_v18  ;;  %v3185_v37 = vunpack.c.h.bf16 %v3352_v18  ;;  %v5361_v53 = vld [vmem:[%s5711_s0 + $0x1c8] sm:$0xff] }
 0x166   :  { %6153 = vst [vmem:[#allocation14_spill] sm:$0xff] %v5343_v8  ;;  %v2097_v22 = vmul.f32 %v5355_v52, %v3172_v26  ;;  %v2098_v60 = vmul.f32 %v5361_v53, %v3173_v45  ;;  %v1004_v1 = vrot.slane %v1003_v31, 1  ;;  %v1554_v6 = vadd.f32 %v1553_v61, %v1539_v17  ;;  %v5373_v26 = vld [vmem:[%s5711_s0 + $0xd8] sm:$0xff]  ;;  %v5379_v17 = vld [vmem:[%s5711_s0 + $0xe0] sm:$0xff] }
 0x167   :  { %6154 = vst [vmem:[#allocation13_spill] sm:$0xff] %v5349_v7  ;;  %v1567_v24 = vadd.f32 %v1566_v2, %v1547_v30  ;;  %v2091_v36 = vmul.f32 %v5367_v33, %v3176_v49  ;;  %v1017_v44 = vrot.slane %v1016_v41, 1  ;;  %v2092_v18 = vmul.f32 %v5373_v26, %v3177_v47  ;;  %v5385_v2 = vld [vmem:[%s5711_s0 + $0x1d0] sm:$0xff] }
 0x168   :  { %6155 = vst [vmem:[#allocation16_spill] sm:$0xff] %v5355_v52  ;;  %v2093_v45 = vmul.f32 %v5379_v17, %v3180_v0  ;;  %v2099_v30 = vmul.f32 %v5385_v2, %v3176_v49  ;;  %v1555_v61 = vadd.f32 %v1554_v6, %v1540_v9  ;;  %v2105_v52 = vadd.f32 %v2090_v15, %v2089_v57  ;;  %v5403_v9 = vld [vmem:[%s5711_s0 + $0xf8] sm:$0xff]  ;;  %v3245_v6 = vld [vmem:[%s5712_s1 + $0x380] sm:$0xff]  }
 0x169   :  { %6156 = vst [vmem:[#allocation15_spill] sm:$0xff] %v5361_v53  ;;  %v5409_v49 = vld [vmem:[%s5711_s0 + $0x1d8] sm:$0xff]  ;;  %v2118_v15 = vadd.f32 %v2098_v60, %v2097_v22  ;;  %v1018_v8 = vadd.f32 %v1017_v44, %v1016_v41  ;;  %v3246_v41 = vld [vmem:[%s5712_s1 + $0x388] sm:$0xff]  }
 0x16a   :  { %6157 = vst [vmem:[#allocation19_spill] sm:$0xff] %v5367_v33  ;;  %v1568_v33 = vadd.f32 %v1567_v24, %v1548_v51  ;;  %v2096_v51 = vmul.f32 %v5403_v9, %v3185_v37  ;;  %v2100_v57 = vmul.f32 %v5409_v49, %v3177_v47  ;;  %v1005_v24 = vadd.f32 %v1004_v1, %v1003_v31  ;;  %v5424_v47 = vld [vmem:[%s5711_s0 + $0x1e8] sm:$0xff] }
 0x16b   :  { %6158 = vst [vmem:[#allocation20_spill] sm:$0xff] %v5373_v26  ;;  %v5391_v26 = vld [vmem:[%s5711_s0 + $0xe8] sm:$0xff]  ;;  %v2102_v22 = vmul.f32 %v5424_v47, %v3181_v34  ;;  %v2119_v60 = vadd.f32 %v2118_v15, %v2099_v30 }
 0x16c   :  { %6159 = vst [vmem:[#allocation21_spill] sm:$0xff] %v5379_v17  ;;  %v2094_v53 = vmul.f32 %v5391_v26, %v3181_v34  ;;  %v5397_v17 = vld [vmem:[%s5711_s0 + $0xf0] sm:$0xff]  ;;  %v5439_v34 = vld [vmem:[%s5711_s0 + $0x1f8] sm:$0xff] }
 0x16d   :  { %6160 = vst [vmem:[#allocation22_spill] sm:$0xff] %v5385_v2  ;;  %v2095_v7 = vmul.f32 %v5397_v17, %v3184_v58  ;;  %v2106_v2 = vadd.f32 %v2105_v52, %v2091_v36  ;;  %v2756_v52 = vunpack.c.l.bf16 %v3245_v6  ;;  %v2120_v44 = vadd.f32 %v2119_v60, %v2100_v57 }
 0x16e   :  { %6161 = vst [vmem:[#allocation23_spill] sm:$0xff] %v5391_v26  ;;  %v1569_v26 = vrot.slane %v1568_v33, 4 }
 0x16f   :  { %6162 = vst [vmem:[#allocation25_spill] sm:$0xff] %v5397_v17  ;;  %v1556_v17 = vrot.slane %v1555_v61, 4 }
 0x170   :  { %6163 = vst [vmem:[#allocation24_spill] sm:$0xff] %v5403_v9  ;;  %v5418_v9 = vld [vmem:[%s5711_s0 + $0x1e0] sm:$0xff]  ;;  %v1570_v1 = vadd.f32 %v1569_v26, %v1568_v33  ;;  %v2104_v33 = vmul.f32 %v5439_v34, %v3185_v37  ;;  %v2757_v26 = vunpack.c.h.bf16 %v3245_v6  ;;  %v3248_v37 = vld [vmem:[%s5712_s1 + $0x398] sm:$0xff]  }
 0x171   :  { %6164 = vst [vmem:[#allocation27_spill] sm:$0xff] %v5409_v49  ;;  %v2101_v42 = vmul.f32 %v5418_v9, %v3180_v0  ;;  %v1557_v31 = vadd.f32 %v1556_v17, %v1555_v61  ;;  %v2107_v49 = vadd.f32 %v2106_v2, %v2092_v18  ;;  %v5433_v0 = vld [vmem:[%s5711_s0 + $0x1f0] sm:$0xff]  ;;  %v1019_v18 = vadd.f32 %v1005_v24, %v5309_v38 }
 0x172   :  { %6165 = vst [vmem:[#allocation29_spill] sm:$0xff] %v5418_v9  ;;  %v2103_v36 = vmul.f32 %v5433_v0, %v3184_v58  ;;  %v1571_v2 = vrot.slane %v1570_v1, 2  ;;  %v1020_v61 = vadd.f32 %v1018_v8, %v5323_v11  ;;  %v2761_v9 = vunpack.c.h.bf16 %v3246_v41  ;;  %v3247_v58 = vld [vmem:[%s5712_s1 + $0x390] sm:$0xff]  }
 0x173   :  { %6166 = vst [vmem:[#allocation26_spill] sm:$0xff] %v5424_v47  ;;  %v1558_v17 = vrot.slane %v1557_v31, 2  ;;  %v2108_v30 = vadd.f32 %v2107_v49, %v2093_v45  ;;  %v2121_v15 = vadd.f32 %v2120_v44, %v2101_v42  ;;  %v2760_v47 = vunpack.c.l.bf16 %v3246_v41 }
 0x174   :  { %6167 = vst [vmem:[#allocation31_spill] sm:$0xff] %v5433_v0  ;;  %v1572_v6 = vadd.f32 %v1571_v2, %v1570_v1  ;;  %v480_v38 = vmul.f32 %v5037_v13, %v2756_v52  ;;  %v481_v45 = vmul.f32 %v5043_v12, %v2757_v26  ;;  %v488_v8 = vmul.f32 %v5049_v23, %v2756_v52 }
 0x175   :  { %6168 = vst [vmem:[#allocation33_spill] sm:$0xff] %v5439_v34  ;;  %v1559_v57 = vadd.f32 %v1558_v17, %v1557_v31  ;;  %v2109_v60 = vadd.f32 %v2108_v30, %v2094_v53  ;;  %v2122_v24 = vadd.f32 %v2121_v15, %v2102_v22  ;;  %v489_v11 = vmul.f32 %v5055_v27, %v2757_v26 }
 0x176   :  { %v2764_v49 = vunpack.c.l.bf16 %v3247_v58  ;;  %v2765_v41 = vunpack.c.h.bf16 %v3247_v58  ;;  %v2768_v44 = vunpack.c.l.bf16 %v3248_v37  ;;  %v2769_v0 = vunpack.c.h.bf16 %v3248_v37 }
 0x177   :  { %v2110_v42 = vadd.f32 %v2109_v60, %v2095_v7  ;;  %v2123_v34 = vadd.f32 %v2122_v24, %v2103_v36  ;;  %v482_v21 = vmul.f32 %v5062_v16, %v2760_v47  ;;  %v490_v31 = vmul.f32 %v5068_v56, %v2760_v47 }
 0x178   :  { %v1560_v53 = vrot.slane %v1559_v57, 1  ;;  %v1573_v1 = vrot.slane %v1572_v6, 1  ;;  %v483_v22 = vmul.f32 %v5074_v62, %v2761_v9  ;;  %v491_v52 = vmul.f32 %v5086_v39, %v2761_v9 }
 0x179   :  { %v2111_v17 = vadd.f32 %v2110_v42, %v2096_v51  ;;  %v2124_v2 = vadd.f32 %v2123_v34, %v2104_v33  ;;  %v496_v30 = vadd.f32 %v481_v45, %v480_v38  ;;  %v509_v26 = vadd.f32 %v489_v11, %v488_v8  ;;  %v3281_v51 = vld [vmem:[%s5712_s1 + $0x3a0] sm:$0xff]  }
 0x17a   :  { %v484_v15 = vmul.f32 %v5080_v55, %v2764_v49  ;;  %v485_v36 = vmul.f32 %v5092_v40, %v2765_v41  ;;  %v486_v58 = vmul.f32 %v5098_v10, %v2768_v44  ;;  %v492_v47 = vmul.f32 %v5104_v4, %v2764_v49  ;;  %v3282_v49 = vld [vmem:[%s5712_s1 + $0x3a8] sm:$0xff]  }
 0x17b   :  { %v2112_v7 = vrot.slane %v2111_v17, 4  ;;  %v2125_v37 = vrot.slane %v2124_v2, 4  ;;  %v497_v60 = vadd.f32 %v496_v30, %v482_v21  ;;  %v510_v24 = vadd.f32 %v509_v26, %v490_v31 }
 0x17c   :  { %v1561_v34 = vadd.f32 %v1560_v53, %v1559_v57  ;;  %v1574_v9 = vadd.f32 %v1573_v1, %v1572_v6  ;;  %v487_v38 = vmul.f32 %v5113_v29, %v2769_v0  ;;  %v493_v8 = vmul.f32 %v5119_v35, %v2765_v41 }
 0x17d   :  { %v2113_v33 = vadd.f32 %v2112_v7, %v2111_v17  ;;  %v2126_v45 = vadd.f32 %v2125_v37, %v2124_v2  ;;  %v498_v11 = vadd.f32 %v497_v60, %v483_v22  ;;  %v511_v42 = vadd.f32 %v510_v24, %v491_v52  ;;  %v3283_v60 = vld [vmem:[%s5712_s1 + $0x3b0] sm:$0xff]  }
 0x17e   :  { %v494_v31 = vmul.f32 %v5125_v48, %v2768_v44  ;;  %v2900_v30 = vunpack.c.l.bf16 %v3281_v51  ;;  %v2901_v26 = vunpack.c.h.bf16 %v3281_v51  ;;  %v495_v57 = vmul.f32 %v5134_v54, %v2769_v0 }
 0x17f   :  { %v2114_v21 = vrot.slane %v2113_v33, 2  ;;  %v2127_v4 = vrot.slane %v2126_v45, 2  ;;  %v499_v6 = vadd.f32 %v498_v11, %v484_v15  ;;  %v512_v53 = vadd.f32 %v511_v42, %v492_v47 }
 0x180   :  { %v1575_v1 = vadd.f32 %v1561_v34, %v1019_v18  ;;  %v1576_v17 = vadd.f32 %v1574_v9, %v1020_v61  ;;  %v2904_v41 = vunpack.c.l.bf16 %v3282_v49  ;;  %v2905_v37 = vunpack.c.h.bf16 %v3282_v49 }
 0x181   :  { %v2115_v2 = vadd.f32 %v2114_v21, %v2113_v33  ;;  %v2128_v22 = vadd.f32 %v2127_v4, %v2126_v45  ;;  %v500_v52 = vadd.f32 %v499_v6, %v485_v36  ;;  %v513_v7 = vadd.f32 %v512_v53, %v493_v8 }
 0x182   :  { %v1037_v24 = vmul.f32 %v4903_v59, %v2900_v30  ;;  %v1038_v51 = vmul.f32 %v4909_v19, %v2901_v26  ;;  %v1045_v0 = vmul.f32 %v5150_v20, %v2900_v30  ;;  %v1046_v47 = vmul.f32 %v4916_v32, %v2901_v26  ;;  %v3284_v59 = vld [vmem:[%s5712_s1 + $0x3b8] sm:$0xff]  }
 0x183   :  { %v2116_v44 = vrot.slane %v2115_v2, 1  ;;  %v2129_v15 = vrot.slane %v2128_v22, 1  ;;  %v501_v18 = vadd.f32 %v500_v52, %v486_v58  ;;  %v514_v61 = vadd.f32 %v513_v7, %v494_v31 }
 0x184   :  { %v2908_v36 = vunpack.c.l.bf16 %v3283_v60  ;;  %v1039_v34 = vmul.f32 %v5157_v25, %v2904_v41  ;;  %v1047_v19 = vmul.f32 %v4923_v3, %v2904_v41  ;;  %v2909_v11 = vunpack.c.h.bf16 %v3283_v60  ;;  %v3318_v60 = vld [vmem:[%s5712_s1 + $0x3c8] sm:$0xff]  }
 0x185   :  { %v2117_v4 = vadd.f32 %v2116_v44, %v2115_v2  ;;  %v2130_v9 = vadd.f32 %v2129_v15, %v2128_v22  ;;  %v502_v33 = vadd.f32 %v501_v18, %v487_v38  ;;  %v515_v45 = vadd.f32 %v514_v61, %v495_v57  ;;  %v6169_v18 = vld [vmem:[#allocation43_spill] sm:$0xff] }
 0x186   :  { %v1040_v58 = vmul.f32 %v5164_v63, %v2905_v37  ;;  %v1053_v42 = vadd.f32 %v1038_v51, %v1037_v24  ;;  %v1048_v21 = vmul.f32 %v5170_v50, %v2905_v37  ;;  %v1066_v31 = vadd.f32 %v1046_v47, %v1045_v0 }
 0x187   :  { %v2131_v8 = vadd.f32 %v2117_v4, %v1575_v1  ;;  %v2132_v49 = vadd.f32 %v2130_v9, %v1576_v17  ;;  %v503_v32 = vrot.slane %v502_v33, 4  ;;  %v2912_v30 = vunpack.c.l.bf16 %v3284_v59  ;;  %v3317_v1 = vld [vmem:[%s5712_s1 + $0x3c0] sm:$0xff]   ;;  %v3319_v9 = vld [vmem:[%s5712_s1 + $0x3d0] sm:$0xff]  }
 0x188   :  { %v1041_v38 = vmul.f32 %v5176_v46, %v2908_v36  ;;  %v1054_v26 = vadd.f32 %v1053_v42, %v1039_v34  ;;  %v516_v6 = vrot.slane %v515_v45, 4  ;;  %v1049_v53 = vmul.f32 %v5182_v43, %v2908_v36  ;;  %v6172_v42 = vld [vmem:[#allocation30_spill] sm:$0xff] }
 0x189   :  { %v2299_v57 = vsel %vm2255_vm0, %v2132_v49, %v2131_v8  ;;  %v1067_v3 = vadd.f32 %v1066_v31, %v1047_v19  ;;  %v2913_v2 = vunpack.c.h.bf16 %v3284_v59  ;;  %v1042_v41 = vmul.f32 %v4938_v28, %v2909_v11  ;;  %v6170_v28 = vld [vmem:[#allocation28_spill] sm:$0xff] }
 0x18a   :  { %v2301_v17 = vsel %vm2258_vm1, %v2299_v57, 0.0  ;;  %v1055_v22 = vadd.f32 %v1054_v26, %v1040_v58  ;;  %v504_v52 = vadd.f32 %v503_v32, %v502_v33  ;;  %v1050_v7 = vmul.f32 %v5194_v5, %v2909_v11  ;;  %v6171_v59 = vld [vmem:[#allocation12_spill] sm:$0xff]  ;;  %v6175_v57 = vld [vmem:[#allocation37_spill] sm:$0xff] }
 0x18b   :  { %2302 = vadd.xlane.f32.xlu0 %v2301_v17  ;;  %v1068_v37 = vadd.f32 %v1067_v3, %v1048_v21  ;;  %v1043_v44 = vmul.f32 %v5208_v14, %v2912_v30  ;;  %v3044_v51 = vunpack.c.l.bf16 %v3317_v1  ;;  %v3045_v0 = vunpack.c.h.bf16 %v3317_v1  ;;  %v6174_v21 = vld [vmem:[#allocation36_spill] sm:$0xff]  ;;  %v3320_v3 = vld [vmem:[%s5712_s1 + $0x3d8] sm:$0xff]  }
 0x18c   :  { %v1056_v24 = vadd.f32 %v1055_v22, %v1041_v38  ;;  %v517_v15 = vadd.f32 %v516_v6, %v515_v45  ;;  %v1051_v61 = vmul.f32 %v6169_v18, %v2912_v30  ;;  %v1044_v4 = vmul.f32 %v6170_v28, %v2913_v2  ;;  %v6173_v45 = vld [vmem:[#allocation34_spill] sm:$0xff]  ;;  %v6195_v28 = vld [vmem:[#allocation21_spill] sm:$0xff] }
 0x18d   :  { %v1069_v47 = vadd.f32 %v1068_v37, %v1049_v53  ;;  %v3048_v34 = vunpack.c.l.bf16 %v3318_v60  ;;  %v505_v33 = vrot.slane %v504_v52, 2  ;;  %v1052_v19 = vmul.f32 %v6171_v59, %v2913_v2  ;;  %v6176_v1 = vld [vmem:[#allocation42_spill] sm:$0xff]  ;;  %v6177_v2 = vld [vmem:[#allocation35_spill] sm:$0xff] }
 0x18e   :  { %v1057_v36 = vadd.f32 %v1056_v24, %v1042_v41  ;;  %v3049_v11 = vunpack.c.h.bf16 %v3318_v60  ;;  %v1593_v49 = vmul.f32 %v6172_v42, %v3044_v51  ;;  %v1594_v32 = vmul.f32 %v6173_v45, %v3045_v0  ;;  %v6178_v60 = vld [vmem:[#allocation18_spill] sm:$0xff]  ;;  %v6179_v24 = vld [vmem:[#allocation39_spill] sm:$0xff] }
 0x18f   :  { %v1070_v8 = vadd.f32 %v1069_v47, %v1050_v7  ;;  %v1601_v31 = vmul.f32 %v6174_v21, %v3044_v51  ;;  %v518_v30 = vrot.slane %v517_v15, 2  ;;  %v3052_v26 = vunpack.c.l.bf16 %v3319_v9  ;;  %v6194_v21 = vld [vmem:[#allocation20_spill] sm:$0xff] }
 0x190   :  { %v1058_v58 = vadd.f32 %v1057_v36, %v1043_v44  ;;  %v1602_v6 = vmul.f32 %v6175_v57, %v3045_v0  ;;  %v1595_v17 = vmul.f32 %v6176_v1, %v3048_v34  ;;  %v1603_v41 = vmul.f32 %v6177_v2, %v3048_v34  ;;  %v6180_v36 = vld [vmem:[#allocation38_spill] sm:$0xff] }
 0x191   :  { %v1071_v38 = vadd.f32 %v1070_v8, %v1051_v61  ;;  %v506_v22 = vadd.f32 %v505_v33, %v504_v52  ;;  %v3053_v37 = vunpack.c.h.bf16 %v3319_v9  ;;  %v1596_v44 = vmul.f32 %v6178_v60, %v3049_v11  ;;  %v3353_v8 = vld [vmem:[%s5712_s1 + $0x3e0] sm:$0xff]  }
 0x192   :  { %v1059_v53 = vadd.f32 %v1058_v58, %v1044_v4  ;;  %v1604_v51 = vmul.f32 %v6179_v24, %v3049_v11  ;;  %v1609_v18 = vadd.f32 %v1594_v32, %v1593_v49  ;;  %v1622_v61 = vadd.f32 %v1602_v6, %v1601_v31  ;;  %v6181_v52 = vld [vmem:[#allocation8_spill] sm:$0xff]  ;;  %v6182_v11 = vld [vmem:[#allocation41_spill] sm:$0xff] }
 0x193   :  { %v1072_v7 = vadd.f32 %v1071_v38, %v1052_v19  ;;  %v5516_v47 = vadd.f32 %v518_v30, %v517_v15  ;;  %v3056_v4 = vunpack.c.l.bf16 %v3320_v3  ;;  %v1597_v59 = vmul.f32 %v6180_v36, %v3052_v26  ;;  %v6183_v32 = vld [vmem:[#allocation9_spill] sm:$0xff]  ;;  %v6190_v60 = vld [vmem:[#allocation16_spill] sm:$0xff] }
 0x194   :  { %v1060_v0 = vrot.slane %v1059_v53, 4  ;;  %v1605_v33 = vmul.f32 %v6181_v52, %v3052_v26  ;;  %v1610_v9 = vadd.f32 %v1609_v18, %v1595_v17  ;;  %v1623_v19 = vadd.f32 %v1622_v61, %v1603_v41  ;;  %v3354_v31 = vld [vmem:[%s5712_s1 + $0x3e8] sm:$0xff]   ;;  %v6185_v41 = vld [vmem:[#allocation10_spill] sm:$0xff] }
 0x195   :  { %v1073_v34 = vrot.slane %v1072_v7, 4  ;;  %v507_v58 = vrot.slane %v506_v22, 1  ;;  %v3057_v38 = vunpack.c.h.bf16 %v3320_v3  ;;  %v1598_v49 = vmul.f32 %v6182_v11, %v3053_v37  ;;  %v6184_v26 = vld [vmem:[#allocation44_spill] sm:$0xff] }
 0x196   :  { %v1606_v15 = vmul.f32 %v6183_v32, %v3053_v37  ;;  %v1611_v30 = vadd.f32 %v1610_v9, %v1596_v44  ;;  %v1624_v6 = vadd.f32 %v1623_v19, %v1604_v51  ;;  %v3188_v36 = vunpack.c.l.bf16 %v3353_v8  ;;  %v3355_v37 = vld [vmem:[%s5712_s1 + $0x3f0] sm:$0xff]  }
 0x197   :  { %v3189_v24 = vunpack.c.h.bf16 %v3353_v8  ;;  %v1061_v2 = vadd.f32 %v1060_v0, %v1059_v53  ;;  %v1599_v17 = vmul.f32 %v6184_v26, %v3056_v4  ;;  %v1607_v18 = vmul.f32 %v6185_v41, %v3056_v4  ;;  %v6186_v44 = vld [vmem:[#allocation45_spill] sm:$0xff]  ;;  %v6187_v8 = vld [vmem:[#allocation11_spill] sm:$0xff]  ;;  %v6188_v4 = vld [vmem:[#allocation14_spill] sm:$0xff] }
 0x198   :  { %v1074_v3 = vadd.f32 %v1073_v34, %v1072_v7  ;;  %v1612_v61 = vadd.f32 %v1611_v30, %v1597_v59  ;;  %v1625_v11 = vadd.f32 %v1624_v6, %v1605_v33  ;;  %v3192_v52 = vunpack.c.l.bf16 %v3354_v31  ;;  %v3356_v7 = vld [vmem:[%s5712_s1 + $0x3f8] sm:$0xff]   ;;  %v6189_v34 = vld [vmem:[#allocation13_spill] sm:$0xff] }
 0x199   :  { %v5534_v32 = vadd.f32 %v507_v58, %v506_v22  ;;  %v1600_v51 = vmul.f32 %v6186_v44, %v3057_v38  ;;  %v1608_v9 = vmul.f32 %v6187_v8, %v3057_v38  ;;  %v3193_v19 = vunpack.c.h.bf16 %v3354_v31  ;;  %v6191_v58 = vld [vmem:[#allocation15_spill] sm:$0xff]  ;;  %v6193_v8 = vld [vmem:[#allocation22_spill] sm:$0xff] }
 0x19a   :  { %v1613_v53 = vadd.f32 %v1612_v61, %v1598_v49  ;;  %v1626_v0 = vadd.f32 %v1625_v11, %v1606_v15  ;;  %v2149_v59 = vmul.f32 %v6188_v4, %v3188_v36  ;;  %v2150_v33 = vmul.f32 %v6189_v34, %v3189_v24  ;;  %v6192_v31 = vld [vmem:[#allocation19_spill] sm:$0xff] }
 0x19b   :  { %v1062_v30 = vrot.slane %v1061_v2, 2  ;;  %v3196_v6 = vunpack.c.l.bf16 %v3355_v37  ;;  %v2157_v22 = vmul.f32 %v6190_v60, %v3188_v36  ;;  %v2158_v41 = vmul.f32 %v6191_v58, %v3189_v24  ;;  %v6196_v60 = vld [vmem:[#allocation27_spill] sm:$0xff] }
 0x19c   :  { %v1075_v44 = vrot.slane %v1074_v3, 2  ;;  %v1614_v26 = vadd.f32 %v1613_v53, %v1599_v17  ;;  %v1627_v38 = vadd.f32 %v1626_v0, %v1607_v18  ;;  %v2151_v49 = vmul.f32 %v6192_v31, %v3192_v52  ;;  %v3249_v17 = vld [vmem:[%s5712_s1 + $0x400] sm:$0xff]  }
 0x19d   :  { %v3197_v11 = vunpack.c.h.bf16 %v3355_v37  ;;  %v3200_v15 = vunpack.c.l.bf16 %v3356_v7  ;;  %v3201_v61 = vunpack.c.h.bf16 %v3356_v7  ;;  %v2159_v1 = vmul.f32 %v6193_v8, %v3192_v52  ;;  %v6197_v52 = vld [vmem:[#allocation23_spill] sm:$0xff]  ;;  %v6199_v7 = vld [vmem:[#allocation29_spill] sm:$0xff] }
 0x19e   :  { %v1615_v57 = vadd.f32 %v1614_v26, %v1600_v51  ;;  %v1628_v4 = vadd.f32 %v1627_v38, %v1608_v9  ;;  %v2152_v34 = vmul.f32 %v6194_v21, %v3193_v19  ;;  %v2165_v45 = vadd.f32 %v2150_v33, %v2149_v59  ;;  %v6198_v51 = vld [vmem:[#allocation25_spill] sm:$0xff] }
 0x19f   :  { %v1063_v42 = vadd.f32 %v1062_v30, %v1061_v2  ;;  %v2153_v36 = vmul.f32 %v6195_v28, %v3196_v6  ;;  %v2160_v24 = vmul.f32 %v6196_v60, %v3193_v19  ;;  %v2178_v58 = vadd.f32 %v2158_v41, %v2157_v22  ;;  %v6200_v41 = vld [vmem:[#allocation24_spill] sm:$0xff]  ;;  %v6201_v28 = vld [vmem:[#allocation26_spill] sm:$0xff] }
 0x1a0   :  { %v1076_v18 = vadd.f32 %v1075_v44, %v1074_v3  ;;  %v1616_v37 = vrot.slane %v1615_v57, 4  ;;  %v1629_v53 = vrot.slane %v1628_v4, 4  ;;  %v2166_v0 = vadd.f32 %v2165_v45, %v2151_v49  ;;  %v3250_v45 = vld [vmem:[%s5712_s1 + $0x408] sm:$0xff]  }
 0x1a1   :  { %v2154_v26 = vmul.f32 %v6197_v52, %v3197_v11  ;;  %v2155_v9 = vmul.f32 %v6198_v51, %v3200_v15  ;;  %v2161_v59 = vmul.f32 %v6199_v7, %v3196_v6  ;;  %v2179_v2 = vadd.f32 %v2178_v58, %v2159_v1  ;;  %v6202_v1 = vld [vmem:[#allocation31_spill] sm:$0xff] }
 0x1a2   :  { %v1617_v33 = vadd.f32 %v1616_v37, %v1615_v57  ;;  %v1630_v30 = vadd.f32 %v1629_v53, %v1628_v4  ;;  %v2167_v38 = vadd.f32 %v2166_v0, %v2152_v34  ;;  %v2772_v19 = vunpack.c.l.bf16 %v3249_v17  ;;  %v6203_v4 = vld [vmem:[#allocation33_spill] sm:$0xff] }
 0x1a3   :  { %v2156_v22 = vmul.f32 %v6200_v41, %v3201_v61  ;;  %v2162_v60 = vmul.f32 %v6201_v28, %v3197_v11  ;;  %v2180_v21 = vadd.f32 %v2179_v2, %v2160_v24  ;;  %v2773_v3 = vunpack.c.h.bf16 %v3249_v17 }
 0x1a4   :  { %v1064_v44 = vrot.slane %v1063_v42, 1  ;;  %v1077_v49 = vrot.slane %v1076_v18, 1  ;;  %v1618_v51 = vrot.slane %v1617_v33, 2  ;;  %v2168_v52 = vadd.f32 %v2167_v38, %v2153_v36 }
 0x1a5   :  { %v1631_v6 = vrot.slane %v1630_v30, 2  ;;  %v2163_v57 = vmul.f32 %v6202_v1, %v3200_v15  ;;  %v2164_v34 = vmul.f32 %v6203_v4, %v3201_v61  ;;  %v2181_v58 = vadd.f32 %v2180_v21, %v2161_v59 }
 0x1a6   :  { %v1619_v37 = vadd.f32 %v1618_v51, %v1617_v33  ;;  %v2169_v53 = vadd.f32 %v2168_v52, %v2154_v26  ;;  %v2776_v0 = vunpack.c.l.bf16 %v3250_v45  ;;  %v541_v11 = vmul.f32 %v5037_v13, %v2772_v19  ;;  %v3251_v13 = vld [vmem:[%s5712_s1 + $0x410] sm:$0xff]  }
 0x1a7   :  { %v2182_v24 = vadd.f32 %v2181_v58, %v2162_v60  ;;  %v542_v17 = vmul.f32 %v5043_v12, %v2773_v3  ;;  %v549_v2 = vmul.f32 %v5049_v23, %v2772_v19  ;;  %v550_v41 = vmul.f32 %v5055_v27, %v2773_v3  ;;  %v5577_v27 = vld [vmem:[%s5712_s1 + $0x418] sm:$0xff]  }
 0x1a8   :  { %v6204_v36 = vrot.slane %v5516_v47, 1  ;;  %v1065_v15 = vadd.f32 %v1064_v44, %v1063_v42  ;;  %v1078_v1 = vadd.f32 %v1077_v49, %v1076_v18  ;;  %v2170_v61 = vadd.f32 %v2169_v53, %v2155_v9 }
 0x1a9   :  { %v1632_v21 = vadd.f32 %v1631_v6, %v1630_v30  ;;  %v2183_v51 = vadd.f32 %v2182_v24, %v2163_v57  ;;  %v1620_v52 = vrot.slane %v1619_v37, 1  ;;  %v2777_v59 = vunpack.c.h.bf16 %v3250_v45  ;;  %v3286_v57 = vld [vmem:[%s5712_s1 + $0x428] sm:$0xff]  }
 0x1aa   :  { %v521_v38 = vadd.f32 %v6204_v36, %v5516_v47  ;;  %v2171_v26 = vadd.f32 %v2170_v61, %v2156_v22  ;;  %v543_v12 = vmul.f32 %v5062_v16, %v2776_v0  ;;  %v551_v42 = vmul.f32 %v5068_v56, %v2776_v0  ;;  %v3285_v16 = vld [vmem:[%s5712_s1 + $0x420] sm:$0xff]   ;;  %v6205_v61 = vld [vmem:[#allocation17_spill] sm:$0xff] }
 0x1ab   :  { %v2184_v23 = vadd.f32 %v2183_v51, %v2164_v34  ;;  %v557_v60 = vadd.f32 %v542_v17, %v541_v11  ;;  %v570_v47 = vadd.f32 %v550_v41, %v549_v2  ;;  %v1079_v18 = vadd.f32 %v1065_v15, %v5534_v32 }
 0x1ac   :  { %v1080_v9 = vadd.f32 %v1078_v1, %v521_v38  ;;  %v2172_v33 = vrot.slane %v2171_v26, 4  ;;  %v1633_v30 = vrot.slane %v1632_v21, 1  ;;  %v2780_v22 = vunpack.c.l.bf16 %v3251_v13 }
 0x1ad   :  { %v2185_v19 = vrot.slane %v2184_v23, 4  ;;  %v2781_v3 = vunpack.c.h.bf16 %v3251_v13  ;;  %v2784_v44 = vunpack.c.l.bf16 %v5577_v27  ;;  %v544_v49 = vmul.f32 %v5074_v62, %v2777_v59 }
 0x1ae   :  { %v2173_v45 = vadd.f32 %v2172_v33, %v2171_v26  ;;  %v558_v56 = vadd.f32 %v557_v60, %v543_v12  ;;  %v1621_v6 = vadd.f32 %v1620_v52, %v1619_v37  ;;  %v552_v32 = vmul.f32 %v5086_v39, %v2777_v59  ;;  %v3287_v26 = vld [vmem:[%s5712_s1 + $0x430] sm:$0xff]   ;;  %v3497_v60 = vld [vmem:[%s5711_s0 + $0x148] sm:$0xff] }
 0x1af   :  { %v2186_v41 = vadd.f32 %v2185_v19, %v2184_v23  ;;  %v571_v1 = vadd.f32 %v570_v47, %v551_v42  ;;  %v2785_v58 = vunpack.c.h.bf16 %v5577_v27  ;;  %v2916_v53 = vunpack.c.l.bf16 %v3285_v16 }
 0x1b0   :  { %v2174_v34 = vrot.slane %v2173_v45, 2  ;;  %v2917_v0 = vunpack.c.h.bf16 %v3285_v16  ;;  %v1634_v11 = vadd.f32 %v1633_v30, %v1632_v21  ;;  %v545_v17 = vmul.f32 %v5080_v55, %v2780_v22  ;;  %v3495_v55 = vld [vmem:[%s5711_s0 + $0x40] sm:$0xff] }
 0x1b1   :  { %v2187_v24 = vrot.slane %v2186_v41, 2  ;;  %v546_v62 = vmul.f32 %v5092_v40, %v2781_v3  ;;  %v547_v2 = vmul.f32 %v5098_v10, %v2784_v44  ;;  %v559_v39 = vadd.f32 %v558_v56, %v544_v49  ;;  %v3496_v10 = vld [vmem:[%s5711_s0 + $0x48] sm:$0xff] }
 0x1b2   :  { %v2175_v37 = vadd.f32 %v2174_v34, %v2173_v45  ;;  %v2920_v36 = vunpack.c.l.bf16 %v3286_v57  ;;  %v1635_v38 = vadd.f32 %v1621_v6, %v1079_v18  ;;  %v553_v51 = vmul.f32 %v6205_v61, %v2780_v22 }
 0x1b3   :  { %v2188_v15 = vadd.f32 %v2187_v24, %v2186_v41  ;;  %v572_v52 = vadd.f32 %v571_v1, %v552_v32  ;;  %v2921_v59 = vunpack.c.h.bf16 %v3286_v57  ;;  %v1097_v40 = vmul.f32 %v3495_v55, %v2916_v53 }
 0x1b4   :  { %v2176_v21 = vrot.slane %v2175_v37, 1  ;;  %v1098_v13 = vmul.f32 %v3496_v10, %v2917_v0  ;;  %v1636_v12 = vadd.f32 %v1634_v11, %v1080_v9  ;;  %v1105_v42 = vmul.f32 %v5150_v20, %v2916_v53  ;;  %v3288_v9 = vld [vmem:[%s5712_s1 + $0x438] sm:$0xff]   ;;  %v3498_v20 = vld [vmem:[%s5711_s0 + $0x150] sm:$0xff] }
 0x1b5   :  { %v2189_v23 = vrot.slane %v2188_v15, 1  ;;  %v1106_v47 = vmul.f32 %v3497_v60, %v2917_v0  ;;  %v560_v33 = vadd.f32 %v559_v39, %v545_v17  ;;  %v2924_v30 = vunpack.c.l.bf16 %v3287_v26  ;;  %v6209_v60 = vld [vmem:[#allocation36_spill] sm:$0xff] }
 0x1b6   :  { %v2177_v18 = vadd.f32 %v2176_v21, %v2175_v37  ;;  %v1099_v19 = vmul.f32 %v5157_v25, %v2920_v36  ;;  %v554_v16 = vmul.f32 %v5119_v35, %v2781_v3  ;;  %v573_v45 = vadd.f32 %v572_v52, %v553_v51 }
 0x1b7   :  { %v2190_v22 = vadd.f32 %v2189_v23, %v2188_v15  ;;  %v1107_v49 = vmul.f32 %v3498_v20, %v2920_v36  ;;  %v2925_v6 = vunpack.c.h.bf16 %v3287_v26  ;;  %v1100_v41 = vmul.f32 %v5164_v63, %v2921_v59  ;;  %v3321_v63 = vld [vmem:[%s5712_s1 + $0x440] sm:$0xff]  }
 0x1b8   :  { %v2191_v56 = vadd.f32 %v2177_v18, %v1635_v38  ;;  %v1113_v32 = vadd.f32 %v1098_v13, %v1097_v40  ;;  %v555_v25 = vmul.f32 %v5125_v48, %v2784_v44  ;;  %v1108_v35 = vmul.f32 %v5170_v50, %v2921_v59  ;;  %v3499_v50 = vld [vmem:[%s5711_s0 + $0x68] sm:$0xff]  ;;  %v3500_v13 = vld [vmem:[%s5711_s0 + $0x170] sm:$0xff] }
 0x1b9   :  { %v2192_v1 = vadd.f32 %v2190_v22, %v1636_v12  ;;  %v1126_v3 = vadd.f32 %v1106_v47, %v1105_v42  ;;  %v561_v57 = vadd.f32 %v560_v33, %v546_v62  ;;  %v2928_v34 = vunpack.c.l.bf16 %v3288_v9  ;;  %v3322_v38 = vld [vmem:[%s5712_s1 + $0x448] sm:$0xff]   ;;  %v6208_v42 = vld [vmem:[#allocation34_spill] sm:$0xff] }
 0x1ba   :  { %v1101_v53 = vmul.f32 %v5176_v46, %v2924_v30  ;;  %v1114_v0 = vadd.f32 %v1113_v32, %v1099_v19  ;;  %v574_v24 = vadd.f32 %v573_v45, %v554_v16  ;;  %v1109_v17 = vmul.f32 %v5182_v43, %v2924_v30  ;;  %v6210_v19 = vld [vmem:[#allocation37_spill] sm:$0xff]  ;;  %v3324_v45 = vld [vmem:[%s5712_s1 + $0x458] sm:$0xff]  }
 0x1bb   :  { %v2306_v11 = vsel %vm2255_vm0, %v2192_v1, %v2191_v56  ;;  %v1127_v37 = vadd.f32 %v1126_v3, %v1107_v49  ;;  %v1102_v44 = vmul.f32 %v3499_v50, %v2925_v6  ;;  %v548_v46 = vmul.f32 %v5113_v29, %v2785_v58  ;;  %v6212_v49 = vld [vmem:[#allocation35_spill] sm:$0xff]  ;;  %v6216_v50 = vld [vmem:[#allocation8_spill] sm:$0xff] }
 0x1bc   :  { %v2308_v48 = vsel %vm2258_vm1, %v2306_v11, 0.0  ;;  %v1115_v62 = vadd.f32 %v1114_v0, %v1100_v41  ;;  %v2929_v39 = vunpack.c.h.bf16 %v3288_v9  ;;  %v1110_v43 = vmul.f32 %v5194_v5, %v2925_v6  ;;  %v6206_v5 = vld [vmem:[#allocation28_spill] sm:$0xff]  ;;  %v6211_v9 = vld [vmem:[#allocation42_spill] sm:$0xff]  ;;  %v6214_v3 = vld [vmem:[#allocation39_spill] sm:$0xff] }
 0x1bd   :  { %2309 = vadd.xlane.f32.xlu1 %v2308_v48  ;;  %v1128_v36 = vadd.f32 %v1127_v37, %v1108_v35  ;;  %v556_v15 = vmul.f32 %v5134_v54, %v2785_v58  ;;  %v3060_v51 = vunpack.c.l.bf16 %v3321_v63  ;;  %v3061_v52 = vunpack.c.h.bf16 %v3321_v63  ;;  %v3323_v54 = vld [vmem:[%s5712_s1 + $0x450] sm:$0xff]   ;;  %v3501_v6 = vld [vmem:[%s5711_s0 + $0x178] sm:$0xff]  ;;  %v3357_v37 = vld [vmem:[%s5712_s1 + $0x460] sm:$0xff]  }
 0x1be   :  { %v1116_v61 = vadd.f32 %v1115_v62, %v1101_v53  ;;  %v562_v26 = vadd.f32 %v561_v57, %v547_v2  ;;  %v575_v21 = vadd.f32 %v574_v24, %v555_v25  ;;  %v1103_v59 = vmul.f32 %v5208_v14, %v2928_v34  ;;  %v6207_v2 = vld [vmem:[#allocation30_spill] sm:$0xff] }
 0x1bf   :  { %v1129_v29 = vadd.f32 %v1128_v36, %v1109_v17  ;;  %v3064_v40 = vunpack.c.l.bf16 %v3322_v38  ;;  %v1104_v10 = vmul.f32 %v6206_v5, %v2929_v39  ;;  %v1111_v12 = vmul.f32 %v3500_v13, %v2928_v34  ;;  %v6213_v25 = vld [vmem:[#allocation18_spill] sm:$0xff]  ;;  %v6217_v36 = vld [vmem:[#allocation41_spill] sm:$0xff]  ;;  %v6219_v5 = vld [vmem:[#allocation44_spill] sm:$0xff] }
 0x1c0   :  { %v1117_v55 = vadd.f32 %v1116_v61, %v1102_v44  ;;  %v3065_v58 = vunpack.c.h.bf16 %v3322_v38  ;;  %v1653_v23 = vmul.f32 %v6207_v2, %v3060_v51  ;;  %v1654_v14 = vmul.f32 %v6208_v42, %v3061_v52  ;;  %v6215_v63 = vld [vmem:[#allocation38_spill] sm:$0xff] }
 0x1c1   :  { %v1130_v27 = vadd.f32 %v1129_v29, %v1110_v43  ;;  %v1661_v47 = vmul.f32 %v6209_v60, %v3060_v51  ;;  %v563_v18 = vadd.f32 %v562_v26, %v548_v46  ;;  %v576_v33 = vadd.f32 %v575_v21, %v556_v15  ;;  %v6218_v15 = vld [vmem:[#allocation9_spill] sm:$0xff]  ;;  %v6220_v13 = vld [vmem:[#allocation10_spill] sm:$0xff] }
 0x1c2   :  { %v1118_v30 = vadd.f32 %v1117_v55, %v1103_v59  ;;  %v1662_v22 = vmul.f32 %v6210_v19, %v3061_v52  ;;  %v3068_v16 = vunpack.c.l.bf16 %v3323_v54  ;;  %v1655_v20 = vmul.f32 %v6211_v9, %v3064_v40  ;;  %v3358_v51 = vld [vmem:[%s5712_s1 + $0x468] sm:$0xff]   ;;  %v6223_v19 = vld [vmem:[#allocation14_spill] sm:$0xff] }
 0x1c3   :  { %v1663_v56 = vmul.f32 %v6212_v49, %v3064_v40  ;;  %v1112_v41 = vmul.f32 %v3501_v6, %v2929_v39  ;;  %v1131_v32 = vadd.f32 %v1130_v27, %v1111_v12  ;;  %v3069_v1 = vunpack.c.h.bf16 %v3323_v54  ;;  %v6225_v49 = vld [vmem:[#allocation16_spill] sm:$0xff]  ;;  %v6226_v6 = vld [vmem:[#allocation15_spill] sm:$0xff] }
 0x1c4   :  { %v1656_v35 = vmul.f32 %v6213_v25, %v3065_v58  ;;  %v1664_v57 = vmul.f32 %v6214_v3, %v3065_v58  ;;  %v1669_v34 = vadd.f32 %v1654_v14, %v1653_v23  ;;  %v1682_v53 = vadd.f32 %v1662_v22, %v1661_v47  ;;  %v6221_v23 = vld [vmem:[#allocation45_spill] sm:$0xff]  ;;  %v6222_v14 = vld [vmem:[#allocation11_spill] sm:$0xff] }
 0x1c5   :  { %v564_v0 = vrot.slane %v563_v18, 4  ;;  %v577_v11 = vrot.slane %v576_v33, 4  ;;  %v1119_v24 = vadd.f32 %v1118_v30, %v1104_v10  ;;  %v3072_v17 = vunpack.c.l.bf16 %v3324_v45  ;;  %v3359_v30 = vld [vmem:[%s5712_s1 + $0x470] sm:$0xff]  }
 0x1c6   :  { %v1657_v48 = vmul.f32 %v6215_v63, %v3068_v16  ;;  %v1665_v44 = vmul.f32 %v6216_v50, %v3068_v16  ;;  %v1670_v62 = vadd.f32 %v1669_v34, %v1655_v20  ;;  %v1683_v46 = vadd.f32 %v1682_v53, %v1663_v56  ;;  %v6224_v16 = vld [vmem:[#allocation13_spill] sm:$0xff] }
 0x1c7   :  { %v1132_v39 = vadd.f32 %v1131_v32, %v1112_v41  ;;  %v3073_v43 = vunpack.c.h.bf16 %v3324_v45  ;;  %v1658_v38 = vmul.f32 %v6217_v36, %v3069_v1  ;;  %v1666_v61 = vmul.f32 %v6218_v15, %v3069_v1  ;;  %v6229_v36 = vld [vmem:[#allocation21_spill] sm:$0xff] }
 0x1c8   :  { %v1671_v52 = vadd.f32 %v1670_v62, %v1656_v35  ;;  %v1684_v26 = vadd.f32 %v1683_v46, %v1664_v57  ;;  %v3204_v21 = vunpack.c.l.bf16 %v3357_v37  ;;  %v3205_v59 = vunpack.c.h.bf16 %v3357_v37  ;;  %v3360_v35 = vld [vmem:[%s5712_s1 + $0x478] sm:$0xff]   ;;  %v6227_v37 = vld [vmem:[#allocation20_spill] sm:$0xff]  ;;  %s3554_s1 = smov 4  }
 0x1c9   :  { %v565_v29 = vadd.f32 %v564_v0, %v563_v18  ;;  %v578_v55 = vadd.f32 %v577_v11, %v576_v33  ;;  %v1120_v40 = vrot.slane %v1119_v24, 4  ;;  %v1659_v10 = vmul.f32 %v6219_v5, %v3072_v17  ;;  %v3365_v11 = vld [vmem:[%s5714_s3] ss:$0 sm:$0xff] }
 0x1ca   :  { %v1667_v12 = vmul.f32 %v6220_v13, %v3072_v17  ;;  %v1672_v27 = vadd.f32 %v1671_v52, %v1657_v48  ;;  %v1685_v54 = vadd.f32 %v1684_v26, %v1665_v44  ;;  %v3208_v58 = vunpack.c.l.bf16 %v3358_v51  ;;  %v6228_v62 = vld [vmem:[#allocation27_spill] sm:$0xff]  ;;  %2344 = vrot.lane.b32.xlu0 %v3365_v11, %s3554_s1 }
 0x1cb   :  { %v1133_v2 = vrot.slane %v1132_v39, 4  ;;  %v1660_v42 = vmul.f32 %v6221_v23, %v3073_v43  ;;  %v1668_v60 = vmul.f32 %v6222_v14, %v3073_v43  ;;  %v3209_v47 = vunpack.c.h.bf16 %v3358_v51 }
 0x1cc   :  { %v1673_v18 = vadd.f32 %v1672_v27, %v1658_v38  ;;  %v1686_v33 = vadd.f32 %v1685_v54, %v1666_v61  ;;  %v2209_v22 = vmul.f32 %v6223_v19, %v3204_v21  ;;  %v2210_v45 = vmul.f32 %v6224_v16, %v3205_v59 }
 0x1cd   :  { %v566_v9 = vrot.slane %v565_v29, 2  ;;  %v1121_v20 = vadd.f32 %v1120_v40, %v1119_v24  ;;  %v2217_v56 = vmul.f32 %v6225_v49, %v3204_v21  ;;  %v2218_v41 = vmul.f32 %v6226_v6, %v3205_v59  ;;  %v6230_v59 = vld [vmem:[#allocation23_spill] sm:$0xff] }
 0x1ce   :  { %v1674_v32 = vadd.f32 %v1673_v18, %v1659_v10  ;;  %v1687_v1 = vadd.f32 %v1686_v33, %v1667_v12  ;;  %v3212_v25 = vunpack.c.l.bf16 %v3359_v30  ;;  %v2211_v3 = vmul.f32 %v6192_v31, %v3208_v58  ;;  %v6233_v18 = vld [vmem:[#allocation24_spill] sm:$0xff] }
 0x1cf   :  { %v579_v57 = vrot.slane %v578_v55, 2  ;;  %v1134_v34 = vadd.f32 %v1133_v2, %v1132_v39  ;;  %v3213_v53 = vunpack.c.h.bf16 %v3359_v30  ;;  %v2219_v0 = vmul.f32 %v6193_v8, %v3208_v58  ;;  %v6231_v2 = vld [vmem:[#allocation25_spill] sm:$0xff] }
 0x1d0   :  { %v1675_v24 = vadd.f32 %v1674_v32, %v1660_v42  ;;  %v1688_v17 = vadd.f32 %v1687_v1, %v1668_v60  ;;  %v2212_v63 = vmul.f32 %v6227_v37, %v3209_v47  ;;  %v2225_v48 = vadd.f32 %v2210_v45, %v2209_v22 }
 0x1d1   :  { %v1122_v50 = vrot.slane %v1121_v20, 2  ;;  %v3216_v44 = vunpack.c.l.bf16 %v3360_v35  ;;  %v2220_v46 = vmul.f32 %v6228_v62, %v3209_v47  ;;  %v2238_v43 = vadd.f32 %v2218_v41, %v2217_v56  ;;  %v6232_v47 = vld [vmem:[#allocation31_spill] sm:$0xff] }
 0x1d2   :  { %v1676_v31 = vrot.slane %v1675_v24, 4  ;;  %v1689_v39 = vrot.slane %v1688_v17, 4  ;;  %v2213_v8 = vmul.f32 %v6229_v36, %v3212_v25  ;;  %v2226_v38 = vadd.f32 %v2225_v48, %v2211_v3 }
 0x1d3   :  { %v1135_v15 = vrot.slane %v1134_v34, 2  ;;  %v3217_v61 = vunpack.c.h.bf16 %v3360_v35  ;;  %v2221_v51 = vmul.f32 %v6199_v7, %v3212_v25  ;;  %v2239_v52 = vadd.f32 %v2238_v43, %v2219_v0 }
 0x1d4   :  { %v1677_v26 = vadd.f32 %v1676_v31, %v1675_v24  ;;  %v1690_v21 = vadd.f32 %v1689_v39, %v1688_v17  ;;  %v2214_v40 = vmul.f32 %v6230_v59, %v3213_v53  ;;  %v2227_v5 = vadd.f32 %v2226_v38, %v2212_v63 }
 0x1d5   :  { %v567_v10 = vadd.f32 %v566_v9, %v565_v29  ;;  %v580_v13 = vadd.f32 %v579_v57, %v578_v55  ;;  %v2222_v12 = vmul.f32 %v6201_v28, %v3213_v53  ;;  %v2240_v27 = vadd.f32 %v2239_v52, %v2220_v46  ;;  %v2275_v52 = vpop.xlane.xlu1 %2274 }
 0x1d6   :  { %v1123_v54 = vadd.f32 %v1122_v50, %v1121_v20  ;;  %v1678_v58 = vrot.slane %v1677_v26, 2  ;;  %v2215_v23 = vmul.f32 %v6231_v2, %v3216_v44  ;;  %v2228_v42 = vadd.f32 %v2227_v5, %v2213_v8 }
 0x1d7   :  { %v1136_v14 = vadd.f32 %v1135_v15, %v1134_v34  ;;  %v1691_v60 = vrot.slane %v1690_v21, 2  ;;  %v2223_v7 = vmul.f32 %v6232_v47, %v3216_v44  ;;  %v2241_v30 = vadd.f32 %v2240_v27, %v2221_v51  ;;  %v2261_v51 = vpop.xlane.xlu0 %2260 }
 0x1d8   :  { %v2216_v33 = vmul.f32 %v6233_v18, %v3217_v61  ;;  %v2229_v19 = vadd.f32 %v2228_v42, %v2214_v40  ;;  %v2224_v22 = vmul.f32 %v6203_v4, %v3217_v61  ;;  %v568_v55 = vrot.slane %v567_v10, 1  ;;  %v3366_v42 = vld [vmem:[%s5713_s2] ss:$0 sm:$0xff]  ;;  %s2370_s2 = sshll.u32 %s3557_s12, 4  ;;  %s2371_s2 = int_to_ptr.vmem [resolvable:$true] %s2370_s2 }
 0x1d9   :  { %v2242_v29 = vadd.f32 %v2241_v30, %v2222_v12  ;;  %v1124_v16 = vrot.slane %v1123_v54, 1  ;;  %v1679_v28 = vadd.f32 %v1678_v58, %v1677_v26  ;;  %v581_v9 = vrot.slane %v580_v13, 1 }
 0x1da   :  { %v2230_v45 = vadd.f32 %v2229_v19, %v2215_v23  ;;  %v1137_v20 = vrot.slane %v1136_v14, 1  ;;  %v1692_v49 = vadd.f32 %v1691_v60, %v1690_v21  ;;  %v569_v32 = vadd.f32 %v568_v55, %v567_v10  ;;  %v2289_v21 = vpop.xlane.xlu2 %2288 }
 0x1db   :  { %v2243_v56 = vadd.f32 %v2242_v29, %v2223_v7  ;;  %v1125_v1 = vadd.f32 %v1124_v16, %v1123_v54  ;;  %v1680_v25 = vrot.slane %v1679_v28, 1  ;;  %v582_v3 = vadd.f32 %v581_v9, %v580_v13 }
 0x1dc   :  { %v2231_v6 = vadd.f32 %v2230_v45, %v2216_v33  ;;  %v1138_v57 = vadd.f32 %v1137_v20, %v1136_v14  ;;  %v1693_v34 = vrot.slane %v1692_v49, 1 }
 0x1dd   :  { %v2244_v41 = vadd.f32 %v2243_v56, %v2224_v22  ;;  %v1139_v11 = vadd.f32 %v1125_v1, %v569_v32  ;;  %v1681_v24 = vadd.f32 %v1680_v25, %v1679_v28  ;;  %v2282_v40 = vpop.xlane.xlu1 %2281 }
 0x1de   :  { %v2232_v35 = vrot.slane %v2231_v6, 4  ;;  %v1140_v37 = vadd.f32 %v1138_v57, %v582_v3  ;;  %v1694_v63 = vadd.f32 %v1693_v34, %v1692_v49 }
 0x1df   :  { %v2245_v53 = vrot.slane %v2244_v41, 4  ;;  %v1695_v62 = vadd.f32 %v1681_v24, %v1139_v11  ;;  %v2268_v26 = vpop.xlane.xlu0 %2267 }
 0x1e0   :  { %v2233_v4 = vadd.f32 %v2232_v35, %v2231_v6  ;;  %v1696_v43 = vadd.f32 %v1694_v63, %v1140_v37  ;;  %v2319_v59 = vsel %vm2318_vm2, %v2261_v51, %v2268_v26 }
 0x1e1   :  { %v2246_v0 = vadd.f32 %v2245_v53, %v2244_v41  ;;  %v2321_v5 = vsel %vm2320_vm3, %v2319_v59, %v2275_v52 }
 0x1e2   :  { %v2234_v17 = vrot.slane %v2233_v4, 2  ;;  %v2323_v10 = vsel %vm2322_vm4, %v2321_v5, %v2282_v40  ;;  %v2296_v13 = vpop.xlane.xlu2 %2295 }
 0x1e3   :  { %v2247_v48 = vrot.slane %v2246_v0, 2  ;;  %v2325_v27 = vsel %vm2324_vm5, %v2323_v10, %v2289_v21 }
 0x1e4   :  { %v2235_v50 = vadd.f32 %v2234_v17, %v2233_v4  ;;  %v2327_v54 = vsel %vm2326_vm6, %v2325_v27, %v2296_v13 }
 0x1e5   :  { %v2248_v44 = vadd.f32 %v2247_v48, %v2246_v0 }
 0x1e6   :  { %v2236_v46 = vrot.slane %v2235_v50, 1 }
 0x1e7   :  { %v2249_v31 = vrot.slane %v2248_v44, 1 }
 0x1e8   :  { %v2237_v39 = vadd.f32 %v2236_v46, %v2235_v50 }
 0x1e9   :  { %v2250_v36 = vadd.f32 %v2249_v31, %v2248_v44 }
 0x1ea   :  { %v2251_v8 = vadd.f32 %v2237_v39, %v1695_v62 }
 0x1eb   :  { %v2252_v38 = vadd.f32 %v2250_v36, %v1696_v43 }
 0x1ed   :  { %v2313_v15 = vsel %vm2255_vm0, %v2252_v38, %v2251_v8 }
 0x1ee   :  { %v2315_v61 = vsel %vm2258_vm1, %v2313_v15, 0.0 }
 0x1ef   :  { %2316 = vadd.xlane.f32.xlu2 %v2315_v61 }
 0x1fe   :  { %v2303_v12 = vpop.xlane.xlu0 %2302 }
 0x1ff   :  { %v2329_v2 = vsel %vm2328_vm7, %v2327_v54, %v2303_v12 }
 0x230   :  { %v2310_v58 = vpop.xlane.xlu1 %2309 }
 0x231   :  { %v2331_v23 = vsel %vm2330_vm8, %v2329_v2, %v2310_v58 }
 0x23c   :  { %v2345_v14 = vpop.permute.xlu0 %2344 }
 0x262   :  { %v2317_v60 = vpop.xlane.xlu2 %2316 }
 0x263   :  { %v2333_v47 = vsel %vm2332_vm9, %v2331_v23, %v2317_v60 }
 0x264   :  { %v2347_v7 = vadd.f32 %v2345_v14, %v2333_v47  ;;  %v2338_v30 = vadd.f32 %v3366_v42, %v2333_v47 }
 0x266   :  { %2349 = vrot.lane.b32.xlu1 %v2347_v7, %s3556_s11  ;;  %2340 = vst.msk [vmem:[#allocation2] sm:$0x3] %vm2339_vm10, %v2338_v30 }
 0x267   :  { %2364 = dma.vmem_to_hbm [thread:$0]  %s2360_s7, 32, %s2362_s10, [#allocation3]  }
 0x2d8   :  { %v2350_v18 = vpop.permute.xlu1 %2349 }
 0x2d9   :  { %2353 = vst.msk [vmem:[#allocation4] sm:$0x3] %vm2352_vm11, %v2350_v18 }
 0x2da   :  { %2375 = dma.vmem_to_hbm [thread:$0]  %s2371_s2, 32, %s2373_s15, [#allocation5]  }
 0x2db   :  { %3550 = dma.done.wait [#allocation3], 32  }
 0x2dc   :  { %3551 = vsyncadd [#allocation3], 4294967264 }
 0x2dd   :  { %3552 = dma.done.wait [#allocation5], 32  }
 0x2de   :  { %3553 = vsyncadd [#allocation5], 4294967264 }
 0x2df   :  { %2384 = vsyncpa [#allocation3], 1 }
 0x2e0   :  { %2385 = vsyncpa [#allocation5], 1 }

</bundles_post_ra>
